<compile_context>
chip_gen: v5e
topology: v5e:2x2
jax: 0.10.0
libtpu: 0.0.40
codegen_flags: <defaults>
</compile_context>

<pallas_src>
import functools

import jax
import jax.numpy as jnp
from jax.experimental import pallas as pl
from jax.experimental.pallas import tpu as pltpu

_EPS = 1e-5
_SLOPE = 0.01


# ----------------------------------------------------------------------------
# Pallas kernels
# ----------------------------------------------------------------------------

def _conv_in_act_kernel(*refs, eps, slope, act, has_skip):
    """Fused per-batch conv epilogue.

    refs: patches (K, M), weight (Cout, K), bias/gamma/beta (Cout, 1),
          [skip (Cout, M)], out (Cout, M).
    y = W @ patches + b ; InstanceNorm per channel row over the spatial (lane) axis ;
    optional residual add ; optional LeakyReLU.
    """
    if has_skip:
        p_ref, w_ref, b_ref, g_ref, bt_ref, s_ref, o_ref = refs
    else:
        p_ref, w_ref, b_ref, g_ref, bt_ref, o_ref = refs
    y = jnp.dot(w_ref[...], p_ref[...], preferred_element_type=jnp.float32) + b_ref[...]
    m = jnp.mean(y, axis=1, keepdims=True)
    v = jnp.mean(jnp.square(y - m), axis=1, keepdims=True)      # biased variance (torch)
    y = (y - m) * jax.lax.rsqrt(v + eps) * g_ref[...] + bt_ref[...]
    if has_skip:
        y = y + s_ref[...]
    if act:
        y = jnp.where(y >= 0, y, slope * y)                     # LeakyReLU
    o_ref[...] = y


def _bmm_bias_kernel(w_ref, x_ref, b_ref, o_ref):
    """(N, K) @ (K, M) + bias(N, 1), per batch element (ConvTranspose with k == stride)."""
    o_ref[...] = jnp.dot(w_ref[...], x_ref[...],
                         preferred_element_type=jnp.float32) + b_ref[...]


def _mamba_fused_kernel(x_ref, lng_ref, lnb_ref, wi_ref, cw_ref, cb_ref,
                        wx_ref, wdt_ref, bdt_ref, alogt_ref, dd_ref, wo_ref,
                        o_ref, pad_s,
                        *, d_inner, d_state, dt_rank, k_conv, eps):
    """Fused LayerNorm + full Mamba block for one batch element.

    x_ref: (L, C) tokens.  Discretization is done per timestep inside the scan;
    per-step rows/columns are extracted with one-hot masks + VPU/XLU reduces,
    y is accumulated as a loop-carried value and written/projected once.
    """
    L = x_ref.shape[0]

    # ---- LayerNorm over channels --------------------------------------------------
    x = x_ref[...]
    mu = jnp.mean(x, axis=1, keepdims=True)
    var = jnp.mean(jnp.square(x - mu), axis=1, keepdims=True)
    xn = (x - mu) * jax.lax.rsqrt(var + eps) * lng_ref[...] + lnb_ref[...]

    # ---- in_proj (bias-free) and x / z split --------------------------------------
    xz = jnp.dot(xn, wi_ref[...], preferred_element_type=jnp.float32)     # (L, 2*d_inner)
    xin = xz[:, :d_inner]
    z = xz[:, d_inner:]

    # ---- causal depthwise conv along L + SiLU (left-padded VMEM scratch) ----------
    pad_s[0:k_conv - 1, :] = jnp.zeros((k_conv - 1, d_inner), jnp.float32)
    pad_s[k_conv - 1:, :] = xin
    acc = jnp.zeros((L, d_inner), jnp.float32) + cb_ref[...]
    for k in range(k_conv):                       # static unroll (k_conv == 4)
        acc = acc + pad_s[k:k + L, :] * cw_ref[k:k + 1, :]
    u = acc * jax.nn.sigmoid(acc)                 # SiLU

    # ---- x_proj -> (dt | B | C) -----------------------------------------------------
    xdbl = jnp.dot(u, wx_ref[...], preferred_element_type=jnp.float32)    # (L, dt_rank+2*d_state)
    dt = xdbl[:, :dt_rank]
    bcT = jnp.transpose(xdbl[:, dt_rank:])        # (2*d_state, L): one small transpose
    bmT = bcT[:d_state, :]
    cmT = bcT[d_state:, :]

    # ---- dt_proj (+ bias) and softplus (dt_rank == 1 -> VPU outer product) ---------
    if dt_rank == 1:
        dt_lin = dt * wdt_ref[...] + bdt_ref[...]
    else:
        dt_lin = jnp.dot(dt, wdt_ref[...], preferred_element_type=jnp.float32) + bdt_ref[...]
    delta = jnp.where(dt_lin > 20.0, dt_lin,
                      jnp.log(1.0 + jnp.exp(jnp.minimum(dt_lin, 20.0))))  # softplus

    a_mat = -jnp.exp(alogt_ref[...])              # (d_state, d_inner); a[n, d] = A[d, n]
    du = delta * u                                # (L, d_inner)

    lane_t = jax.lax.broadcasted_iota(jnp.int32, (1, L), 1)   # (1, L)
    row_t = jax.lax.broadcasted_iota(jnp.int32, (L, 1), 0)    # (L, 1)

    def step(t, carry):
        h, y = carry
        rsel = (row_t == t).astype(jnp.float32)                 # one-hot row selector
        lsel = (lane_t == t).astype(jnp.float32)                # one-hot column selector
        dl_row = jnp.sum(delta * rsel, axis=0, keepdims=True)   # (1, d_inner)
        du_row = jnp.sum(du * rsel, axis=0, keepdims=True)      # (1, d_inner)
        b_col = jnp.sum(bmT * lsel, axis=1, keepdims=True)      # (d_state, 1)
        c_col = jnp.sum(cmT * lsel, axis=1, keepdims=True)      # (d_state, 1)
        h = jnp.exp(dl_row * a_mat) * h + b_col * du_row        # selective SSM recurrence
        y_row = jnp.sum(c_col * h, axis=0, keepdims=True)       # (1, d_inner)
        y = y + rsel * y_row
        return h, y

    h0 = jnp.zeros((d_state, d_inner), jnp.float32)
    y0 = jnp.zeros((L, d_inner), jnp.float32)
    _, y_scan = jax.lax.fori_loop(0, L, step, (h0, y0))

    y = y_scan + dd_ref[...] * u                  # + D * u
    y = y * (z * jax.nn.sigmoid(z))               # gate with silu(z)
    o_ref[...] = jnp.dot(y, wo_ref[...], preferred_element_type=jnp.float32)


# ----------------------------------------------------------------------------
# Layer wrappers (thin XLA glue around the fused Pallas kernels)
# ----------------------------------------------------------------------------

def _parallel_params():
    return pltpu.CompilerParams(dimension_semantics=("parallel",))


def conv_in_act(x, w, b, gamma, beta, *, stride=1, act=True, skip=None):
    """Fused Conv2d(+bias) + InstanceNorm2d + optional residual add + LeakyReLU.

    NCHW in/out.  im2col patch extraction stays in XLA; everything downstream runs
    in one Pallas kernel gridded over the batch.
    """
    B, Cin, H, W = x.shape
    Cout, _, kh, kw = w.shape
    ph, pw = kh // 2, kw // 2
    xp = jnp.pad(x, ((0, 0), (0, 0), (ph, ph), (pw, pw))) if (ph or pw) else x
    Ho = (H + 2 * ph - kh) // stride + 1
    Wo = (W + 2 * pw - kw) // stride + 1
    # TODO(synk): im2col / strided patch gather has no direct BlockSpec form; it stays in XLA.
    cols = []
    for i in range(kh):
        for j in range(kw):
            cols.append(xp[:, :, i:i + stride * (Ho - 1) + 1:stride,
                              j:j + stride * (Wo - 1) + 1:stride])
    K = Cin * kh * kw
    M = Ho * Wo
    patches = jnp.stack(cols, axis=2).reshape(B, K, M).astype(jnp.float32)

    args = [patches,
            w.reshape(Cout, K).astype(jnp.float32),
            b.reshape(Cout, 1).astype(jnp.float32),
            gamma.reshape(Cout, 1).astype(jnp.float32),
            beta.reshape(Cout, 1).astype(jnp.float32)]
    in_specs = [pl.BlockSpec((None, K, M), lambda i: (i, 0, 0)),
                pl.BlockSpec((Cout, K), lambda i: (0, 0)),
                pl.BlockSpec((Cout, 1), lambda i: (0, 0)),
                pl.BlockSpec((Cout, 1), lambda i: (0, 0)),
                pl.BlockSpec((Cout, 1), lambda i: (0, 0))]
    has_skip = skip is not None
    if has_skip:
        args.append(skip.reshape(B, Cout, M).astype(jnp.float32))
        in_specs.append(pl.BlockSpec((None, Cout, M), lambda i: (i, 0, 0)))

    kern = functools.partial(_conv_in_act_kernel, eps=_EPS, slope=_SLOPE,
                             act=act, has_skip=has_skip)
    out = pl.pallas_call(
        kern,
        out_shape=jax.ShapeDtypeStruct((B, Cout, M), jnp.float32),
        grid=(B,),
        in_specs=in_specs,
        out_specs=pl.BlockSpec((None, Cout, M), lambda i: (i, 0, 0)),
        compiler_params=_parallel_params(),
    )(*args)
    return out.reshape(B, Cout, Ho, Wo)


def conv_transpose_eq(x, w, b, s):
    """ConvTranspose2d with kernel_size == stride == s (non-overlapping upsample)."""
    B, Cin, H, W = x.shape
    Cout = w.shape[1]
    N = Cout * s * s
    M = H * W
    wf = w.transpose(1, 2, 3, 0).reshape(N, Cin).astype(jnp.float32)
    b_col = jnp.repeat(b, s * s).reshape(N, 1).astype(jnp.float32)
    xf = x.reshape(B, Cin, M).astype(jnp.float32)
    out = pl.pallas_call(
        _bmm_bias_kernel,
        out_shape=jax.ShapeDtypeStruct((B, N, M), jnp.float32),
        grid=(B,),
        in_specs=[pl.BlockSpec((N, Cin), lambda i: (0, 0)),
                  pl.BlockSpec((None, Cin, M), lambda i: (i, 0, 0)),
                  pl.BlockSpec((N, 1), lambda i: (0, 0))],
        out_specs=pl.BlockSpec((None, N, M), lambda i: (i, 0, 0)),
        compiler_params=_parallel_params(),
    )(wf, xf, b_col)
    return (out.reshape(B, Cout, s, s, H, W)
               .transpose(0, 1, 4, 2, 5, 3)
               .reshape(B, Cout, H * s, W * s))


def mamba_layer(mid, ln, mp):
    """Fused LayerNorm + Mamba on the flattened bottleneck feature map (B, C, H, W)."""
    B, C, H, W = mid.shape
    L = H * W
    d_inner = mp['conv1d_w'].shape[0]
    d_state = mp['A_log'].shape[1]
    dt_rank = mp['dt_proj_w'].shape[1]
    k_conv = mp['conv1d_w'].shape[1]

    tokens = mid.reshape(B, C, L).transpose(0, 2, 1).astype(jnp.float32)   # (B, L, C)
    f32 = lambda a: a.astype(jnp.float32)
    args = [
        tokens,
        f32(ln['g']).reshape(1, C), f32(ln['b']).reshape(1, C),
        f32(mp['in_proj_w']).T,                       # (C, 2*d_inner)
        f32(mp['conv1d_w']).T,                        # (k_conv, d_inner)
        f32(mp['conv1d_b']).reshape(1, d_inner),
        f32(mp['x_proj_w']).T,                        # (d_inner, dt_rank + 2*d_state)
        f32(mp['dt_proj_w']).T,                       # (dt_rank, d_inner)
        f32(mp['dt_proj_b']).reshape(1, d_inner),
        f32(mp['A_log']).T,                           # (d_state, d_inner)
        f32(mp['D']).reshape(1, d_inner),
        f32(mp['out_proj_w']).T,                      # (d_inner, C)
    ]
    in_specs = ([pl.BlockSpec((None, L, C), lambda i: (i, 0, 0))]
                + [pl.BlockSpec(a.shape, lambda i: (0, 0)) for a in args[1:]])
    kern = functools.partial(_mamba_fused_kernel, d_inner=d_inner, d_state=d_state,
                             dt_rank=dt_rank, k_conv=k_conv, eps=_EPS)
    out = pl.pallas_call(
        kern,
        out_shape=jax.ShapeDtypeStruct((B, L, C), jnp.float32),
        grid=(B,),
        in_specs=in_specs,
        out_specs=pl.BlockSpec((None, L, C), lambda i: (i, 0, 0)),
        scratch_shapes=[pltpu.VMEM((L + k_conv - 1, d_inner), jnp.float32)],
        compiler_params=_parallel_params(),
    )(*args)
    return out.transpose(0, 2, 1).reshape(B, C, H, W)


def avg_pool2(x):
    B, C, H, W = x.shape
    return x.reshape(B, C, H // 2, 2, W // 2, 2).mean(axis=(3, 5))


def basic_block_d(x, bp, stride):
    """BasicBlockD: conv-IN-lrelu -> conv-IN (+ResNet-D skip) -> lrelu, fully fused."""
    y = conv_in_act(x, bp['c1w'], bp['c1b'], bp['n1g'], bp['n1b'],
                    stride=stride, act=True)
    skip = x
    if stride != 1:
        skip = avg_pool2(skip)
    if 'skw' in bp:
        skip = conv_in_act(skip, bp['skw'], bp['skb'], bp['sng'], bp['snb'],
                           stride=1, act=False)
    return conv_in_act(y, bp['c2w'], bp['c2b'], bp['n2g'], bp['n2b'],
                       stride=1, act=True, skip=skip)


# ----------------------------------------------------------------------------
# UMambaBot forward
# ----------------------------------------------------------------------------

@functools.partial(jax.jit, static_argnames=("enc_strides",))
def umamba_bot_forward(x, p, enc_strides=(1, 2, 2)):
    # ----- ResidualEncoder (stem + one BasicBlockD per stage) -----
    h = conv_in_act(x, p['stem']['w'], p['stem']['b'], p['stem']['ng'], p['stem']['nb'],
                    stride=1, act=True)
    skips = []
    for blk, stride in zip(p['enc'], enc_strides):
        h = basic_block_d(h, blk, stride)
        skips.append(h)

    # ----- LayerNorm + Mamba on the flattened bottleneck tokens (fully fused) -----
    skips[-1] = mamba_layer(skips[-1], p['ln'], p['mamba'])

    # ----- UNetResDecoder -----
    lres = skips[-1]
    seg_outputs = []
    for s, dp in enumerate(p['dec']):
        up = conv_transpose_eq(lres, dp['up_w'], dp['up_b'], dp['up_w'].shape[-1])
        cat = jnp.concatenate([up, skips[-(s + 2)]], axis=1)
        h2 = basic_block_d(cat, dp['block'], 1)
        seg_outputs.append(h2)
        lres = h2
    seg_outputs = seg_outputs[::-1]
    outs = [seg_outputs[0]]                        # deep_supervision=False
    return skips, outs


# ----------------------------------------------------------------------------
# Deterministic parameter construction
# ----------------------------------------------------------------------------

def init_params(key):
    keys = iter(jax.random.split(key, 64))

    def nrm(shape, scale=0.1):
        return scale * jax.random.normal(next(keys), shape, dtype=jnp.float32)

    input_channels = 2
    features = [4, 8, 16]
    k = 3

    def block(cin, cout, project):
        d = {'c1w': nrm((cout, cin, k, k)), 'c1b': nrm((cout,)),
             'n1g': jnp.ones((cout,), jnp.float32), 'n1b': jnp.zeros((cout,), jnp.float32),
             'c2w': nrm((cout, cout, k, k)), 'c2b': nrm((cout,)),
             'n2g': jnp.ones((cout,), jnp.float32), 'n2b': jnp.zeros((cout,), jnp.float32)}
        if project:
            d.update({'skw': nrm((cout, cin, 1, 1)), 'skb': nrm((cout,)),
                      'sng': jnp.ones((cout,), jnp.float32),
                      'snb': jnp.zeros((cout,), jnp.float32)})
        return d

    params = {}
    params['stem'] = {'w': nrm((features[0], input_channels, k, k)), 'b': nrm((features[0],)),
                      'ng': jnp.ones((features[0],), jnp.float32),
                      'nb': jnp.zeros((features[0],), jnp.float32)}

    enc, cin = [], features[0]
    for fs in features:
        enc.append(block(cin, fs, project=(cin != fs)))
        cin = fs
    params['enc'] = enc

    d_model = features[-1]
    params['ln'] = {'g': jnp.ones((d_model,), jnp.float32),
                    'b': jnp.zeros((d_model,), jnp.float32)}

    d_state, d_conv, expand = 16, 4, 2
    d_inner = expand * d_model
    dt_rank = max(1, -(-d_model // 16))
    params['mamba'] = {
        'in_proj_w': nrm((2 * d_inner, d_model)),
        'conv1d_w': nrm((d_inner, d_conv)),
        'conv1d_b': nrm((d_inner,)),
        'x_proj_w': nrm((dt_rank + 2 * d_state, d_inner)),
        'dt_proj_w': nrm((d_inner, dt_rank)),
        'dt_proj_b': nrm((d_inner,)),
        'A_log': jnp.log(jnp.broadcast_to(
            jnp.arange(1, d_state + 1, dtype=jnp.float32), (d_inner, d_state))),
        'D': jnp.ones((d_inner,), jnp.float32),
        'out_proj_w': nrm((d_model, d_inner)),
    }

    dec = []
    strides = [1, 2, 2]
    n_stages = len(features)
    for s in range(1, n_stages):
        below, skipc, st = features[-s], features[-(s + 1)], strides[-s]
        dec.append({'up_w': nrm((below, skipc, st, st)), 'up_b': nrm((skipc,)),
                    'block': block(2 * skipc, skipc, project=True)})
    params['dec'] = dec
    return params


# ----------------------------------------------------------------------------
# Main
# ----------------------------------------------------------------------------

if __name__ == "__main__":
    root = jax.random.PRNGKey(0)
    pkey, xkey = jax.random.split(root)
    params = init_params(pkey)
    x = jax.random.normal(xkey, (2, 2, 16, 16), dtype=jnp.float32)   # NCHW, like PyTorch

    skips, outs = umamba_bot_forward(x, params, enc_strides=(1, 2, 2))
    jax.block_until_ready((skips, outs))

    assert skips[0].shape == (2, 4, 16, 16)
    assert skips[1].shape == (2, 8, 8, 8)
    assert skips[2].shape == (2, 16, 4, 4)      # Mamba-processed bottleneck
    assert outs[0].shape == (2, 4, 16, 16)      # deep_supervision=False -> single output
    print("KERNEL_OK")
</pallas_src>

<mosaic_0001>
module attributes {stable_mosaic.version = 11 : i64} {
  func.func @_conv_in_act_kernel(%arg0: i32, %arg1: memref<1x18x256xf32, #tpu.memory_space<vmem>>, %arg2: memref<4x18xf32, #tpu.memory_space<vmem>>, %arg3: memref<4x1xf32, #tpu.memory_space<vmem>>, %arg4: memref<4x1xf32, #tpu.memory_space<vmem>>, %arg5: memref<4x1xf32, #tpu.memory_space<vmem>>, %arg6: memref<1x4x256xf32, #tpu.memory_space<vmem>>) attributes {dimension_semantics = [#tpu.dimension_semantics<parallel>], iteration_bounds = array<i64: 2>, scalar_prefetch = 0 : i64, scratch_operands = 0 : i64, tpu.core_type = #tpu.core_type<tc>, window_params = [{transform_indices = @transform_0, window_bounds = array<i64: 1, 18, 256>}, {pipeline_mode = #tpu.pipeline_mode<synchronous>, transform_indices = @transform_1, window_bounds = array<i64: 4, 18>}, {pipeline_mode = #tpu.pipeline_mode<synchronous>, transform_indices = @transform_2, window_bounds = array<i64: 4, 1>}, {pipeline_mode = #tpu.pipeline_mode<synchronous>, transform_indices = @transform_3, window_bounds = array<i64: 4, 1>}, {pipeline_mode = #tpu.pipeline_mode<synchronous>, transform_indices = @transform_4, window_bounds = array<i64: 4, 1>}, {transform_indices = @transform_5, window_bounds = array<i64: 1, 4, 256>}]} {
    %c0 = arith.constant 0 : index
    %c0_0 = arith.constant 0 : index
    %0 = vector.load %arg2[%c0, %c0_0] : memref<4x18xf32, #tpu.memory_space<vmem>>, vector<4x18xf32>
    %c0_1 = arith.constant 0 : index
    %c0_2 = arith.constant 0 : index
    %c0_3 = arith.constant 0 : index
    %1 = vector.load %arg1[%c0_1, %c0_2, %c0_3] : memref<1x18x256xf32, #tpu.memory_space<vmem>>, vector<1x18x256xf32>
    %2 = vector.shape_cast %1 : vector<1x18x256xf32> to vector<18x256xf32>
    %cst = arith.constant dense<0.000000e+00> : vector<4x256xf32>
    %3 = tpu.matmul %0, %2, %cst {dimension_numbers = #tpu.dot_dimension_numbers<[1], [0], [0], [1], [0, 0, 1, 1], [], []>} : vector<4x18xf32>, vector<18x256xf32>, vector<4x256xf32> -> vector<4x256xf32>
    %c0_4 = arith.constant 0 : index
    %c0_5 = arith.constant 0 : index
    %4 = vector.load %arg3[%c0_4, %c0_5] : memref<4x1xf32, #tpu.memory_space<vmem>>, vector<4x1xf32>
    %5 = vector.broadcast %4 : vector<4x1xf32> to vector<4x256xf32>
    %6 = arith.addf %3, %5 : vector<4x256xf32>
    %cst_6 = arith.constant dense<0.000000e+00> : vector<4xf32>
    %7 = vector.multi_reduction <add>, %6, %cst_6 [1] : vector<4x256xf32> to vector<4xf32>
    %8 = vector.shape_cast %7 : vector<4xf32> to vector<4x1xf32>
    %cst_7 = arith.constant 2.560000e+02 : f32
    %9 = vector.broadcast %cst_7 : f32 to vector<4x1xf32>
    %10 = arith.divf %8, %9 : vector<4x1xf32>
    %11 = vector.broadcast %10 : vector<4x1xf32> to vector<4x256xf32>
    %12 = arith.subf %6, %11 : vector<4x256xf32>
    %13 = arith.mulf %12, %12 : vector<4x256xf32>
    %cst_8 = arith.constant dense<0.000000e+00> : vector<4xf32>
    %14 = vector.multi_reduction <add>, %13, %cst_8 [1] : vector<4x256xf32> to vector<4xf32>
    %15 = vector.shape_cast %14 : vector<4xf32> to vector<4x1xf32>
    %cst_9 = arith.constant 2.560000e+02 : f32
    %16 = vector.broadcast %cst_9 : f32 to vector<4x1xf32>
    %17 = arith.divf %15, %16 : vector<4x1xf32>
    %18 = vector.broadcast %10 : vector<4x1xf32> to vector<4x256xf32>
    %19 = arith.subf %6, %18 : vector<4x256xf32>
    %cst_10 = arith.constant 9.99999974E-6 : f32
    %20 = vector.broadcast %cst_10 : f32 to vector<4x1xf32>
    %21 = arith.addf %17, %20 : vector<4x1xf32>
    %22 = math.rsqrt %21 : vector<4x1xf32>
    %23 = vector.broadcast %22 : vector<4x1xf32> to vector<4x256xf32>
    %24 = arith.mulf %19, %23 : vector<4x256xf32>
    %c0_11 = arith.constant 0 : index
    %c0_12 = arith.constant 0 : index
    %25 = vector.load %arg4[%c0_11, %c0_12] : memref<4x1xf32, #tpu.memory_space<vmem>>, vector<4x1xf32>
    %26 = vector.broadcast %25 : vector<4x1xf32> to vector<4x256xf32>
    %27 = arith.mulf %24, %26 : vector<4x256xf32>
    %c0_13 = arith.constant 0 : index
    %c0_14 = arith.constant 0 : index
    %28 = vector.load %arg5[%c0_13, %c0_14] : memref<4x1xf32, #tpu.memory_space<vmem>>, vector<4x1xf32>
    %29 = vector.broadcast %28 : vector<4x1xf32> to vector<4x256xf32>
    %30 = arith.addf %27, %29 : vector<4x256xf32>
    %cst_15 = arith.constant 0.000000e+00 : f32
    %31 = vector.broadcast %cst_15 : f32 to vector<4x256xf32>
    %32 = arith.cmpf oge, %30, %31 : vector<4x256xf32>
    %cst_16 = arith.constant 0.00999999977 : f32
    %33 = vector.broadcast %cst_16 : f32 to vector<4x256xf32>
    %34 = arith.mulf %33, %30 : vector<4x256xf32>
    %35 = arith.select %32, %30, %34 : vector<4x256xi1>, vector<4x256xf32>
    %c0_17 = arith.constant 0 : index
    %c0_18 = arith.constant 0 : index
    %c0_19 = arith.constant 0 : index
    %36 = vector.load %arg6[%c0_17, %c0_18, %c0_19] : memref<1x4x256xf32, #tpu.memory_space<vmem>>, vector<1x4x256xf32>
    %37 = vector.shape_cast %36 : vector<1x4x256xf32> to vector<4x256xf32>
    %38 = vector.shape_cast %35 : vector<4x256xf32> to vector<1x4x256xf32>
    tpu.vector_store %arg6[%c0_17, %c0_18, %c0_19], %38 {strides = array<i32>} : memref<1x4x256xf32, #tpu.memory_space<vmem>>, vector<1x4x256xf32>,
    return
  }
  func.func @transform_0(%arg0: i32) -> (i32, i32, i32) {
    %c0_i32 = arith.constant 0 : i32
    %c0_i32_0 = arith.constant 0 : i32
    %c0_i32_1 = arith.constant 0 : i32
    return %arg0, %c0_i32, %c0_i32_0 : i32, i32, i32
  }
  func.func @transform_1(%arg0: i32) -> (i32, i32) {
    %c0_i32 = arith.constant 0 : i32
    %c0_i32_0 = arith.constant 0 : i32
    %c0_i32_1 = arith.constant 0 : i32
    return %c0_i32, %c0_i32_0 : i32, i32
  }
  func.func @transform_2(%arg0: i32) -> (i32, i32) {
    %c0_i32 = arith.constant 0 : i32
    %c0_i32_0 = arith.constant 0 : i32
    %c0_i32_1 = arith.constant 0 : i32
    return %c0_i32, %c0_i32_0 : i32, i32
  }
  func.func @transform_3(%arg0: i32) -> (i32, i32) {
    %c0_i32 = arith.constant 0 : i32
    %c0_i32_0 = arith.constant 0 : i32
    %c0_i32_1 = arith.constant 0 : i32
    return %c0_i32, %c0_i32_0 : i32, i32
  }
  func.func @transform_4(%arg0: i32) -> (i32, i32) {
    %c0_i32 = arith.constant 0 : i32
    %c0_i32_0 = arith.constant 0 : i32
    %c0_i32_1 = arith.constant 0 : i32
    return %c0_i32, %c0_i32_0 : i32, i32
  }
  func.func @transform_5(%arg0: i32) -> (i32, i32, i32) {
    %c0_i32 = arith.constant 0 : i32
    %c0_i32_0 = arith.constant 0 : i32
    %c0_i32_1 = arith.constant 0 : i32
    return %arg0, %c0_i32, %c0_i32_0 : i32, i32, i32
  }
}

module attributes {stable_mosaic.version = 11 : i64} {
  func.func @_conv_in_act_kernel(%arg0: i32, %arg1: memref<1x36x256xf32, #tpu.memory_space<vmem>>, %arg2: memref<4x36xf32, #tpu.memory_space<vmem>>, %arg3: memref<4x1xf32, #tpu.memory_space<vmem>>, %arg4: memref<4x1xf32, #tpu.memory_space<vmem>>, %arg5: memref<4x1xf32, #tpu.memory_space<vmem>>, %arg6: memref<1x4x256xf32, #tpu.memory_space<vmem>>, %arg7: memref<1x4x256xf32, #tpu.memory_space<vmem>>) attributes {dimension_semantics = [#tpu.dimension_semantics<parallel>], iteration_bounds = array<i64: 2>, scalar_prefetch = 0 : i64, scratch_operands = 0 : i64, tpu.core_type = #tpu.core_type<tc>, window_params = [{transform_indices = @transform_0, window_bounds = array<i64: 1, 36, 256>}, {pipeline_mode = #tpu.pipeline_mode<synchronous>, transform_indices = @transform_1, window_bounds = array<i64: 4, 36>}, {pipeline_mode = #tpu.pipeline_mode<synchronous>, transform_indices = @transform_2, window_bounds = array<i64: 4, 1>}, {pipeline_mode = #tpu.pipeline_mode<synchronous>, transform_indices = @transform_3, window_bounds = array<i64: 4, 1>}, {pipeline_mode = #tpu.pipeline_mode<synchronous>, transform_indices = @transform_4, window_bounds = array<i64: 4, 1>}, {transform_indices = @transform_5, window_bounds = array<i64: 1, 4, 256>}, {transform_indices = @transform_6, window_bounds = array<i64: 1, 4, 256>}]} {
    %c0 = arith.constant 0 : index
    %c0_0 = arith.constant 0 : index
    %0 = vector.load %arg2[%c0, %c0_0] : memref<4x36xf32, #tpu.memory_space<vmem>>, vector<4x36xf32>
    %c0_1 = arith.constant 0 : index
    %c0_2 = arith.constant 0 : index
    %c0_3 = arith.constant 0 : index
    %1 = vector.load %arg1[%c0_1, %c0_2, %c0_3] : memref<1x36x256xf32, #tpu.memory_space<vmem>>, vector<1x36x256xf32>
    %2 = vector.shape_cast %1 : vector<1x36x256xf32> to vector<36x256xf32>
    %cst = arith.constant dense<0.000000e+00> : vector<4x256xf32>
    %3 = tpu.matmul %0, %2, %cst {dimension_numbers = #tpu.dot_dimension_numbers<[1], [0], [0], [1], [0, 0, 1, 1], [], []>} : vector<4x36xf32>, vector<36x256xf32>, vector<4x256xf32> -> vector<4x256xf32>
    %c0_4 = arith.constant 0 : index
    %c0_5 = arith.constant 0 : index
    %4 = vector.load %arg3[%c0_4, %c0_5] : memref<4x1xf32, #tpu.memory_space<vmem>>, vector<4x1xf32>
    %5 = vector.broadcast %4 : vector<4x1xf32> to vector<4x256xf32>
    %6 = arith.addf %3, %5 : vector<4x256xf32>
    %cst_6 = arith.constant dense<0.000000e+00> : vector<4xf32>
    %7 = vector.multi_reduction <add>, %6, %cst_6 [1] : vector<4x256xf32> to vector<4xf32>
    %8 = vector.shape_cast %7 : vector<4xf32> to vector<4x1xf32>
    %cst_7 = arith.constant 2.560000e+02 : f32
    %9 = vector.broadcast %cst_7 : f32 to vector<4x1xf32>
    %10 = arith.divf %8, %9 : vector<4x1xf32>
    %11 = vector.broadcast %10 : vector<4x1xf32> to vector<4x256xf32>
    %12 = arith.subf %6, %11 : vector<4x256xf32>
    %13 = arith.mulf %12, %12 : vector<4x256xf32>
    %cst_8 = arith.constant dense<0.000000e+00> : vector<4xf32>
    %14 = vector.multi_reduction <add>, %13, %cst_8 [1] : vector<4x256xf32> to vector<4xf32>
    %15 = vector.shape_cast %14 : vector<4xf32> to vector<4x1xf32>
    %cst_9 = arith.constant 2.560000e+02 : f32
    %16 = vector.broadcast %cst_9 : f32 to vector<4x1xf32>
    %17 = arith.divf %15, %16 : vector<4x1xf32>
    %18 = vector.broadcast %10 : vector<4x1xf32> to vector<4x256xf32>
    %19 = arith.subf %6, %18 : vector<4x256xf32>
    %cst_10 = arith.constant 9.99999974E-6 : f32
    %20 = vector.broadcast %cst_10 : f32 to vector<4x1xf32>
    %21 = arith.addf %17, %20 : vector<4x1xf32>
    %22 = math.rsqrt %21 : vector<4x1xf32>
    %23 = vector.broadcast %22 : vector<4x1xf32> to vector<4x256xf32>
    %24 = arith.mulf %19, %23 : vector<4x256xf32>
    %c0_11 = arith.constant 0 : index
    %c0_12 = arith.constant 0 : index
    %25 = vector.load %arg4[%c0_11, %c0_12] : memref<4x1xf32, #tpu.memory_space<vmem>>, vector<4x1xf32>
    %26 = vector.broadcast %25 : vector<4x1xf32> to vector<4x256xf32>
    %27 = arith.mulf %24, %26 : vector<4x256xf32>
    %c0_13 = arith.constant 0 : index
    %c0_14 = arith.constant 0 : index
    %28 = vector.load %arg5[%c0_13, %c0_14] : memref<4x1xf32, #tpu.memory_space<vmem>>, vector<4x1xf32>
    %29 = vector.broadcast %28 : vector<4x1xf32> to vector<4x256xf32>
    %30 = arith.addf %27, %29 : vector<4x256xf32>
    %c0_15 = arith.constant 0 : index
    %c0_16 = arith.constant 0 : index
    %c0_17 = arith.constant 0 : index
    %31 = vector.load %arg6[%c0_15, %c0_16, %c0_17] : memref<1x4x256xf32, #tpu.memory_space<vmem>>, vector<1x4x256xf32>
    %32 = vector.shape_cast %31 : vector<1x4x256xf32> to vector<4x256xf32>
    %33 = arith.addf %30, %32 : vector<4x256xf32>
    %cst_18 = arith.constant 0.000000e+00 : f32
    %34 = vector.broadcast %cst_18 : f32 to vector<4x256xf32>
    %35 = arith.cmpf oge, %33, %34 : vector<4x256xf32>
    %cst_19 = arith.constant 0.00999999977 : f32
    %36 = vector.broadcast %cst_19 : f32 to vector<4x256xf32>
    %37 = arith.mulf %36, %33 : vector<4x256xf32>
    %38 = arith.select %35, %33, %37 : vector<4x256xi1>, vector<4x256xf32>
    %c0_20 = arith.constant 0 : index
    %c0_21 = arith.constant 0 : index
    %c0_22 = arith.constant 0 : index
    %39 = vector.load %arg7[%c0_20, %c0_21, %c0_22] : memref<1x4x256xf32, #tpu.memory_space<vmem>>, vector<1x4x256xf32>
    %40 = vector.shape_cast %39 : vector<1x4x256xf32> to vector<4x256xf32>
    %41 = vector.shape_cast %38 : vector<4x256xf32> to vector<1x4x256xf32>
    tpu.vector_store %arg7[%c0_20, %c0_21, %c0_22], %41 {strides = array<i32>} : memref<1x4x256xf32, #tpu.memory_space<vmem>>, vector<1x4x256xf32>,
    return
  }
  func.func @transform_0(%arg0: i32) -> (i32, i32, i32) {
    %c0_i32 = arith.constant 0 : i32
    %c0_i32_0 = arith.constant 0 : i32
    %c0_i32_1 = arith.constant 0 : i32
    return %arg0, %c0_i32, %c0_i32_0 : i32, i32, i32
  }
  func.func @transform_1(%arg0: i32) -> (i32, i32) {
    %c0_i32 = arith.constant 0 : i32
    %c0_i32_0 = arith.constant 0 : i32
    %c0_i32_1 = arith.constant 0 : i32
    return %c0_i32, %c0_i32_0 : i32, i32
  }
  func.func @transform_2(%arg0: i32) -> (i32, i32) {
    %c0_i32 = arith.constant 0 : i32
    %c0_i32_0 = arith.constant 0 : i32
    %c0_i32_1 = arith.constant 0 : i32
    return %c0_i32, %c0_i32_0 : i32, i32
  }
  func.func @transform_3(%arg0: i32) -> (i32, i32) {
    %c0_i32 = arith.constant 0 : i32
    %c0_i32_0 = arith.constant 0 : i32
    %c0_i32_1 = arith.constant 0 : i32
    return %c0_i32, %c0_i32_0 : i32, i32
  }
  func.func @transform_4(%arg0: i32) -> (i32, i32) {
    %c0_i32 = arith.constant 0 : i32
    %c0_i32_0 = arith.constant 0 : i32
    %c0_i32_1 = arith.constant 0 : i32
    return %c0_i32, %c0_i32_0 : i32, i32
  }
  func.func @transform_5(%arg0: i32) -> (i32, i32, i32) {
    %c0_i32 = arith.constant 0 : i32
    %c0_i32_0 = arith.constant 0 : i32
    %c0_i32_1 = arith.constant 0 : i32
    return %arg0, %c0_i32, %c0_i32_0 : i32, i32, i32
  }
  func.func @transform_6(%arg0: i32) -> (i32, i32, i32) {
    %c0_i32 = arith.constant 0 : i32
    %c0_i32_0 = arith.constant 0 : i32
    %c0_i32_1 = arith.constant 0 : i32
    return %arg0, %c0_i32, %c0_i32_0 : i32, i32, i32
  }
}

module attributes {stable_mosaic.version = 11 : i64} {
  func.func @_conv_in_act_kernel(%arg0: i32, %arg1: memref<1x36x256xf32, #tpu.memory_space<vmem>>, %arg2: memref<4x36xf32, #tpu.memory_space<vmem>>, %arg3: memref<4x1xf32, #tpu.memory_space<vmem>>, %arg4: memref<4x1xf32, #tpu.memory_space<vmem>>, %arg5: memref<4x1xf32, #tpu.memory_space<vmem>>, %arg6: memref<1x4x256xf32, #tpu.memory_space<vmem>>) attributes {dimension_semantics = [#tpu.dimension_semantics<parallel>], iteration_bounds = array<i64: 2>, scalar_prefetch = 0 : i64, scratch_operands = 0 : i64, tpu.core_type = #tpu.core_type<tc>, window_params = [{transform_indices = @transform_0, window_bounds = array<i64: 1, 36, 256>}, {pipeline_mode = #tpu.pipeline_mode<synchronous>, transform_indices = @transform_1, window_bounds = array<i64: 4, 36>}, {pipeline_mode = #tpu.pipeline_mode<synchronous>, transform_indices = @transform_2, window_bounds = array<i64: 4, 1>}, {pipeline_mode = #tpu.pipeline_mode<synchronous>, transform_indices = @transform_3, window_bounds = array<i64: 4, 1>}, {pipeline_mode = #tpu.pipeline_mode<synchronous>, transform_indices = @transform_4, window_bounds = array<i64: 4, 1>}, {transform_indices = @transform_5, window_bounds = array<i64: 1, 4, 256>}]} {
    %c0 = arith.constant 0 : index
    %c0_0 = arith.constant 0 : index
    %0 = vector.load %arg2[%c0, %c0_0] : memref<4x36xf32, #tpu.memory_space<vmem>>, vector<4x36xf32>
    %c0_1 = arith.constant 0 : index
    %c0_2 = arith.constant 0 : index
    %c0_3 = arith.constant 0 : index
    %1 = vector.load %arg1[%c0_1, %c0_2, %c0_3] : memref<1x36x256xf32, #tpu.memory_space<vmem>>, vector<1x36x256xf32>
    %2 = vector.shape_cast %1 : vector<1x36x256xf32> to vector<36x256xf32>
    %cst = arith.constant dense<0.000000e+00> : vector<4x256xf32>
    %3 = tpu.matmul %0, %2, %cst {dimension_numbers = #tpu.dot_dimension_numbers<[1], [0], [0], [1], [0, 0, 1, 1], [], []>} : vector<4x36xf32>, vector<36x256xf32>, vector<4x256xf32> -> vector<4x256xf32>
    %c0_4 = arith.constant 0 : index
    %c0_5 = arith.constant 0 : index
    %4 = vector.load %arg3[%c0_4, %c0_5] : memref<4x1xf32, #tpu.memory_space<vmem>>, vector<4x1xf32>
    %5 = vector.broadcast %4 : vector<4x1xf32> to vector<4x256xf32>
    %6 = arith.addf %3, %5 : vector<4x256xf32>
    %cst_6 = arith.constant dense<0.000000e+00> : vector<4xf32>
    %7 = vector.multi_reduction <add>, %6, %cst_6 [1] : vector<4x256xf32> to vector<4xf32>
    %8 = vector.shape_cast %7 : vector<4xf32> to vector<4x1xf32>
    %cst_7 = arith.constant 2.560000e+02 : f32
    %9 = vector.broadcast %cst_7 : f32 to vector<4x1xf32>
    %10 = arith.divf %8, %9 : vector<4x1xf32>
    %11 = vector.broadcast %10 : vector<4x1xf32> to vector<4x256xf32>
    %12 = arith.subf %6, %11 : vector<4x256xf32>
    %13 = arith.mulf %12, %12 : vector<4x256xf32>
    %cst_8 = arith.constant dense<0.000000e+00> : vector<4xf32>
    %14 = vector.multi_reduction <add>, %13, %cst_8 [1] : vector<4x256xf32> to vector<4xf32>
    %15 = vector.shape_cast %14 : vector<4xf32> to vector<4x1xf32>
    %cst_9 = arith.constant 2.560000e+02 : f32
    %16 = vector.broadcast %cst_9 : f32 to vector<4x1xf32>
    %17 = arith.divf %15, %16 : vector<4x1xf32>
    %18 = vector.broadcast %10 : vector<4x1xf32> to vector<4x256xf32>
    %19 = arith.subf %6, %18 : vector<4x256xf32>
    %cst_10 = arith.constant 9.99999974E-6 : f32
    %20 = vector.broadcast %cst_10 : f32 to vector<4x1xf32>
    %21 = arith.addf %17, %20 : vector<4x1xf32>
    %22 = math.rsqrt %21 : vector<4x1xf32>
    %23 = vector.broadcast %22 : vector<4x1xf32> to vector<4x256xf32>
    %24 = arith.mulf %19, %23 : vector<4x256xf32>
    %c0_11 = arith.constant 0 : index
    %c0_12 = arith.constant 0 : index
    %25 = vector.load %arg4[%c0_11, %c0_12] : memref<4x1xf32, #tpu.memory_space<vmem>>, vector<4x1xf32>
    %26 = vector.broadcast %25 : vector<4x1xf32> to vector<4x256xf32>
    %27 = arith.mulf %24, %26 : vector<4x256xf32>
    %c0_13 = arith.constant 0 : index
    %c0_14 = arith.constant 0 : index
    %28 = vector.load %arg5[%c0_13, %c0_14] : memref<4x1xf32, #tpu.memory_space<vmem>>, vector<4x1xf32>
    %29 = vector.broadcast %28 : vector<4x1xf32> to vector<4x256xf32>
    %30 = arith.addf %27, %29 : vector<4x256xf32>
    %cst_15 = arith.constant 0.000000e+00 : f32
    %31 = vector.broadcast %cst_15 : f32 to vector<4x256xf32>
    %32 = arith.cmpf oge, %30, %31 : vector<4x256xf32>
    %cst_16 = arith.constant 0.00999999977 : f32
    %33 = vector.broadcast %cst_16 : f32 to vector<4x256xf32>
    %34 = arith.mulf %33, %30 : vector<4x256xf32>
    %35 = arith.select %32, %30, %34 : vector<4x256xi1>, vector<4x256xf32>
    %c0_17 = arith.constant 0 : index
    %c0_18 = arith.constant 0 : index
    %c0_19 = arith.constant 0 : index
    %36 = vector.load %arg6[%c0_17, %c0_18, %c0_19] : memref<1x4x256xf32, #tpu.memory_space<vmem>>, vector<1x4x256xf32>
    %37 = vector.shape_cast %36 : vector<1x4x256xf32> to vector<4x256xf32>
    %38 = vector.shape_cast %35 : vector<4x256xf32> to vector<1x4x256xf32>
    tpu.vector_store %arg6[%c0_17, %c0_18, %c0_19], %38 {strides = array<i32>} : memref<1x4x256xf32, #tpu.memory_space<vmem>>, vector<1x4x256xf32>,
    return
  }
  func.func @transform_0(%arg0: i32) -> (i32, i32, i32) {
    %c0_i32 = arith.constant 0 : i32
    %c0_i32_0 = arith.constant 0 : i32
    %c0_i32_1 = arith.constant 0 : i32
    return %arg0, %c0_i32, %c0_i32_0 : i32, i32, i32
  }
  func.func @transform_1(%arg0: i32) -> (i32, i32) {
    %c0_i32 = arith.constant 0 : i32
    %c0_i32_0 = arith.constant 0 : i32
    %c0_i32_1 = arith.constant 0 : i32
    return %c0_i32, %c0_i32_0 : i32, i32
  }
  func.func @transform_2(%arg0: i32) -> (i32, i32) {
    %c0_i32 = arith.constant 0 : i32
    %c0_i32_0 = arith.constant 0 : i32
    %c0_i32_1 = arith.constant 0 : i32
    return %c0_i32, %c0_i32_0 : i32, i32
  }
  func.func @transform_3(%arg0: i32) -> (i32, i32) {
    %c0_i32 = arith.constant 0 : i32
    %c0_i32_0 = arith.constant 0 : i32
    %c0_i32_1 = arith.constant 0 : i32
    return %c0_i32, %c0_i32_0 : i32, i32
  }
  func.func @transform_4(%arg0: i32) -> (i32, i32) {
    %c0_i32 = arith.constant 0 : i32
    %c0_i32_0 = arith.constant 0 : i32
    %c0_i32_1 = arith.constant 0 : i32
    return %c0_i32, %c0_i32_0 : i32, i32
  }
  func.func @transform_5(%arg0: i32) -> (i32, i32, i32) {
    %c0_i32 = arith.constant 0 : i32
    %c0_i32_0 = arith.constant 0 : i32
    %c0_i32_1 = arith.constant 0 : i32
    return %arg0, %c0_i32, %c0_i32_0 : i32, i32, i32
  }
}

module attributes {stable_mosaic.version = 11 : i64} {
  func.func @_conv_in_act_kernel(%arg0: i32, %arg1: memref<1x36x64xf32, #tpu.memory_space<vmem>>, %arg2: memref<8x36xf32, #tpu.memory_space<vmem>>, %arg3: memref<8x1xf32, #tpu.memory_space<vmem>>, %arg4: memref<8x1xf32, #tpu.memory_space<vmem>>, %arg5: memref<8x1xf32, #tpu.memory_space<vmem>>, %arg6: memref<1x8x64xf32, #tpu.memory_space<vmem>>) attributes {dimension_semantics = [#tpu.dimension_semantics<parallel>], iteration_bounds = array<i64: 2>, scalar_prefetch = 0 : i64, scratch_operands = 0 : i64, tpu.core_type = #tpu.core_type<tc>, window_params = [{transform_indices = @transform_0, window_bounds = array<i64: 1, 36, 64>}, {pipeline_mode = #tpu.pipeline_mode<synchronous>, transform_indices = @transform_1, window_bounds = array<i64: 8, 36>}, {pipeline_mode = #tpu.pipeline_mode<synchronous>, transform_indices = @transform_2, window_bounds = array<i64: 8, 1>}, {pipeline_mode = #tpu.pipeline_mode<synchronous>, transform_indices = @transform_3, window_bounds = array<i64: 8, 1>}, {pipeline_mode = #tpu.pipeline_mode<synchronous>, transform_indices = @transform_4, window_bounds = array<i64: 8, 1>}, {transform_indices = @transform_5, window_bounds = array<i64: 1, 8, 64>}]} {
    %c0 = arith.constant 0 : index
    %c0_0 = arith.constant 0 : index
    %0 = vector.load %arg2[%c0, %c0_0] : memref<8x36xf32, #tpu.memory_space<vmem>>, vector<8x36xf32>
    %c0_1 = arith.constant 0 : index
    %c0_2 = arith.constant 0 : index
    %c0_3 = arith.constant 0 : index
    %1 = vector.load %arg1[%c0_1, %c0_2, %c0_3] : memref<1x36x64xf32, #tpu.memory_space<vmem>>, vector<1x36x64xf32>
    %2 = vector.shape_cast %1 : vector<1x36x64xf32> to vector<36x64xf32>
    %cst = arith.constant dense<0.000000e+00> : vector<8x64xf32>
    %3 = tpu.matmul %0, %2, %cst {dimension_numbers = #tpu.dot_dimension_numbers<[1], [0], [0], [1], [0, 0, 1, 1], [], []>} : vector<8x36xf32>, vector<36x64xf32>, vector<8x64xf32> -> vector<8x64xf32>
    %c0_4 = arith.constant 0 : index
    %c0_5 = arith.constant 0 : index
    %4 = vector.load %arg3[%c0_4, %c0_5] : memref<8x1xf32, #tpu.memory_space<vmem>>, vector<8x1xf32>
    %5 = vector.broadcast %4 : vector<8x1xf32> to vector<8x64xf32>
    %6 = arith.addf %3, %5 : vector<8x64xf32>
    %cst_6 = arith.constant dense<0.000000e+00> : vector<8xf32>
    %7 = vector.multi_reduction <add>, %6, %cst_6 [1] : vector<8x64xf32> to vector<8xf32>
    %8 = vector.shape_cast %7 : vector<8xf32> to vector<8x1xf32>
    %cst_7 = arith.constant 6.400000e+01 : f32
    %9 = vector.broadcast %cst_7 : f32 to vector<8x1xf32>
    %10 = arith.divf %8, %9 : vector<8x1xf32>
    %11 = vector.broadcast %10 : vector<8x1xf32> to vector<8x64xf32>
    %12 = arith.subf %6, %11 : vector<8x64xf32>
    %13 = arith.mulf %12, %12 : vector<8x64xf32>
    %cst_8 = arith.constant dense<0.000000e+00> : vector<8xf32>
    %14 = vector.multi_reduction <add>, %13, %cst_8 [1] : vector<8x64xf32> to vector<8xf32>
    %15 = vector.shape_cast %14 : vector<8xf32> to vector<8x1xf32>
    %cst_9 = arith.constant 6.400000e+01 : f32
    %16 = vector.broadcast %cst_9 : f32 to vector<8x1xf32>
    %17 = arith.divf %15, %16 : vector<8x1xf32>
    %18 = vector.broadcast %10 : vector<8x1xf32> to vector<8x64xf32>
    %19 = arith.subf %6, %18 : vector<8x64xf32>
    %cst_10 = arith.constant 9.99999974E-6 : f32
    %20 = vector.broadcast %cst_10 : f32 to vector<8x1xf32>
    %21 = arith.addf %17, %20 : vector<8x1xf32>
    %22 = math.rsqrt %21 : vector<8x1xf32>
    %23 = vector.broadcast %22 : vector<8x1xf32> to vector<8x64xf32>
    %24 = arith.mulf %19, %23 : vector<8x64xf32>
    %c0_11 = arith.constant 0 : index
    %c0_12 = arith.constant 0 : index
    %25 = vector.load %arg4[%c0_11, %c0_12] : memref<8x1xf32, #tpu.memory_space<vmem>>, vector<8x1xf32>
    %26 = vector.broadcast %25 : vector<8x1xf32> to vector<8x64xf32>
    %27 = arith.mulf %24, %26 : vector<8x64xf32>
    %c0_13 = arith.constant 0 : index
    %c0_14 = arith.constant 0 : index
    %28 = vector.load %arg5[%c0_13, %c0_14] : memref<8x1xf32, #tpu.memory_space<vmem>>, vector<8x1xf32>
    %29 = vector.broadcast %28 : vector<8x1xf32> to vector<8x64xf32>
    %30 = arith.addf %27, %29 : vector<8x64xf32>
    %cst_15 = arith.constant 0.000000e+00 : f32
    %31 = vector.broadcast %cst_15 : f32 to vector<8x64xf32>
    %32 = arith.cmpf oge, %30, %31 : vector<8x64xf32>
    %cst_16 = arith.constant 0.00999999977 : f32
    %33 = vector.broadcast %cst_16 : f32 to vector<8x64xf32>
    %34 = arith.mulf %33, %30 : vector<8x64xf32>
    %35 = arith.select %32, %30, %34 : vector<8x64xi1>, vector<8x64xf32>
    %c0_17 = arith.constant 0 : index
    %c0_18 = arith.constant 0 : index
    %c0_19 = arith.constant 0 : index
    %36 = vector.load %arg6[%c0_17, %c0_18, %c0_19] : memref<1x8x64xf32, #tpu.memory_space<vmem>>, vector<1x8x64xf32>
    %37 = vector.shape_cast %36 : vector<1x8x64xf32> to vector<8x64xf32>
    %38 = vector.shape_cast %35 : vector<8x64xf32> to vector<1x8x64xf32>
    tpu.vector_store %arg6[%c0_17, %c0_18, %c0_19], %38 {strides = array<i32>} : memref<1x8x64xf32, #tpu.memory_space<vmem>>, vector<1x8x64xf32>,
    return
  }
  func.func @transform_0(%arg0: i32) -> (i32, i32, i32) {
    %c0_i32 = arith.constant 0 : i32
    %c0_i32_0 = arith.constant 0 : i32
    %c0_i32_1 = arith.constant 0 : i32
    return %arg0, %c0_i32, %c0_i32_0 : i32, i32, i32
  }
  func.func @transform_1(%arg0: i32) -> (i32, i32) {
    %c0_i32 = arith.constant 0 : i32
    %c0_i32_0 = arith.constant 0 : i32
    %c0_i32_1 = arith.constant 0 : i32
    return %c0_i32, %c0_i32_0 : i32, i32
  }
  func.func @transform_2(%arg0: i32) -> (i32, i32) {
    %c0_i32 = arith.constant 0 : i32
    %c0_i32_0 = arith.constant 0 : i32
    %c0_i32_1 = arith.constant 0 : i32
    return %c0_i32, %c0_i32_0 : i32, i32
  }
  func.func @transform_3(%arg0: i32) -> (i32, i32) {
    %c0_i32 = arith.constant 0 : i32
    %c0_i32_0 = arith.constant 0 : i32
    %c0_i32_1 = arith.constant 0 : i32
    return %c0_i32, %c0_i32_0 : i32, i32
  }
  func.func @transform_4(%arg0: i32) -> (i32, i32) {
    %c0_i32 = arith.constant 0 : i32
    %c0_i32_0 = arith.constant 0 : i32
    %c0_i32_1 = arith.constant 0 : i32
    return %c0_i32, %c0_i32_0 : i32, i32
  }
  func.func @transform_5(%arg0: i32) -> (i32, i32, i32) {
    %c0_i32 = arith.constant 0 : i32
    %c0_i32_0 = arith.constant 0 : i32
    %c0_i32_1 = arith.constant 0 : i32
    return %arg0, %c0_i32, %c0_i32_0 : i32, i32, i32
  }
}

module attributes {stable_mosaic.version = 11 : i64} {
  func.func @_conv_in_act_kernel(%arg0: i32, %arg1: memref<1x4x64xf32, #tpu.memory_space<vmem>>, %arg2: memref<8x4xf32, #tpu.memory_space<vmem>>, %arg3: memref<8x1xf32, #tpu.memory_space<vmem>>, %arg4: memref<8x1xf32, #tpu.memory_space<vmem>>, %arg5: memref<8x1xf32, #tpu.memory_space<vmem>>, %arg6: memref<1x8x64xf32, #tpu.memory_space<vmem>>) attributes {dimension_semantics = [#tpu.dimension_semantics<parallel>], iteration_bounds = array<i64: 2>, scalar_prefetch = 0 : i64, scratch_operands = 0 : i64, tpu.core_type = #tpu.core_type<tc>, window_params = [{transform_indices = @transform_0, window_bounds = array<i64: 1, 4, 64>}, {pipeline_mode = #tpu.pipeline_mode<synchronous>, transform_indices = @transform_1, window_bounds = array<i64: 8, 4>}, {pipeline_mode = #tpu.pipeline_mode<synchronous>, transform_indices = @transform_2, window_bounds = array<i64: 8, 1>}, {pipeline_mode = #tpu.pipeline_mode<synchronous>, transform_indices = @transform_3, window_bounds = array<i64: 8, 1>}, {pipeline_mode = #tpu.pipeline_mode<synchronous>, transform_indices = @transform_4, window_bounds = array<i64: 8, 1>}, {transform_indices = @transform_5, window_bounds = array<i64: 1, 8, 64>}]} {
    %c0 = arith.constant 0 : index
    %c0_0 = arith.constant 0 : index
    %0 = vector.load %arg2[%c0, %c0_0] : memref<8x4xf32, #tpu.memory_space<vmem>>, vector<8x4xf32>
    %c0_1 = arith.constant 0 : index
    %c0_2 = arith.constant 0 : index
    %c0_3 = arith.constant 0 : index
    %1 = vector.load %arg1[%c0_1, %c0_2, %c0_3] : memref<1x4x64xf32, #tpu.memory_space<vmem>>, vector<1x4x64xf32>
    %2 = vector.shape_cast %1 : vector<1x4x64xf32> to vector<4x64xf32>
    %cst = arith.constant dense<0.000000e+00> : vector<8x64xf32>
    %3 = tpu.matmul %0, %2, %cst {dimension_numbers = #tpu.dot_dimension_numbers<[1], [0], [0], [1], [0, 0, 1, 1], [], []>} : vector<8x4xf32>, vector<4x64xf32>, vector<8x64xf32> -> vector<8x64xf32>
    %c0_4 = arith.constant 0 : index
    %c0_5 = arith.constant 0 : index
    %4 = vector.load %arg3[%c0_4, %c0_5] : memref<8x1xf32, #tpu.memory_space<vmem>>, vector<8x1xf32>
    %5 = vector.broadcast %4 : vector<8x1xf32> to vector<8x64xf32>
    %6 = arith.addf %3, %5 : vector<8x64xf32>
    %cst_6 = arith.constant dense<0.000000e+00> : vector<8xf32>
    %7 = vector.multi_reduction <add>, %6, %cst_6 [1] : vector<8x64xf32> to vector<8xf32>
    %8 = vector.shape_cast %7 : vector<8xf32> to vector<8x1xf32>
    %cst_7 = arith.constant 6.400000e+01 : f32
    %9 = vector.broadcast %cst_7 : f32 to vector<8x1xf32>
    %10 = arith.divf %8, %9 : vector<8x1xf32>
    %11 = vector.broadcast %10 : vector<8x1xf32> to vector<8x64xf32>
    %12 = arith.subf %6, %11 : vector<8x64xf32>
    %13 = arith.mulf %12, %12 : vector<8x64xf32>
    %cst_8 = arith.constant dense<0.000000e+00> : vector<8xf32>
    %14 = vector.multi_reduction <add>, %13, %cst_8 [1] : vector<8x64xf32> to vector<8xf32>
    %15 = vector.shape_cast %14 : vector<8xf32> to vector<8x1xf32>
    %cst_9 = arith.constant 6.400000e+01 : f32
    %16 = vector.broadcast %cst_9 : f32 to vector<8x1xf32>
    %17 = arith.divf %15, %16 : vector<8x1xf32>
    %18 = vector.broadcast %10 : vector<8x1xf32> to vector<8x64xf32>
    %19 = arith.subf %6, %18 : vector<8x64xf32>
    %cst_10 = arith.constant 9.99999974E-6 : f32
    %20 = vector.broadcast %cst_10 : f32 to vector<8x1xf32>
    %21 = arith.addf %17, %20 : vector<8x1xf32>
    %22 = math.rsqrt %21 : vector<8x1xf32>
    %23 = vector.broadcast %22 : vector<8x1xf32> to vector<8x64xf32>
    %24 = arith.mulf %19, %23 : vector<8x64xf32>
    %c0_11 = arith.constant 0 : index
    %c0_12 = arith.constant 0 : index
    %25 = vector.load %arg4[%c0_11, %c0_12] : memref<8x1xf32, #tpu.memory_space<vmem>>, vector<8x1xf32>
    %26 = vector.broadcast %25 : vector<8x1xf32> to vector<8x64xf32>
    %27 = arith.mulf %24, %26 : vector<8x64xf32>
    %c0_13 = arith.constant 0 : index
    %c0_14 = arith.constant 0 : index
    %28 = vector.load %arg5[%c0_13, %c0_14] : memref<8x1xf32, #tpu.memory_space<vmem>>, vector<8x1xf32>
    %29 = vector.broadcast %28 : vector<8x1xf32> to vector<8x64xf32>
    %30 = arith.addf %27, %29 : vector<8x64xf32>
    %c0_15 = arith.constant 0 : index
    %c0_16 = arith.constant 0 : index
    %c0_17 = arith.constant 0 : index
    %31 = vector.load %arg6[%c0_15, %c0_16, %c0_17] : memref<1x8x64xf32, #tpu.memory_space<vmem>>, vector<1x8x64xf32>
    %32 = vector.shape_cast %31 : vector<1x8x64xf32> to vector<8x64xf32>
    %33 = vector.shape_cast %30 : vector<8x64xf32> to vector<1x8x64xf32>
    tpu.vector_store %arg6[%c0_15, %c0_16, %c0_17], %33 {strides = array<i32>} : memref<1x8x64xf32, #tpu.memory_space<vmem>>, vector<1x8x64xf32>,
    return
  }
  func.func @transform_0(%arg0: i32) -> (i32, i32, i32) {
    %c0_i32 = arith.constant 0 : i32
    %c0_i32_0 = arith.constant 0 : i32
    %c0_i32_1 = arith.constant 0 : i32
    return %arg0, %c0_i32, %c0_i32_0 : i32, i32, i32
  }
  func.func @transform_1(%arg0: i32) -> (i32, i32) {
    %c0_i32 = arith.constant 0 : i32
    %c0_i32_0 = arith.constant 0 : i32
    %c0_i32_1 = arith.constant 0 : i32
    return %c0_i32, %c0_i32_0 : i32, i32
  }
  func.func @transform_2(%arg0: i32) -> (i32, i32) {
    %c0_i32 = arith.constant 0 : i32
    %c0_i32_0 = arith.constant 0 : i32
    %c0_i32_1 = arith.constant 0 : i32
    return %c0_i32, %c0_i32_0 : i32, i32
  }
  func.func @transform_3(%arg0: i32) -> (i32, i32) {
    %c0_i32 = arith.constant 0 : i32
    %c0_i32_0 = arith.constant 0 : i32
    %c0_i32_1 = arith.constant 0 : i32
    return %c0_i32, %c0_i32_0 : i32, i32
  }
  func.func @transform_4(%arg0: i32) -> (i32, i32) {
    %c0_i32 = arith.constant 0 : i32
    %c0_i32_0 = arith.constant 0 : i32
    %c0_i32_1 = arith.constant 0 : i32
    return %c0_i32, %c0_i32_0 : i32, i32
  }
  func.func @transform_5(%arg0: i32) -> (i32, i32, i32) {
    %c0_i32 = arith.constant 0 : i32
    %c0_i32_0 = arith.constant 0 : i32
    %c0_i32_1 = arith.constant 0 : i32
    return %arg0, %c0_i32, %c0_i32_0 : i32, i32, i32
  }
}

module attributes {stable_mosaic.version = 11 : i64} {
  func.func @_conv_in_act_kernel(%arg0: i32, %arg1: memref<1x72x64xf32, #tpu.memory_space<vmem>>, %arg2: memref<8x72xf32, #tpu.memory_space<vmem>>, %arg3: memref<8x1xf32, #tpu.memory_space<vmem>>, %arg4: memref<8x1xf32, #tpu.memory_space<vmem>>, %arg5: memref<8x1xf32, #tpu.memory_space<vmem>>, %arg6: memref<1x8x64xf32, #tpu.memory_space<vmem>>, %arg7: memref<1x8x64xf32, #tpu.memory_space<vmem>>) attributes {dimension_semantics = [#tpu.dimension_semantics<parallel>], iteration_bounds = array<i64: 2>, scalar_prefetch = 0 : i64, scratch_operands = 0 : i64, tpu.core_type = #tpu.core_type<tc>, window_params = [{transform_indices = @transform_0, window_bounds = array<i64: 1, 72, 64>}, {pipeline_mode = #tpu.pipeline_mode<synchronous>, transform_indices = @transform_1, window_bounds = array<i64: 8, 72>}, {pipeline_mode = #tpu.pipeline_mode<synchronous>, transform_indices = @transform_2, window_bounds = array<i64: 8, 1>}, {pipeline_mode = #tpu.pipeline_mode<synchronous>, transform_indices = @transform_3, window_bounds = array<i64: 8, 1>}, {pipeline_mode = #tpu.pipeline_mode<synchronous>, transform_indices = @transform_4, window_bounds = array<i64: 8, 1>}, {transform_indices = @transform_5, window_bounds = array<i64: 1, 8, 64>}, {transform_indices = @transform_6, window_bounds = array<i64: 1, 8, 64>}]} {
    %c0 = arith.constant 0 : index
    %c0_0 = arith.constant 0 : index
    %0 = vector.load %arg2[%c0, %c0_0] : memref<8x72xf32, #tpu.memory_space<vmem>>, vector<8x72xf32>
    %c0_1 = arith.constant 0 : index
    %c0_2 = arith.constant 0 : index
    %c0_3 = arith.constant 0 : index
    %1 = vector.load %arg1[%c0_1, %c0_2, %c0_3] : memref<1x72x64xf32, #tpu.memory_space<vmem>>, vector<1x72x64xf32>
    %2 = vector.shape_cast %1 : vector<1x72x64xf32> to vector<72x64xf32>
    %cst = arith.constant dense<0.000000e+00> : vector<8x64xf32>
    %3 = tpu.matmul %0, %2, %cst {dimension_numbers = #tpu.dot_dimension_numbers<[1], [0], [0], [1], [0, 0, 1, 1], [], []>} : vector<8x72xf32>, vector<72x64xf32>, vector<8x64xf32> -> vector<8x64xf32>
    %c0_4 = arith.constant 0 : index
    %c0_5 = arith.constant 0 : index
    %4 = vector.load %arg3[%c0_4, %c0_5] : memref<8x1xf32, #tpu.memory_space<vmem>>, vector<8x1xf32>
    %5 = vector.broadcast %4 : vector<8x1xf32> to vector<8x64xf32>
    %6 = arith.addf %3, %5 : vector<8x64xf32>
    %cst_6 = arith.constant dense<0.000000e+00> : vector<8xf32>
    %7 = vector.multi_reduction <add>, %6, %cst_6 [1] : vector<8x64xf32> to vector<8xf32>
    %8 = vector.shape_cast %7 : vector<8xf32> to vector<8x1xf32>
    %cst_7 = arith.constant 6.400000e+01 : f32
    %9 = vector.broadcast %cst_7 : f32 to vector<8x1xf32>
    %10 = arith.divf %8, %9 : vector<8x1xf32>
    %11 = vector.broadcast %10 : vector<8x1xf32> to vector<8x64xf32>
    %12 = arith.subf %6, %11 : vector<8x64xf32>
    %13 = arith.mulf %12, %12 : vector<8x64xf32>
    %cst_8 = arith.constant dense<0.000000e+00> : vector<8xf32>
    %14 = vector.multi_reduction <add>, %13, %cst_8 [1] : vector<8x64xf32> to vector<8xf32>
    %15 = vector.shape_cast %14 : vector<8xf32> to vector<8x1xf32>
    %cst_9 = arith.constant 6.400000e+01 : f32
    %16 = vector.broadcast %cst_9 : f32 to vector<8x1xf32>
    %17 = arith.divf %15, %16 : vector<8x1xf32>
    %18 = vector.broadcast %10 : vector<8x1xf32> to vector<8x64xf32>
    %19 = arith.subf %6, %18 : vector<8x64xf32>
    %cst_10 = arith.constant 9.99999974E-6 : f32
    %20 = vector.broadcast %cst_10 : f32 to vector<8x1xf32>
    %21 = arith.addf %17, %20 : vector<8x1xf32>
    %22 = math.rsqrt %21 : vector<8x1xf32>
    %23 = vector.broadcast %22 : vector<8x1xf32> to vector<8x64xf32>
    %24 = arith.mulf %19, %23 : vector<8x64xf32>
    %c0_11 = arith.constant 0 : index
    %c0_12 = arith.constant 0 : index
    %25 = vector.load %arg4[%c0_11, %c0_12] : memref<8x1xf32, #tpu.memory_space<vmem>>, vector<8x1xf32>
    %26 = vector.broadcast %25 : vector<8x1xf32> to vector<8x64xf32>
    %27 = arith.mulf %24, %26 : vector<8x64xf32>
    %c0_13 = arith.constant 0 : index
    %c0_14 = arith.constant 0 : index
    %28 = vector.load %arg5[%c0_13, %c0_14] : memref<8x1xf32, #tpu.memory_space<vmem>>, vector<8x1xf32>
    %29 = vector.broadcast %28 : vector<8x1xf32> to vector<8x64xf32>
    %30 = arith.addf %27, %29 : vector<8x64xf32>
    %c0_15 = arith.constant 0 : index
    %c0_16 = arith.constant 0 : index
    %c0_17 = arith.constant 0 : index
    %31 = vector.load %arg6[%c0_15, %c0_16, %c0_17] : memref<1x8x64xf32, #tpu.memory_space<vmem>>, vector<1x8x64xf32>
    %32 = vector.shape_cast %31 : vector<1x8x64xf32> to vector<8x64xf32>
    %33 = arith.addf %30, %32 : vector<8x64xf32>
    %cst_18 = arith.constant 0.000000e+00 : f32
    %34 = vector.broadcast %cst_18 : f32 to vector<8x64xf32>
    %35 = arith.cmpf oge, %33, %34 : vector<8x64xf32>
    %cst_19 = arith.constant 0.00999999977 : f32
    %36 = vector.broadcast %cst_19 : f32 to vector<8x64xf32>
    %37 = arith.mulf %36, %33 : vector<8x64xf32>
    %38 = arith.select %35, %33, %37 : vector<8x64xi1>, vector<8x64xf32>
    %c0_20 = arith.constant 0 : index
    %c0_21 = arith.constant 0 : index
    %c0_22 = arith.constant 0 : index
    %39 = vector.load %arg7[%c0_20, %c0_21, %c0_22] : memref<1x8x64xf32, #tpu.memory_space<vmem>>, vector<1x8x64xf32>
    %40 = vector.shape_cast %39 : vector<1x8x64xf32> to vector<8x64xf32>
    %41 = vector.shape_cast %38 : vector<8x64xf32> to vector<1x8x64xf32>
    tpu.vector_store %arg7[%c0_20, %c0_21, %c0_22], %41 {strides = array<i32>} : memref<1x8x64xf32, #tpu.memory_space<vmem>>, vector<1x8x64xf32>,
    return
  }
  func.func @transform_0(%arg0: i32) -> (i32, i32, i32) {
    %c0_i32 = arith.constant 0 : i32
    %c0_i32_0 = arith.constant 0 : i32
    %c0_i32_1 = arith.constant 0 : i32
    return %arg0, %c0_i32, %c0_i32_0 : i32, i32, i32
  }
  func.func @transform_1(%arg0: i32) -> (i32, i32) {
    %c0_i32 = arith.constant 0 : i32
    %c0_i32_0 = arith.constant 0 : i32
    %c0_i32_1 = arith.constant 0 : i32
    return %c0_i32, %c0_i32_0 : i32, i32
  }
  func.func @transform_2(%arg0: i32) -> (i32, i32) {
    %c0_i32 = arith.constant 0 : i32
    %c0_i32_0 = arith.constant 0 : i32
    %c0_i32_1 = arith.constant 0 : i32
    return %c0_i32, %c0_i32_0 : i32, i32
  }
  func.func @transform_3(%arg0: i32) -> (i32, i32) {
    %c0_i32 = arith.constant 0 : i32
    %c0_i32_0 = arith.constant 0 : i32
    %c0_i32_1 = arith.constant 0 : i32
    return %c0_i32, %c0_i32_0 : i32, i32
  }
  func.func @transform_4(%arg0: i32) -> (i32, i32) {
    %c0_i32 = arith.constant 0 : i32
    %c0_i32_0 = arith.constant 0 : i32
    %c0_i32_1 = arith.constant 0 : i32
    return %c0_i32, %c0_i32_0 : i32, i32
  }
  func.func @transform_5(%arg0: i32) -> (i32, i32, i32) {
    %c0_i32 = arith.constant 0 : i32
    %c0_i32_0 = arith.constant 0 : i32
    %c0_i32_1 = arith.constant 0 : i32
    return %arg0, %c0_i32, %c0_i32_0 : i32, i32, i32
  }
  func.func @transform_6(%arg0: i32) -> (i32, i32, i32) {
    %c0_i32 = arith.constant 0 : i32
    %c0_i32_0 = arith.constant 0 : i32
    %c0_i32_1 = arith.constant 0 : i32
    return %arg0, %c0_i32, %c0_i32_0 : i32, i32, i32
  }
}

module attributes {stable_mosaic.version = 11 : i64} {
  func.func @_conv_in_act_kernel(%arg0: i32, %arg1: memref<1x72x16xf32, #tpu.memory_space<vmem>>, %arg2: memref<16x72xf32, #tpu.memory_space<vmem>>, %arg3: memref<16x1xf32, #tpu.memory_space<vmem>>, %arg4: memref<16x1xf32, #tpu.memory_space<vmem>>, %arg5: memref<16x1xf32, #tpu.memory_space<vmem>>, %arg6: memref<1x16x16xf32, #tpu.memory_space<vmem>>) attributes {dimension_semantics = [#tpu.dimension_semantics<parallel>], iteration_bounds = array<i64: 2>, scalar_prefetch = 0 : i64, scratch_operands = 0 : i64, tpu.core_type = #tpu.core_type<tc>, window_params = [{transform_indices = @transform_0, window_bounds = array<i64: 1, 72, 16>}, {pipeline_mode = #tpu.pipeline_mode<synchronous>, transform_indices = @transform_1, window_bounds = array<i64: 16, 72>}, {pipeline_mode = #tpu.pipeline_mode<synchronous>, transform_indices = @transform_2, window_bounds = array<i64: 16, 1>}, {pipeline_mode = #tpu.pipeline_mode<synchronous>, transform_indices = @transform_3, window_bounds = array<i64: 16, 1>}, {pipeline_mode = #tpu.pipeline_mode<synchronous>, transform_indices = @transform_4, window_bounds = array<i64: 16, 1>}, {transform_indices = @transform_5, window_bounds = array<i64: 1, 16, 16>}]} {
    %c0 = arith.constant 0 : index
    %c0_0 = arith.constant 0 : index
    %0 = vector.load %arg2[%c0, %c0_0] : memref<16x72xf32, #tpu.memory_space<vmem>>, vector<16x72xf32>
    %c0_1 = arith.constant 0 : index
    %c0_2 = arith.constant 0 : index
    %c0_3 = arith.constant 0 : index
    %1 = vector.load %arg1[%c0_1, %c0_2, %c0_3] : memref<1x72x16xf32, #tpu.memory_space<vmem>>, vector<1x72x16xf32>
    %2 = vector.shape_cast %1 : vector<1x72x16xf32> to vector<72x16xf32>
    %cst = arith.constant dense<0.000000e+00> : vector<16x16xf32>
    %3 = tpu.matmul %0, %2, %cst {dimension_numbers = #tpu.dot_dimension_numbers<[1], [0], [0], [1], [0, 0, 1, 1], [], []>} : vector<16x72xf32>, vector<72x16xf32>, vector<16x16xf32> -> vector<16x16xf32>
    %c0_4 = arith.constant 0 : index
    %c0_5 = arith.constant 0 : index
    %4 = vector.load %arg3[%c0_4, %c0_5] : memref<16x1xf32, #tpu.memory_space<vmem>>, vector<16x1xf32>
    %5 = vector.broadcast %4 : vector<16x1xf32> to vector<16x16xf32>
    %6 = arith.addf %3, %5 : vector<16x16xf32>
    %cst_6 = arith.constant dense<0.000000e+00> : vector<16xf32>
    %7 = vector.multi_reduction <add>, %6, %cst_6 [1] : vector<16x16xf32> to vector<16xf32>
    %8 = vector.shape_cast %7 : vector<16xf32> to vector<16x1xf32>
    %cst_7 = arith.constant 1.600000e+01 : f32
    %9 = vector.broadcast %cst_7 : f32 to vector<16x1xf32>
    %10 = arith.divf %8, %9 : vector<16x1xf32>
    %11 = vector.broadcast %10 : vector<16x1xf32> to vector<16x16xf32>
    %12 = arith.subf %6, %11 : vector<16x16xf32>
    %13 = arith.mulf %12, %12 : vector<16x16xf32>
    %cst_8 = arith.constant dense<0.000000e+00> : vector<16xf32>
    %14 = vector.multi_reduction <add>, %13, %cst_8 [1] : vector<16x16xf32> to vector<16xf32>
    %15 = vector.shape_cast %14 : vector<16xf32> to vector<16x1xf32>
    %cst_9 = arith.constant 1.600000e+01 : f32
    %16 = vector.broadcast %cst_9 : f32 to vector<16x1xf32>
    %17 = arith.divf %15, %16 : vector<16x1xf32>
    %18 = vector.broadcast %10 : vector<16x1xf32> to vector<16x16xf32>
    %19 = arith.subf %6, %18 : vector<16x16xf32>
    %cst_10 = arith.constant 9.99999974E-6 : f32
    %20 = vector.broadcast %cst_10 : f32 to vector<16x1xf32>
    %21 = arith.addf %17, %20 : vector<16x1xf32>
    %22 = math.rsqrt %21 : vector<16x1xf32>
    %23 = vector.broadcast %22 : vector<16x1xf32> to vector<16x16xf32>
    %24 = arith.mulf %19, %23 : vector<16x16xf32>
    %c0_11 = arith.constant 0 : index
    %c0_12 = arith.constant 0 : index
    %25 = vector.load %arg4[%c0_11, %c0_12] : memref<16x1xf32, #tpu.memory_space<vmem>>, vector<16x1xf32>
    %26 = vector.broadcast %25 : vector<16x1xf32> to vector<16x16xf32>
    %27 = arith.mulf %24, %26 : vector<16x16xf32>
    %c0_13 = arith.constant 0 : index
    %c0_14 = arith.constant 0 : index
    %28 = vector.load %arg5[%c0_13, %c0_14] : memref<16x1xf32, #tpu.memory_space<vmem>>, vector<16x1xf32>
    %29 = vector.broadcast %28 : vector<16x1xf32> to vector<16x16xf32>
    %30 = arith.addf %27, %29 : vector<16x16xf32>
    %cst_15 = arith.constant 0.000000e+00 : f32
    %31 = vector.broadcast %cst_15 : f32 to vector<16x16xf32>
    %32 = arith.cmpf oge, %30, %31 : vector<16x16xf32>
    %cst_16 = arith.constant 0.00999999977 : f32
    %33 = vector.broadcast %cst_16 : f32 to vector<16x16xf32>
    %34 = arith.mulf %33, %30 : vector<16x16xf32>
    %35 = arith.select %32, %30, %34 : vector<16x16xi1>, vector<16x16xf32>
    %c0_17 = arith.constant 0 : index
    %c0_18 = arith.constant 0 : index
    %c0_19 = arith.constant 0 : index
    %36 = vector.load %arg6[%c0_17, %c0_18, %c0_19] : memref<1x16x16xf32, #tpu.memory_space<vmem>>, vector<1x16x16xf32>
    %37 = vector.shape_cast %36 : vector<1x16x16xf32> to vector<16x16xf32>
    %38 = vector.shape_cast %35 : vector<16x16xf32> to vector<1x16x16xf32>
    tpu.vector_store %arg6[%c0_17, %c0_18, %c0_19], %38 {strides = array<i32>} : memref<1x16x16xf32, #tpu.memory_space<vmem>>, vector<1x16x16xf32>,
    return
  }
  func.func @transform_0(%arg0: i32) -> (i32, i32, i32) {
    %c0_i32 = arith.constant 0 : i32
    %c0_i32_0 = arith.constant 0 : i32
    %c0_i32_1 = arith.constant 0 : i32
    return %arg0, %c0_i32, %c0_i32_0 : i32, i32, i32
  }
  func.func @transform_1(%arg0: i32) -> (i32, i32) {
    %c0_i32 = arith.constant 0 : i32
    %c0_i32_0 = arith.constant 0 : i32
    %c0_i32_1 = arith.constant 0 : i32
    return %c0_i32, %c0_i32_0 : i32, i32
  }
  func.func @transform_2(%arg0: i32) -> (i32, i32) {
    %c0_i32 = arith.constant 0 : i32
    %c0_i32_0 = arith.constant 0 : i32
    %c0_i32_1 = arith.constant 0 : i32
    return %c0_i32, %c0_i32_0 : i32, i32
  }
  func.func @transform_3(%arg0: i32) -> (i32, i32) {
    %c0_i32 = arith.constant 0 : i32
    %c0_i32_0 = arith.constant 0 : i32
    %c0_i32_1 = arith.constant 0 : i32
    return %c0_i32, %c0_i32_0 : i32, i32
  }
  func.func @transform_4(%arg0: i32) -> (i32, i32) {
    %c0_i32 = arith.constant 0 : i32
    %c0_i32_0 = arith.constant 0 : i32
    %c0_i32_1 = arith.constant 0 : i32
    return %c0_i32, %c0_i32_0 : i32, i32
  }
  func.func @transform_5(%arg0: i32) -> (i32, i32, i32) {
    %c0_i32 = arith.constant 0 : i32
    %c0_i32_0 = arith.constant 0 : i32
    %c0_i32_1 = arith.constant 0 : i32
    return %arg0, %c0_i32, %c0_i32_0 : i32, i32, i32
  }
}

module attributes {stable_mosaic.version = 11 : i64} {
  func.func @_conv_in_act_kernel(%arg0: i32, %arg1: memref<1x8x16xf32, #tpu.memory_space<vmem>>, %arg2: memref<16x8xf32, #tpu.memory_space<vmem>>, %arg3: memref<16x1xf32, #tpu.memory_space<vmem>>, %arg4: memref<16x1xf32, #tpu.memory_space<vmem>>, %arg5: memref<16x1xf32, #tpu.memory_space<vmem>>, %arg6: memref<1x16x16xf32, #tpu.memory_space<vmem>>) attributes {dimension_semantics = [#tpu.dimension_semantics<parallel>], iteration_bounds = array<i64: 2>, scalar_prefetch = 0 : i64, scratch_operands = 0 : i64, tpu.core_type = #tpu.core_type<tc>, window_params = [{transform_indices = @transform_0, window_bounds = array<i64: 1, 8, 16>}, {pipeline_mode = #tpu.pipeline_mode<synchronous>, transform_indices = @transform_1, window_bounds = array<i64: 16, 8>}, {pipeline_mode = #tpu.pipeline_mode<synchronous>, transform_indices = @transform_2, window_bounds = array<i64: 16, 1>}, {pipeline_mode = #tpu.pipeline_mode<synchronous>, transform_indices = @transform_3, window_bounds = array<i64: 16, 1>}, {pipeline_mode = #tpu.pipeline_mode<synchronous>, transform_indices = @transform_4, window_bounds = array<i64: 16, 1>}, {transform_indices = @transform_5, window_bounds = array<i64: 1, 16, 16>}]} {
    %c0 = arith.constant 0 : index
    %c0_0 = arith.constant 0 : index
    %0 = vector.load %arg2[%c0, %c0_0] : memref<16x8xf32, #tpu.memory_space<vmem>>, vector<16x8xf32>
    %c0_1 = arith.constant 0 : index
    %c0_2 = arith.constant 0 : index
    %c0_3 = arith.constant 0 : index
    %1 = vector.load %arg1[%c0_1, %c0_2, %c0_3] : memref<1x8x16xf32, #tpu.memory_space<vmem>>, vector<1x8x16xf32>
    %2 = vector.shape_cast %1 : vector<1x8x16xf32> to vector<8x16xf32>
    %cst = arith.constant dense<0.000000e+00> : vector<16x16xf32>
    %3 = tpu.matmul %0, %2, %cst {dimension_numbers = #tpu.dot_dimension_numbers<[1], [0], [0], [1], [0, 0, 1, 1], [], []>} : vector<16x8xf32>, vector<8x16xf32>, vector<16x16xf32> -> vector<16x16xf32>
    %c0_4 = arith.constant 0 : index
    %c0_5 = arith.constant 0 : index
    %4 = vector.load %arg3[%c0_4, %c0_5] : memref<16x1xf32, #tpu.memory_space<vmem>>, vector<16x1xf32>
    %5 = vector.broadcast %4 : vector<16x1xf32> to vector<16x16xf32>
    %6 = arith.addf %3, %5 : vector<16x16xf32>
    %cst_6 = arith.constant dense<0.000000e+00> : vector<16xf32>
    %7 = vector.multi_reduction <add>, %6, %cst_6 [1] : vector<16x16xf32> to vector<16xf32>
    %8 = vector.shape_cast %7 : vector<16xf32> to vector<16x1xf32>
    %cst_7 = arith.constant 1.600000e+01 : f32
    %9 = vector.broadcast %cst_7 : f32 to vector<16x1xf32>
    %10 = arith.divf %8, %9 : vector<16x1xf32>
    %11 = vector.broadcast %10 : vector<16x1xf32> to vector<16x16xf32>
    %12 = arith.subf %6, %11 : vector<16x16xf32>
    %13 = arith.mulf %12, %12 : vector<16x16xf32>
    %cst_8 = arith.constant dense<0.000000e+00> : vector<16xf32>
    %14 = vector.multi_reduction <add>, %13, %cst_8 [1] : vector<16x16xf32> to vector<16xf32>
    %15 = vector.shape_cast %14 : vector<16xf32> to vector<16x1xf32>
    %cst_9 = arith.constant 1.600000e+01 : f32
    %16 = vector.broadcast %cst_9 : f32 to vector<16x1xf32>
    %17 = arith.divf %15, %16 : vector<16x1xf32>
    %18 = vector.broadcast %10 : vector<16x1xf32> to vector<16x16xf32>
    %19 = arith.subf %6, %18 : vector<16x16xf32>
    %cst_10 = arith.constant 9.99999974E-6 : f32
    %20 = vector.broadcast %cst_10 : f32 to vector<16x1xf32>
    %21 = arith.addf %17, %20 : vector<16x1xf32>
    %22 = math.rsqrt %21 : vector<16x1xf32>
    %23 = vector.broadcast %22 : vector<16x1xf32> to vector<16x16xf32>
    %24 = arith.mulf %19, %23 : vector<16x16xf32>
    %c0_11 = arith.constant 0 : index
    %c0_12 = arith.constant 0 : index
    %25 = vector.load %arg4[%c0_11, %c0_12] : memref<16x1xf32, #tpu.memory_space<vmem>>, vector<16x1xf32>
    %26 = vector.broadcast %25 : vector<16x1xf32> to vector<16x16xf32>
    %27 = arith.mulf %24, %26 : vector<16x16xf32>
    %c0_13 = arith.constant 0 : index
    %c0_14 = arith.constant 0 : index
    %28 = vector.load %arg5[%c0_13, %c0_14] : memref<16x1xf32, #tpu.memory_space<vmem>>, vector<16x1xf32>
    %29 = vector.broadcast %28 : vector<16x1xf32> to vector<16x16xf32>
    %30 = arith.addf %27, %29 : vector<16x16xf32>
    %c0_15 = arith.constant 0 : index
    %c0_16 = arith.constant 0 : index
    %c0_17 = arith.constant 0 : index
    %31 = vector.load %arg6[%c0_15, %c0_16, %c0_17] : memref<1x16x16xf32, #tpu.memory_space<vmem>>, vector<1x16x16xf32>
    %32 = vector.shape_cast %31 : vector<1x16x16xf32> to vector<16x16xf32>
    %33 = vector.shape_cast %30 : vector<16x16xf32> to vector<1x16x16xf32>
    tpu.vector_store %arg6[%c0_15, %c0_16, %c0_17], %33 {strides = array<i32>} : memref<1x16x16xf32, #tpu.memory_space<vmem>>, vector<1x16x16xf32>,
    return
  }
  func.func @transform_0(%arg0: i32) -> (i32, i32, i32) {
    %c0_i32 = arith.constant 0 : i32
    %c0_i32_0 = arith.constant 0 : i32
    %c0_i32_1 = arith.constant 0 : i32
    return %arg0, %c0_i32, %c0_i32_0 : i32, i32, i32
  }
  func.func @transform_1(%arg0: i32) -> (i32, i32) {
    %c0_i32 = arith.constant 0 : i32
    %c0_i32_0 = arith.constant 0 : i32
    %c0_i32_1 = arith.constant 0 : i32
    return %c0_i32, %c0_i32_0 : i32, i32
  }
  func.func @transform_2(%arg0: i32) -> (i32, i32) {
    %c0_i32 = arith.constant 0 : i32
    %c0_i32_0 = arith.constant 0 : i32
    %c0_i32_1 = arith.constant 0 : i32
    return %c0_i32, %c0_i32_0 : i32, i32
  }
  func.func @transform_3(%arg0: i32) -> (i32, i32) {
    %c0_i32 = arith.constant 0 : i32
    %c0_i32_0 = arith.constant 0 : i32
    %c0_i32_1 = arith.constant 0 : i32
    return %c0_i32, %c0_i32_0 : i32, i32
  }
  func.func @transform_4(%arg0: i32) -> (i32, i32) {
    %c0_i32 = arith.constant 0 : i32
    %c0_i32_0 = arith.constant 0 : i32
    %c0_i32_1 = arith.constant 0 : i32
    return %c0_i32, %c0_i32_0 : i32, i32
  }
  func.func @transform_5(%arg0: i32) -> (i32, i32, i32) {
    %c0_i32 = arith.constant 0 : i32
    %c0_i32_0 = arith.constant 0 : i32
    %c0_i32_1 = arith.constant 0 : i32
    return %arg0, %c0_i32, %c0_i32_0 : i32, i32, i32
  }
}

module attributes {stable_mosaic.version = 11 : i64} {
  func.func @_mamba_fused_kernel(%arg0: i32, %arg1: memref<1x16x16xf32, #tpu.memory_space<vmem>>, %arg2: memref<1x16xf32, #tpu.memory_space<vmem>>, %arg3: memref<1x16xf32, #tpu.memory_space<vmem>>, %arg4: memref<16x64xf32, #tpu.memory_space<vmem>>, %arg5: memref<4x32xf32, #tpu.memory_space<vmem>>, %arg6: memref<1x32xf32, #tpu.memory_space<vmem>>, %arg7: memref<32x33xf32, #tpu.memory_space<vmem>>, %arg8: memref<1x32xf32, #tpu.memory_space<vmem>>, %arg9: memref<1x32xf32, #tpu.memory_space<vmem>>, %arg10: memref<16x32xf32, #tpu.memory_space<vmem>>, %arg11: memref<1x32xf32, #tpu.memory_space<vmem>>, %arg12: memref<32x16xf32, #tpu.memory_space<vmem>>, %arg13: memref<1x16x16xf32, #tpu.memory_space<vmem>>, %arg14: memref<19x32xf32, #tpu.memory_space<vmem>>) attributes {dimension_semantics = [#tpu.dimension_semantics<parallel>], iteration_bounds = array<i64: 2>, scalar_prefetch = 0 : i64, scratch_operands = 1 : i64, tpu.core_type = #tpu.core_type<tc>, window_params = [{transform_indices = @transform_0, window_bounds = array<i64: 1, 16, 16>}, {pipeline_mode = #tpu.pipeline_mode<synchronous>, transform_indices = @transform_1, window_bounds = array<i64: 1, 16>}, {pipeline_mode = #tpu.pipeline_mode<synchronous>, transform_indices = @transform_2, window_bounds = array<i64: 1, 16>}, {pipeline_mode = #tpu.pipeline_mode<synchronous>, transform_indices = @transform_3, window_bounds = array<i64: 16, 64>}, {pipeline_mode = #tpu.pipeline_mode<synchronous>, transform_indices = @transform_4, window_bounds = array<i64: 4, 32>}, {pipeline_mode = #tpu.pipeline_mode<synchronous>, transform_indices = @transform_5, window_bounds = array<i64: 1, 32>}, {pipeline_mode = #tpu.pipeline_mode<synchronous>, transform_indices = @transform_6, window_bounds = array<i64: 32, 33>}, {pipeline_mode = #tpu.pipeline_mode<synchronous>, transform_indices = @transform_7, window_bounds = array<i64: 1, 32>}, {pipeline_mode = #tpu.pipeline_mode<synchronous>, transform_indices = @transform_8, window_bounds = array<i64: 1, 32>}, {pipeline_mode = #tpu.pipeline_mode<synchronous>, transform_indices = @transform_9, window_bounds = array<i64: 16, 32>}, {pipeline_mode = #tpu.pipeline_mode<synchronous>, transform_indices = @transform_10, window_bounds = array<i64: 1, 32>}, {pipeline_mode = #tpu.pipeline_mode<synchronous>, transform_indices = @transform_11, window_bounds = array<i64: 32, 16>}, {transform_indices = @transform_12, window_bounds = array<i64: 1, 16, 16>}]} {
    %c0 = arith.constant 0 : index
    %c0_0 = arith.constant 0 : index
    %c0_1 = arith.constant 0 : index
    %0 = vector.load %arg1[%c0, %c0_0, %c0_1] : memref<1x16x16xf32, #tpu.memory_space<vmem>>, vector<1x16x16xf32>
    %1 = vector.shape_cast %0 : vector<1x16x16xf32> to vector<16x16xf32>
    %cst = arith.constant dense<0.000000e+00> : vector<16xf32>
    %2 = vector.multi_reduction <add>, %1, %cst [1] : vector<16x16xf32> to vector<16xf32>
    %3 = vector.shape_cast %2 : vector<16xf32> to vector<16x1xf32>
    %cst_2 = arith.constant 1.600000e+01 : f32
    %4 = vector.broadcast %cst_2 : f32 to vector<16x1xf32>
    %5 = arith.divf %3, %4 : vector<16x1xf32>
    %6 = vector.broadcast %5 : vector<16x1xf32> to vector<16x16xf32>
    %7 = arith.subf %1, %6 : vector<16x16xf32>
    %8 = arith.mulf %7, %7 : vector<16x16xf32>
    %cst_3 = arith.constant dense<0.000000e+00> : vector<16xf32>
    %9 = vector.multi_reduction <add>, %8, %cst_3 [1] : vector<16x16xf32> to vector<16xf32>
    %10 = vector.shape_cast %9 : vector<16xf32> to vector<16x1xf32>
    %cst_4 = arith.constant 1.600000e+01 : f32
    %11 = vector.broadcast %cst_4 : f32 to vector<16x1xf32>
    %12 = arith.divf %10, %11 : vector<16x1xf32>
    %13 = vector.broadcast %5 : vector<16x1xf32> to vector<16x16xf32>
    %14 = arith.subf %1, %13 : vector<16x16xf32>
    %cst_5 = arith.constant 9.99999974E-6 : f32
    %15 = vector.broadcast %cst_5 : f32 to vector<16x1xf32>
    %16 = arith.addf %12, %15 : vector<16x1xf32>
    %17 = math.rsqrt %16 : vector<16x1xf32>
    %18 = vector.broadcast %17 : vector<16x1xf32> to vector<16x16xf32>
    %19 = arith.mulf %14, %18 : vector<16x16xf32>
    %c0_6 = arith.constant 0 : index
    %c0_7 = arith.constant 0 : index
    %20 = vector.load %arg2[%c0_6, %c0_7] : memref<1x16xf32, #tpu.memory_space<vmem>>, vector<1x16xf32>
    %21 = vector.broadcast %20 : vector<1x16xf32> to vector<16x16xf32>
    %22 = arith.mulf %19, %21 : vector<16x16xf32>
    %c0_8 = arith.constant 0 : index
    %c0_9 = arith.constant 0 : index
    %23 = vector.load %arg3[%c0_8, %c0_9] : memref<1x16xf32, #tpu.memory_space<vmem>>, vector<1x16xf32>
    %24 = vector.broadcast %23 : vector<1x16xf32> to vector<16x16xf32>
    %25 = arith.addf %22, %24 : vector<16x16xf32>
    %c0_10 = arith.constant 0 : index
    %c0_11 = arith.constant 0 : index
    %26 = vector.load %arg4[%c0_10, %c0_11] : memref<16x64xf32, #tpu.memory_space<vmem>>, vector<16x64xf32>
    %cst_12 = arith.constant dense<0.000000e+00> : vector<16x64xf32>
    %27 = tpu.matmul %25, %26, %cst_12 {dimension_numbers = #tpu.dot_dimension_numbers<[1], [0], [0], [1], [0, 0, 1, 1], [], []>} : vector<16x16xf32>, vector<16x64xf32>, vector<16x64xf32> -> vector<16x64xf32>
    %28 = vector.extract_strided_slice %27 {offsets = [0, 0], sizes = [16, 32], strides = [1, 1]} : vector<16x64xf32> to vector<16x32xf32>
    %29 = vector.extract_strided_slice %27 {offsets = [0, 32], sizes = [16, 32], strides = [1, 1]} : vector<16x64xf32> to vector<16x32xf32>
    %cst_13 = arith.constant 0.000000e+00 : f32
    %30 = vector.broadcast %cst_13 : f32 to vector<3x32xf32>
    %c0_14 = arith.constant 0 : index
    %c0_15 = arith.constant 0 : index
    %31 = vector.load %arg14[%c0_14, %c0_15] : memref<19x32xf32, #tpu.memory_space<vmem>>, vector<3x32xf32>
    tpu.vector_store %arg14[%c0_14, %c0_15], %30 {strides = array<i32>} : memref<19x32xf32, #tpu.memory_space<vmem>>, vector<3x32xf32>,
    %c3 = arith.constant 3 : index
    %c0_16 = arith.constant 0 : index
    %32 = vector.load %arg14[%c3, %c0_16] : memref<19x32xf32, #tpu.memory_space<vmem>>, vector<16x32xf32>
    tpu.vector_store %arg14[%c3, %c0_16], %28 {strides = array<i32>} : memref<19x32xf32, #tpu.memory_space<vmem>>, vector<16x32xf32>,
    %cst_17 = arith.constant 0.000000e+00 : f32
    %33 = vector.broadcast %cst_17 : f32 to vector<16x32xf32>
    %c0_18 = arith.constant 0 : index
    %c0_19 = arith.constant 0 : index
    %34 = vector.load %arg6[%c0_18, %c0_19] : memref<1x32xf32, #tpu.memory_space<vmem>>, vector<1x32xf32>
    %35 = vector.broadcast %34 : vector<1x32xf32> to vector<16x32xf32>
    %36 = arith.addf %33, %35 : vector<16x32xf32>
    %c0_20 = arith.constant 0 : index
    %c0_21 = arith.constant 0 : index
    %37 = vector.load %arg14[%c0_20, %c0_21] : memref<19x32xf32, #tpu.memory_space<vmem>>, vector<16x32xf32>
    %c0_22 = arith.constant 0 : index
    %c0_23 = arith.constant 0 : index
    %38 = vector.load %arg5[%c0_22, %c0_23] : memref<4x32xf32, #tpu.memory_space<vmem>>, vector<1x32xf32>
    %39 = vector.broadcast %38 : vector<1x32xf32> to vector<16x32xf32>
    %40 = arith.mulf %37, %39 : vector<16x32xf32>
    %41 = arith.addf %36, %40 : vector<16x32xf32>
    %c1 = arith.constant 1 : index
    %c0_24 = arith.constant 0 : index
    %42 = vector.load %arg14[%c1, %c0_24] : memref<19x32xf32, #tpu.memory_space<vmem>>, vector<16x32xf32>
    %c1_25 = arith.constant 1 : index
    %c0_26 = arith.constant 0 : index
    %43 = vector.load %arg5[%c1_25, %c0_26] : memref<4x32xf32, #tpu.memory_space<vmem>>, vector<1x32xf32>
    %44 = vector.broadcast %43 : vector<1x32xf32> to vector<16x32xf32>
    %45 = arith.mulf %42, %44 : vector<16x32xf32>
    %46 = arith.addf %41, %45 : vector<16x32xf32>
    %c2 = arith.constant 2 : index
    %c0_27 = arith.constant 0 : index
    %47 = vector.load %arg14[%c2, %c0_27] : memref<19x32xf32, #tpu.memory_space<vmem>>, vector<16x32xf32>
    %c2_28 = arith.constant 2 : index
    %c0_29 = arith.constant 0 : index
    %48 = vector.load %arg5[%c2_28, %c0_29] : memref<4x32xf32, #tpu.memory_space<vmem>>, vector<1x32xf32>
    %49 = vector.broadcast %48 : vector<1x32xf32> to vector<16x32xf32>
    %50 = arith.mulf %47, %49 : vector<16x32xf32>
    %51 = arith.addf %46, %50 : vector<16x32xf32>
    %c3_30 = arith.constant 3 : index
    %c0_31 = arith.constant 0 : index
    %52 = vector.load %arg14[%c3_30, %c0_31] : memref<19x32xf32, #tpu.memory_space<vmem>>, vector<16x32xf32>
    %c3_32 = arith.constant 3 : index
    %c0_33 = arith.constant 0 : index
    %53 = vector.load %arg5[%c3_32, %c0_33] : memref<4x32xf32, #tpu.memory_space<vmem>>, vector<1x32xf32>
    %54 = vector.broadcast %53 : vector<1x32xf32> to vector<16x32xf32>
    %55 = arith.mulf %52, %54 : vector<16x32xf32>
    %56 = arith.addf %51, %55 : vector<16x32xf32>
    %57 = arith.negf %56 : vector<16x32xf32>
    %58 = math.exp %57 : vector<16x32xf32>
    %cst_34 = arith.constant 1.000000e+00 : f32
    %59 = vector.broadcast %cst_34 : f32 to vector<16x32xf32>
    %60 = arith.addf %59, %58 : vector<16x32xf32>
    %61 = arith.divf %59, %60 : vector<16x32xf32>
    %62 = arith.mulf %56, %61 : vector<16x32xf32>
    %c0_35 = arith.constant 0 : index
    %c0_36 = arith.constant 0 : index
    %63 = vector.load %arg7[%c0_35, %c0_36] : memref<32x33xf32, #tpu.memory_space<vmem>>, vector<32x33xf32>
    %cst_37 = arith.constant dense<0.000000e+00> : vector<16x33xf32>
    %64 = tpu.matmul %62, %63, %cst_37 {dimension_numbers = #tpu.dot_dimension_numbers<[1], [0], [0], [1], [0, 0, 1, 1], [], []>} : vector<16x32xf32>, vector<32x33xf32>, vector<16x33xf32> -> vector<16x33xf32>
    %65 = vector.extract_strided_slice %64 {offsets = [0, 0], sizes = [16, 1], strides = [1, 1]} : vector<16x33xf32> to vector<16x1xf32>
    %66 = vector.extract_strided_slice %64 {offsets = [0, 1], sizes = [16, 32], strides = [1, 1]} : vector<16x33xf32> to vector<16x32xf32>
    %67 = tpu.transpose %66, [1, 0] : vector<16x32xf32> -> vector<32x16xf32>
    %68 = vector.extract_strided_slice %67 {offsets = [0, 0], sizes = [16, 16], strides = [1, 1]} : vector<32x16xf32> to vector<16x16xf32>
    %69 = vector.extract_strided_slice %67 {offsets = [16, 0], sizes = [16, 16], strides = [1, 1]} : vector<32x16xf32> to vector<16x16xf32>
    %c0_38 = arith.constant 0 : index
    %c0_39 = arith.constant 0 : index
    %70 = vector.load %arg8[%c0_38, %c0_39] : memref<1x32xf32, #tpu.memory_space<vmem>>, vector<1x32xf32>
    %71 = vector.broadcast %65 : vector<16x1xf32> to vector<16x32xf32>
    %72 = vector.broadcast %70 : vector<1x32xf32> to vector<16x32xf32>
    %73 = arith.mulf %71, %72 : vector<16x32xf32>
    %c0_40 = arith.constant 0 : index
    %c0_41 = arith.constant 0 : index
    %74 = vector.load %arg9[%c0_40, %c0_41] : memref<1x32xf32, #tpu.memory_space<vmem>>, vector<1x32xf32>
    %75 = vector.broadcast %74 : vector<1x32xf32> to vector<16x32xf32>
    %76 = arith.addf %73, %75 : vector<16x32xf32>
    %cst_42 = arith.constant 2.000000e+01 : f32
    %77 = vector.broadcast %cst_42 : f32 to vector<16x32xf32>
    %78 = arith.cmpf ogt, %76, %77 : vector<16x32xf32>
    %cst_43 = arith.constant 2.000000e+01 : f32
    %79 = vector.broadcast %cst_43 : f32 to vector<16x32xf32>
    %80 = arith.minimumf %76, %79 : vector<16x32xf32>
    %81 = math.exp %80 : vector<16x32xf32>
    %cst_44 = arith.constant 1.000000e+00 : f32
    %82 = vector.broadcast %cst_44 : f32 to vector<16x32xf32>
    %83 = arith.addf %82, %81 : vector<16x32xf32>
    %84 = math.log %83 : vector<16x32xf32>
    %85 = arith.select %78, %76, %84 : vector<16x32xi1>, vector<16x32xf32>
    %c0_45 = arith.constant 0 : index
    %c0_46 = arith.constant 0 : index
    %86 = vector.load %arg10[%c0_45, %c0_46] : memref<16x32xf32, #tpu.memory_space<vmem>>, vector<16x32xf32>
    %87 = math.exp %86 : vector<16x32xf32>
    %cst_47 = arith.constant 0.000000e+00 : f32
    %88 = vector.broadcast %cst_47 : f32 to vector<16x32xf32>
    %89 = arith.subf %88, %87 : vector<16x32xf32>
    %90 = arith.mulf %85, %62 : vector<16x32xf32>
    %91 = tpu.iota {dimensions = array<i32: 1>} : vector<1x16xi32>
    %92 = tpu.iota {dimensions = array<i32: 0>} : vector<16x1xi32>
    %cst_48 = arith.constant 0.000000e+00 : f32
    %93 = vector.broadcast %cst_48 : f32 to vector<16x32xf32>
    %cst_49 = arith.constant 0.000000e+00 : f32
    %94 = vector.broadcast %cst_49 : f32 to vector<16x32xf32>
    %c0_i32 = arith.constant 0 : i32
    %c16_i32 = arith.constant 16 : i32
    %95 = arith.addi %c0_i32, %c16_i32 : i32
    %c1_i32 = arith.constant 1 : i32
    %96:2 = scf.for %arg15 = %c0_i32 to %95 step %c1_i32 iter_args(%arg16 = %93, %arg17 = %94) -> (vector<16x32xf32>, vector<16x32xf32>)  : i32 {
      %113 = vector.broadcast %arg15 : i32 to vector<16x1xi32>
      %114 = arith.cmpi eq, %92, %113 : vector<16x1xi32>
      %115 = arith.extui %114 : vector<16x1xi1> to vector<16x1xi32>
      %116 = arith.sitofp %115 : vector<16x1xi32> to vector<16x1xf32>
      %117 = vector.broadcast %arg15 : i32 to vector<1x16xi32>
      %118 = arith.cmpi eq, %91, %117 : vector<1x16xi32>
      %119 = arith.extui %118 : vector<1x16xi1> to vector<1x16xi32>
      %120 = arith.sitofp %119 : vector<1x16xi32> to vector<1x16xf32>
      %121 = vector.broadcast %116 : vector<16x1xf32> to vector<16x32xf32>
      %122 = arith.mulf %85, %121 : vector<16x32xf32>
      %cst_60 = arith.constant dense<0.000000e+00> : vector<32xf32>
      %123 = vector.multi_reduction <add>, %122, %cst_60 [0] : vector<16x32xf32> to vector<32xf32>
      %124 = vector.shape_cast %123 : vector<32xf32> to vector<1x32xf32>
      %125 = vector.broadcast %116 : vector<16x1xf32> to vector<16x32xf32>
      %126 = arith.mulf %90, %125 : vector<16x32xf32>
      %cst_61 = arith.constant dense<0.000000e+00> : vector<32xf32>
      %127 = vector.multi_reduction <add>, %126, %cst_61 [0] : vector<16x32xf32> to vector<32xf32>
      %128 = vector.shape_cast %127 : vector<32xf32> to vector<1x32xf32>
      %129 = vector.broadcast %120 : vector<1x16xf32> to vector<16x16xf32>
      %130 = arith.mulf %68, %129 : vector<16x16xf32>
      %cst_62 = arith.constant dense<0.000000e+00> : vector<16xf32>
      %131 = vector.multi_reduction <add>, %130, %cst_62 [1] : vector<16x16xf32> to vector<16xf32>
      %132 = vector.shape_cast %131 : vector<16xf32> to vector<16x1xf32>
      %133 = vector.broadcast %120 : vector<1x16xf32> to vector<16x16xf32>
      %134 = arith.mulf %69, %133 : vector<16x16xf32>
      %cst_63 = arith.constant dense<0.000000e+00> : vector<16xf32>
      %135 = vector.multi_reduction <add>, %134, %cst_63 [1] : vector<16x16xf32> to vector<16xf32>
      %136 = vector.shape_cast %135 : vector<16xf32> to vector<16x1xf32>
      %137 = vector.broadcast %124 : vector<1x32xf32> to vector<16x32xf32>
      %138 = arith.mulf %137, %89 : vector<16x32xf32>
      %139 = math.exp %138 : vector<16x32xf32>
      %140 = arith.mulf %139, %arg16 : vector<16x32xf32>
      %141 = vector.broadcast %132 : vector<16x1xf32> to vector<16x32xf32>
      %142 = vector.broadcast %128 : vector<1x32xf32> to vector<16x32xf32>
      %143 = arith.mulf %141, %142 : vector<16x32xf32>
      %144 = arith.addf %140, %143 : vector<16x32xf32>
      %145 = vector.broadcast %136 : vector<16x1xf32> to vector<16x32xf32>
      %146 = arith.mulf %145, %144 : vector<16x32xf32>
      %cst_64 = arith.constant dense<0.000000e+00> : vector<32xf32>
      %147 = vector.multi_reduction <add>, %146, %cst_64 [0] : vector<16x32xf32> to vector<32xf32>
      %148 = vector.shape_cast %147 : vector<32xf32> to vector<1x32xf32>
      %149 = vector.broadcast %116 : vector<16x1xf32> to vector<16x32xf32>
      %150 = vector.broadcast %148 : vector<1x32xf32> to vector<16x32xf32>
      %151 = arith.mulf %149, %150 : vector<16x32xf32>
      %152 = arith.addf %arg17, %151 : vector<16x32xf32>
      scf.yield %144, %152 : vector<16x32xf32>, vector<16x32xf32>
    }
    %c16_i32_50 = arith.constant 16 : i32
    %c0_51 = arith.constant 0 : index
    %c0_52 = arith.constant 0 : index
    %97 = vector.load %arg11[%c0_51, %c0_52] : memref<1x32xf32, #tpu.memory_space<vmem>>, vector<1x32xf32>
    %98 = vector.broadcast %97 : vector<1x32xf32> to vector<16x32xf32>
    %99 = arith.mulf %98, %62 : vector<16x32xf32>
    %100 = arith.addf %96#1, %99 : vector<16x32xf32>
    %101 = arith.negf %29 : vector<16x32xf32>
    %102 = math.exp %101 : vector<16x32xf32>
    %cst_53 = arith.constant 1.000000e+00 : f32
    %103 = vector.broadcast %cst_53 : f32 to vector<16x32xf32>
    %104 = arith.addf %103, %102 : vector<16x32xf32>
    %105 = arith.divf %103, %104 : vector<16x32xf32>
    %106 = arith.mulf %29, %105 : vector<16x32xf32>
    %107 = arith.mulf %100, %106 : vector<16x32xf32>
    %c0_54 = arith.constant 0 : index
    %c0_55 = arith.constant 0 : index
    %108 = vector.load %arg12[%c0_54, %c0_55] : memref<32x16xf32, #tpu.memory_space<vmem>>, vector<32x16xf32>
    %cst_56 = arith.constant dense<0.000000e+00> : vector<16x16xf32>
    %109 = tpu.matmul %107, %108, %cst_56 {dimension_numbers = #tpu.dot_dimension_numbers<[1], [0], [0], [1], [0, 0, 1, 1], [], []>} : vector<16x32xf32>, vector<32x16xf32>, vector<16x16xf32> -> vector<16x16xf32>
    %c0_57 = arith.constant 0 : index
    %c0_58 = arith.constant 0 : index
    %c0_59 = arith.constant 0 : index
    %110 = vector.load %arg13[%c0_57, %c0_58, %c0_59] : memref<1x16x16xf32, #tpu.memory_space<vmem>>, vector<1x16x16xf32>
    %111 = vector.shape_cast %110 : vector<1x16x16xf32> to vector<16x16xf32>
    %112 = vector.shape_cast %109 : vector<16x16xf32> to vector<1x16x16xf32>
    tpu.vector_store %arg13[%c0_57, %c0_58, %c0_59], %112 {strides = array<i32>} : memref<1x16x16xf32, #tpu.memory_space<vmem>>, vector<1x16x16xf32>,
    return
  }
  func.func @transform_0(%arg0: i32) -> (i32, i32, i32) {
    %c0_i32 = arith.constant 0 : i32
    %c0_i32_0 = arith.constant 0 : i32
    %c0_i32_1 = arith.constant 0 : i32
    return %arg0, %c0_i32, %c0_i32_0 : i32, i32, i32
  }
  func.func @transform_1(%arg0: i32) -> (i32, i32) {
    %c0_i32 = arith.constant 0 : i32
    %c0_i32_0 = arith.constant 0 : i32
    %c0_i32_1 = arith.constant 0 : i32
    return %c0_i32, %c0_i32_0 : i32, i32
  }
  func.func @transform_2(%arg0: i32) -> (i32, i32) {
    %c0_i32 = arith.constant 0 : i32
    %c0_i32_0 = arith.constant 0 : i32
    %c0_i32_1 = arith.constant 0 : i32
    return %c0_i32, %c0_i32_0 : i32, i32
  }
  func.func @transform_3(%arg0: i32) -> (i32, i32) {
    %c0_i32 = arith.constant 0 : i32
    %c0_i32_0 = arith.constant 0 : i32
    %c0_i32_1 = arith.constant 0 : i32
    return %c0_i32, %c0_i32_0 : i32, i32
  }
  func.func @transform_4(%arg0: i32) -> (i32, i32) {
    %c0_i32 = arith.constant 0 : i32
    %c0_i32_0 = arith.constant 0 : i32
    %c0_i32_1 = arith.constant 0 : i32
    return %c0_i32, %c0_i32_0 : i32, i32
  }
  func.func @transform_5(%arg0: i32) -> (i32, i32) {
    %c0_i32 = arith.constant 0 : i32
    %c0_i32_0 = arith.constant 0 : i32
    %c0_i32_1 = arith.constant 0 : i32
    return %c0_i32, %c0_i32_0 : i32, i32
  }
  func.func @transform_6(%arg0: i32) -> (i32, i32) {
    %c0_i32 = arith.constant 0 : i32
    %c0_i32_0 = arith.constant 0 : i32
    %c0_i32_1 = arith.constant 0 : i32
    return %c0_i32, %c0_i32_0 : i32, i32
  }
  func.func @transform_7(%arg0: i32) -> (i32, i32) {
    %c0_i32 = arith.constant 0 : i32
    %c0_i32_0 = arith.constant 0 : i32
    %c0_i32_1 = arith.constant 0 : i32
    return %c0_i32, %c0_i32_0 : i32, i32
  }
  func.func @transform_8(%arg0: i32) -> (i32, i32) {
    %c0_i32 = arith.constant 0 : i32
    %c0_i32_0 = arith.constant 0 : i32
    %c0_i32_1 = arith.constant 0 : i32
    return %c0_i32, %c0_i32_0 : i32, i32
  }
  func.func @transform_9(%arg0: i32) -> (i32, i32) {
    %c0_i32 = arith.constant 0 : i32
    %c0_i32_0 = arith.constant 0 : i32
    %c0_i32_1 = arith.constant 0 : i32
    return %c0_i32, %c0_i32_0 : i32, i32
  }
  func.func @transform_10(%arg0: i32) -> (i32, i32) {
    %c0_i32 = arith.constant 0 : i32
    %c0_i32_0 = arith.constant 0 : i32
    %c0_i32_1 = arith.constant 0 : i32
    return %c0_i32, %c0_i32_0 : i32, i32
  }
  func.func @transform_11(%arg0: i32) -> (i32, i32) {
    %c0_i32 = arith.constant 0 : i32
    %c0_i32_0 = arith.constant 0 : i32
    %c0_i32_1 = arith.constant 0 : i32
    return %c0_i32, %c0_i32_0 : i32, i32
  }
  func.func @transform_12(%arg0: i32) -> (i32, i32, i32) {
    %c0_i32 = arith.constant 0 : i32
    %c0_i32_0 = arith.constant 0 : i32
    %c0_i32_1 = arith.constant 0 : i32
    return %arg0, %c0_i32, %c0_i32_0 : i32, i32, i32
  }
}

module attributes {stable_mosaic.version = 11 : i64} {
  func.func @_bmm_bias_kernel(%arg0: i32, %arg1: memref<32x16xf32, #tpu.memory_space<vmem>>, %arg2: memref<1x16x16xf32, #tpu.memory_space<vmem>>, %arg3: memref<32x1xf32, #tpu.memory_space<vmem>>, %arg4: memref<1x32x16xf32, #tpu.memory_space<vmem>>) attributes {dimension_semantics = [#tpu.dimension_semantics<parallel>], iteration_bounds = array<i64: 2>, scalar_prefetch = 0 : i64, scratch_operands = 0 : i64, tpu.core_type = #tpu.core_type<tc>, window_params = [{pipeline_mode = #tpu.pipeline_mode<synchronous>, transform_indices = @transform_0, window_bounds = array<i64: 32, 16>}, {transform_indices = @transform_1, window_bounds = array<i64: 1, 16, 16>}, {pipeline_mode = #tpu.pipeline_mode<synchronous>, transform_indices = @transform_2, window_bounds = array<i64: 32, 1>}, {transform_indices = @transform_3, window_bounds = array<i64: 1, 32, 16>}]} {
    %c0 = arith.constant 0 : index
    %c0_0 = arith.constant 0 : index
    %0 = vector.load %arg1[%c0, %c0_0] : memref<32x16xf32, #tpu.memory_space<vmem>>, vector<32x16xf32>
    %c0_1 = arith.constant 0 : index
    %c0_2 = arith.constant 0 : index
    %c0_3 = arith.constant 0 : index
    %1 = vector.load %arg2[%c0_1, %c0_2, %c0_3] : memref<1x16x16xf32, #tpu.memory_space<vmem>>, vector<1x16x16xf32>
    %2 = vector.shape_cast %1 : vector<1x16x16xf32> to vector<16x16xf32>
    %cst = arith.constant dense<0.000000e+00> : vector<32x16xf32>
    %3 = tpu.matmul %0, %2, %cst {dimension_numbers = #tpu.dot_dimension_numbers<[1], [0], [0], [1], [0, 0, 1, 1], [], []>} : vector<32x16xf32>, vector<16x16xf32>, vector<32x16xf32> -> vector<32x16xf32>
    %c0_4 = arith.constant 0 : index
    %c0_5 = arith.constant 0 : index
    %4 = vector.load %arg3[%c0_4, %c0_5] : memref<32x1xf32, #tpu.memory_space<vmem>>, vector<32x1xf32>
    %5 = vector.broadcast %4 : vector<32x1xf32> to vector<32x16xf32>
    %6 = arith.addf %3, %5 : vector<32x16xf32>
    %c0_6 = arith.constant 0 : index
    %c0_7 = arith.constant 0 : index
    %c0_8 = arith.constant 0 : index
    %7 = vector.load %arg4[%c0_6, %c0_7, %c0_8] : memref<1x32x16xf32, #tpu.memory_space<vmem>>, vector<1x32x16xf32>
    %8 = vector.shape_cast %7 : vector<1x32x16xf32> to vector<32x16xf32>
    %9 = vector.shape_cast %6 : vector<32x16xf32> to vector<1x32x16xf32>
    tpu.vector_store %arg4[%c0_6, %c0_7, %c0_8], %9 {strides = array<i32>} : memref<1x32x16xf32, #tpu.memory_space<vmem>>, vector<1x32x16xf32>,
    return
  }
  func.func @transform_0(%arg0: i32) -> (i32, i32) {
    %c0_i32 = arith.constant 0 : i32
    %c0_i32_0 = arith.constant 0 : i32
    %c0_i32_1 = arith.constant 0 : i32
    return %c0_i32, %c0_i32_0 : i32, i32
  }
  func.func @transform_1(%arg0: i32) -> (i32, i32, i32) {
    %c0_i32 = arith.constant 0 : i32
    %c0_i32_0 = arith.constant 0 : i32
    %c0_i32_1 = arith.constant 0 : i32
    return %arg0, %c0_i32, %c0_i32_0 : i32, i32, i32
  }
  func.func @transform_2(%arg0: i32) -> (i32, i32) {
    %c0_i32 = arith.constant 0 : i32
    %c0_i32_0 = arith.constant 0 : i32
    %c0_i32_1 = arith.constant 0 : i32
    return %c0_i32, %c0_i32_0 : i32, i32
  }
  func.func @transform_3(%arg0: i32) -> (i32, i32, i32) {
    %c0_i32 = arith.constant 0 : i32
    %c0_i32_0 = arith.constant 0 : i32
    %c0_i32_1 = arith.constant 0 : i32
    return %arg0, %c0_i32, %c0_i32_0 : i32, i32, i32
  }
}

module attributes {stable_mosaic.version = 11 : i64} {
  func.func @_conv_in_act_kernel(%arg0: i32, %arg1: memref<1x144x16xf32, #tpu.memory_space<vmem>>, %arg2: memref<16x144xf32, #tpu.memory_space<vmem>>, %arg3: memref<16x1xf32, #tpu.memory_space<vmem>>, %arg4: memref<16x1xf32, #tpu.memory_space<vmem>>, %arg5: memref<16x1xf32, #tpu.memory_space<vmem>>, %arg6: memref<1x16x16xf32, #tpu.memory_space<vmem>>, %arg7: memref<1x16x16xf32, #tpu.memory_space<vmem>>) attributes {dimension_semantics = [#tpu.dimension_semantics<parallel>], iteration_bounds = array<i64: 2>, scalar_prefetch = 0 : i64, scratch_operands = 0 : i64, tpu.core_type = #tpu.core_type<tc>, window_params = [{transform_indices = @transform_0, window_bounds = array<i64: 1, 144, 16>}, {pipeline_mode = #tpu.pipeline_mode<synchronous>, transform_indices = @transform_1, window_bounds = array<i64: 16, 144>}, {pipeline_mode = #tpu.pipeline_mode<synchronous>, transform_indices = @transform_2, window_bounds = array<i64: 16, 1>}, {pipeline_mode = #tpu.pipeline_mode<synchronous>, transform_indices = @transform_3, window_bounds = array<i64: 16, 1>}, {pipeline_mode = #tpu.pipeline_mode<synchronous>, transform_indices = @transform_4, window_bounds = array<i64: 16, 1>}, {transform_indices = @transform_5, window_bounds = array<i64: 1, 16, 16>}, {transform_indices = @transform_6, window_bounds = array<i64: 1, 16, 16>}]} {
    %c0 = arith.constant 0 : index
    %c0_0 = arith.constant 0 : index
    %0 = vector.load %arg2[%c0, %c0_0] : memref<16x144xf32, #tpu.memory_space<vmem>>, vector<16x144xf32>
    %c0_1 = arith.constant 0 : index
    %c0_2 = arith.constant 0 : index
    %c0_3 = arith.constant 0 : index
    %1 = vector.load %arg1[%c0_1, %c0_2, %c0_3] : memref<1x144x16xf32, #tpu.memory_space<vmem>>, vector<1x144x16xf32>
    %2 = vector.shape_cast %1 : vector<1x144x16xf32> to vector<144x16xf32>
    %cst = arith.constant dense<0.000000e+00> : vector<16x16xf32>
    %3 = tpu.matmul %0, %2, %cst {dimension_numbers = #tpu.dot_dimension_numbers<[1], [0], [0], [1], [0, 0, 1, 1], [], []>} : vector<16x144xf32>, vector<144x16xf32>, vector<16x16xf32> -> vector<16x16xf32>
    %c0_4 = arith.constant 0 : index
    %c0_5 = arith.constant 0 : index
    %4 = vector.load %arg3[%c0_4, %c0_5] : memref<16x1xf32, #tpu.memory_space<vmem>>, vector<16x1xf32>
    %5 = vector.broadcast %4 : vector<16x1xf32> to vector<16x16xf32>
    %6 = arith.addf %3, %5 : vector<16x16xf32>
    %cst_6 = arith.constant dense<0.000000e+00> : vector<16xf32>
    %7 = vector.multi_reduction <add>, %6, %cst_6 [1] : vector<16x16xf32> to vector<16xf32>
    %8 = vector.shape_cast %7 : vector<16xf32> to vector<16x1xf32>
    %cst_7 = arith.constant 1.600000e+01 : f32
    %9 = vector.broadcast %cst_7 : f32 to vector<16x1xf32>
    %10 = arith.divf %8, %9 : vector<16x1xf32>
    %11 = vector.broadcast %10 : vector<16x1xf32> to vector<16x16xf32>
    %12 = arith.subf %6, %11 : vector<16x16xf32>
    %13 = arith.mulf %12, %12 : vector<16x16xf32>
    %cst_8 = arith.constant dense<0.000000e+00> : vector<16xf32>
    %14 = vector.multi_reduction <add>, %13, %cst_8 [1] : vector<16x16xf32> to vector<16xf32>
    %15 = vector.shape_cast %14 : vector<16xf32> to vector<16x1xf32>
    %cst_9 = arith.constant 1.600000e+01 : f32
    %16 = vector.broadcast %cst_9 : f32 to vector<16x1xf32>
    %17 = arith.divf %15, %16 : vector<16x1xf32>
    %18 = vector.broadcast %10 : vector<16x1xf32> to vector<16x16xf32>
    %19 = arith.subf %6, %18 : vector<16x16xf32>
    %cst_10 = arith.constant 9.99999974E-6 : f32
    %20 = vector.broadcast %cst_10 : f32 to vector<16x1xf32>
    %21 = arith.addf %17, %20 : vector<16x1xf32>
    %22 = math.rsqrt %21 : vector<16x1xf32>
    %23 = vector.broadcast %22 : vector<16x1xf32> to vector<16x16xf32>
    %24 = arith.mulf %19, %23 : vector<16x16xf32>
    %c0_11 = arith.constant 0 : index
    %c0_12 = arith.constant 0 : index
    %25 = vector.load %arg4[%c0_11, %c0_12] : memref<16x1xf32, #tpu.memory_space<vmem>>, vector<16x1xf32>
    %26 = vector.broadcast %25 : vector<16x1xf32> to vector<16x16xf32>
    %27 = arith.mulf %24, %26 : vector<16x16xf32>
    %c0_13 = arith.constant 0 : index
    %c0_14 = arith.constant 0 : index
    %28 = vector.load %arg5[%c0_13, %c0_14] : memref<16x1xf32, #tpu.memory_space<vmem>>, vector<16x1xf32>
    %29 = vector.broadcast %28 : vector<16x1xf32> to vector<16x16xf32>
    %30 = arith.addf %27, %29 : vector<16x16xf32>
    %c0_15 = arith.constant 0 : index
    %c0_16 = arith.constant 0 : index
    %c0_17 = arith.constant 0 : index
    %31 = vector.load %arg6[%c0_15, %c0_16, %c0_17] : memref<1x16x16xf32, #tpu.memory_space<vmem>>, vector<1x16x16xf32>
    %32 = vector.shape_cast %31 : vector<1x16x16xf32> to vector<16x16xf32>
    %33 = arith.addf %30, %32 : vector<16x16xf32>
    %cst_18 = arith.constant 0.000000e+00 : f32
    %34 = vector.broadcast %cst_18 : f32 to vector<16x16xf32>
    %35 = arith.cmpf oge, %33, %34 : vector<16x16xf32>
    %cst_19 = arith.constant 0.00999999977 : f32
    %36 = vector.broadcast %cst_19 : f32 to vector<16x16xf32>
    %37 = arith.mulf %36, %33 : vector<16x16xf32>
    %38 = arith.select %35, %33, %37 : vector<16x16xi1>, vector<16x16xf32>
    %c0_20 = arith.constant 0 : index
    %c0_21 = arith.constant 0 : index
    %c0_22 = arith.constant 0 : index
    %39 = vector.load %arg7[%c0_20, %c0_21, %c0_22] : memref<1x16x16xf32, #tpu.memory_space<vmem>>, vector<1x16x16xf32>
    %40 = vector.shape_cast %39 : vector<1x16x16xf32> to vector<16x16xf32>
    %41 = vector.shape_cast %38 : vector<16x16xf32> to vector<1x16x16xf32>
    tpu.vector_store %arg7[%c0_20, %c0_21, %c0_22], %41 {strides = array<i32>} : memref<1x16x16xf32, #tpu.memory_space<vmem>>, vector<1x16x16xf32>,
    return
  }
  func.func @transform_0(%arg0: i32) -> (i32, i32, i32) {
    %c0_i32 = arith.constant 0 : i32
    %c0_i32_0 = arith.constant 0 : i32
    %c0_i32_1 = arith.constant 0 : i32
    return %arg0, %c0_i32, %c0_i32_0 : i32, i32, i32
  }
  func.func @transform_1(%arg0: i32) -> (i32, i32) {
    %c0_i32 = arith.constant 0 : i32
    %c0_i32_0 = arith.constant 0 : i32
    %c0_i32_1 = arith.constant 0 : i32
    return %c0_i32, %c0_i32_0 : i32, i32
  }
  func.func @transform_2(%arg0: i32) -> (i32, i32) {
    %c0_i32 = arith.constant 0 : i32
    %c0_i32_0 = arith.constant 0 : i32
    %c0_i32_1 = arith.constant 0 : i32
    return %c0_i32, %c0_i32_0 : i32, i32
  }
  func.func @transform_3(%arg0: i32) -> (i32, i32) {
    %c0_i32 = arith.constant 0 : i32
    %c0_i32_0 = arith.constant 0 : i32
    %c0_i32_1 = arith.constant 0 : i32
    return %c0_i32, %c0_i32_0 : i32, i32
  }
  func.func @transform_4(%arg0: i32) -> (i32, i32) {
    %c0_i32 = arith.constant 0 : i32
    %c0_i32_0 = arith.constant 0 : i32
    %c0_i32_1 = arith.constant 0 : i32
    return %c0_i32, %c0_i32_0 : i32, i32
  }
  func.func @transform_5(%arg0: i32) -> (i32, i32, i32) {
    %c0_i32 = arith.constant 0 : i32
    %c0_i32_0 = arith.constant 0 : i32
    %c0_i32_1 = arith.constant 0 : i32
    return %arg0, %c0_i32, %c0_i32_0 : i32, i32, i32
  }
  func.func @transform_6(%arg0: i32) -> (i32, i32, i32) {
    %c0_i32 = arith.constant 0 : i32
    %c0_i32_0 = arith.constant 0 : i32
    %c0_i32_1 = arith.constant 0 : i32
    return %arg0, %c0_i32, %c0_i32_0 : i32, i32, i32
  }
}

module attributes {stable_mosaic.version = 11 : i64} {
  func.func @_conv_in_act_kernel(%arg0: i32, %arg1: memref<1x16x64xf32, #tpu.memory_space<vmem>>, %arg2: memref<8x16xf32, #tpu.memory_space<vmem>>, %arg3: memref<8x1xf32, #tpu.memory_space<vmem>>, %arg4: memref<8x1xf32, #tpu.memory_space<vmem>>, %arg5: memref<8x1xf32, #tpu.memory_space<vmem>>, %arg6: memref<1x8x64xf32, #tpu.memory_space<vmem>>) attributes {dimension_semantics = [#tpu.dimension_semantics<parallel>], iteration_bounds = array<i64: 2>, scalar_prefetch = 0 : i64, scratch_operands = 0 : i64, tpu.core_type = #tpu.core_type<tc>, window_params = [{transform_indices = @transform_0, window_bounds = array<i64: 1, 16, 64>}, {pipeline_mode = #tpu.pipeline_mode<synchronous>, transform_indices = @transform_1, window_bounds = array<i64: 8, 16>}, {pipeline_mode = #tpu.pipeline_mode<synchronous>, transform_indices = @transform_2, window_bounds = array<i64: 8, 1>}, {pipeline_mode = #tpu.pipeline_mode<synchronous>, transform_indices = @transform_3, window_bounds = array<i64: 8, 1>}, {pipeline_mode = #tpu.pipeline_mode<synchronous>, transform_indices = @transform_4, window_bounds = array<i64: 8, 1>}, {transform_indices = @transform_5, window_bounds = array<i64: 1, 8, 64>}]} {
    %c0 = arith.constant 0 : index
    %c0_0 = arith.constant 0 : index
    %0 = vector.load %arg2[%c0, %c0_0] : memref<8x16xf32, #tpu.memory_space<vmem>>, vector<8x16xf32>
    %c0_1 = arith.constant 0 : index
    %c0_2 = arith.constant 0 : index
    %c0_3 = arith.constant 0 : index
    %1 = vector.load %arg1[%c0_1, %c0_2, %c0_3] : memref<1x16x64xf32, #tpu.memory_space<vmem>>, vector<1x16x64xf32>
    %2 = vector.shape_cast %1 : vector<1x16x64xf32> to vector<16x64xf32>
    %cst = arith.constant dense<0.000000e+00> : vector<8x64xf32>
    %3 = tpu.matmul %0, %2, %cst {dimension_numbers = #tpu.dot_dimension_numbers<[1], [0], [0], [1], [0, 0, 1, 1], [], []>} : vector<8x16xf32>, vector<16x64xf32>, vector<8x64xf32> -> vector<8x64xf32>
    %c0_4 = arith.constant 0 : index
    %c0_5 = arith.constant 0 : index
    %4 = vector.load %arg3[%c0_4, %c0_5] : memref<8x1xf32, #tpu.memory_space<vmem>>, vector<8x1xf32>
    %5 = vector.broadcast %4 : vector<8x1xf32> to vector<8x64xf32>
    %6 = arith.addf %3, %5 : vector<8x64xf32>
    %cst_6 = arith.constant dense<0.000000e+00> : vector<8xf32>
    %7 = vector.multi_reduction <add>, %6, %cst_6 [1] : vector<8x64xf32> to vector<8xf32>
    %8 = vector.shape_cast %7 : vector<8xf32> to vector<8x1xf32>
    %cst_7 = arith.constant 6.400000e+01 : f32
    %9 = vector.broadcast %cst_7 : f32 to vector<8x1xf32>
    %10 = arith.divf %8, %9 : vector<8x1xf32>
    %11 = vector.broadcast %10 : vector<8x1xf32> to vector<8x64xf32>
    %12 = arith.subf %6, %11 : vector<8x64xf32>
    %13 = arith.mulf %12, %12 : vector<8x64xf32>
    %cst_8 = arith.constant dense<0.000000e+00> : vector<8xf32>
    %14 = vector.multi_reduction <add>, %13, %cst_8 [1] : vector<8x64xf32> to vector<8xf32>
    %15 = vector.shape_cast %14 : vector<8xf32> to vector<8x1xf32>
    %cst_9 = arith.constant 6.400000e+01 : f32
    %16 = vector.broadcast %cst_9 : f32 to vector<8x1xf32>
    %17 = arith.divf %15, %16 : vector<8x1xf32>
    %18 = vector.broadcast %10 : vector<8x1xf32> to vector<8x64xf32>
    %19 = arith.subf %6, %18 : vector<8x64xf32>
    %cst_10 = arith.constant 9.99999974E-6 : f32
    %20 = vector.broadcast %cst_10 : f32 to vector<8x1xf32>
    %21 = arith.addf %17, %20 : vector<8x1xf32>
    %22 = math.rsqrt %21 : vector<8x1xf32>
    %23 = vector.broadcast %22 : vector<8x1xf32> to vector<8x64xf32>
    %24 = arith.mulf %19, %23 : vector<8x64xf32>
    %c0_11 = arith.constant 0 : index
    %c0_12 = arith.constant 0 : index
    %25 = vector.load %arg4[%c0_11, %c0_12] : memref<8x1xf32, #tpu.memory_space<vmem>>, vector<8x1xf32>
    %26 = vector.broadcast %25 : vector<8x1xf32> to vector<8x64xf32>
    %27 = arith.mulf %24, %26 : vector<8x64xf32>
    %c0_13 = arith.constant 0 : index
    %c0_14 = arith.constant 0 : index
    %28 = vector.load %arg5[%c0_13, %c0_14] : memref<8x1xf32, #tpu.memory_space<vmem>>, vector<8x1xf32>
    %29 = vector.broadcast %28 : vector<8x1xf32> to vector<8x64xf32>
    %30 = arith.addf %27, %29 : vector<8x64xf32>
    %c0_15 = arith.constant 0 : index
    %c0_16 = arith.constant 0 : index
    %c0_17 = arith.constant 0 : index
    %31 = vector.load %arg6[%c0_15, %c0_16, %c0_17] : memref<1x8x64xf32, #tpu.memory_space<vmem>>, vector<1x8x64xf32>
    %32 = vector.shape_cast %31 : vector<1x8x64xf32> to vector<8x64xf32>
    %33 = vector.shape_cast %30 : vector<8x64xf32> to vector<1x8x64xf32>
    tpu.vector_store %arg6[%c0_15, %c0_16, %c0_17], %33 {strides = array<i32>} : memref<1x8x64xf32, #tpu.memory_space<vmem>>, vector<1x8x64xf32>,
    return
  }
  func.func @transform_0(%arg0: i32) -> (i32, i32, i32) {
    %c0_i32 = arith.constant 0 : i32
    %c0_i32_0 = arith.constant 0 : i32
    %c0_i32_1 = arith.constant 0 : i32
    return %arg0, %c0_i32, %c0_i32_0 : i32, i32, i32
  }
  func.func @transform_1(%arg0: i32) -> (i32, i32) {
    %c0_i32 = arith.constant 0 : i32
    %c0_i32_0 = arith.constant 0 : i32
    %c0_i32_1 = arith.constant 0 : i32
    return %c0_i32, %c0_i32_0 : i32, i32
  }
  func.func @transform_2(%arg0: i32) -> (i32, i32) {
    %c0_i32 = arith.constant 0 : i32
    %c0_i32_0 = arith.constant 0 : i32
    %c0_i32_1 = arith.constant 0 : i32
    return %c0_i32, %c0_i32_0 : i32, i32
  }
  func.func @transform_3(%arg0: i32) -> (i32, i32) {
    %c0_i32 = arith.constant 0 : i32
    %c0_i32_0 = arith.constant 0 : i32
    %c0_i32_1 = arith.constant 0 : i32
    return %c0_i32, %c0_i32_0 : i32, i32
  }
  func.func @transform_4(%arg0: i32) -> (i32, i32) {
    %c0_i32 = arith.constant 0 : i32
    %c0_i32_0 = arith.constant 0 : i32
    %c0_i32_1 = arith.constant 0 : i32
    return %c0_i32, %c0_i32_0 : i32, i32
  }
  func.func @transform_5(%arg0: i32) -> (i32, i32, i32) {
    %c0_i32 = arith.constant 0 : i32
    %c0_i32_0 = arith.constant 0 : i32
    %c0_i32_1 = arith.constant 0 : i32
    return %arg0, %c0_i32, %c0_i32_0 : i32, i32, i32
  }
}

module attributes {stable_mosaic.version = 11 : i64} {
  func.func @_bmm_bias_kernel(%arg0: i32, %arg1: memref<16x8xf32, #tpu.memory_space<vmem>>, %arg2: memref<1x8x64xf32, #tpu.memory_space<vmem>>, %arg3: memref<16x1xf32, #tpu.memory_space<vmem>>, %arg4: memref<1x16x64xf32, #tpu.memory_space<vmem>>) attributes {dimension_semantics = [#tpu.dimension_semantics<parallel>], iteration_bounds = array<i64: 2>, scalar_prefetch = 0 : i64, scratch_operands = 0 : i64, tpu.core_type = #tpu.core_type<tc>, window_params = [{pipeline_mode = #tpu.pipeline_mode<synchronous>, transform_indices = @transform_0, window_bounds = array<i64: 16, 8>}, {transform_indices = @transform_1, window_bounds = array<i64: 1, 8, 64>}, {pipeline_mode = #tpu.pipeline_mode<synchronous>, transform_indices = @transform_2, window_bounds = array<i64: 16, 1>}, {transform_indices = @transform_3, window_bounds = array<i64: 1, 16, 64>}]} {
    %c0 = arith.constant 0 : index
    %c0_0 = arith.constant 0 : index
    %0 = vector.load %arg1[%c0, %c0_0] : memref<16x8xf32, #tpu.memory_space<vmem>>, vector<16x8xf32>
    %c0_1 = arith.constant 0 : index
    %c0_2 = arith.constant 0 : index
    %c0_3 = arith.constant 0 : index
    %1 = vector.load %arg2[%c0_1, %c0_2, %c0_3] : memref<1x8x64xf32, #tpu.memory_space<vmem>>, vector<1x8x64xf32>
    %2 = vector.shape_cast %1 : vector<1x8x64xf32> to vector<8x64xf32>
    %cst = arith.constant dense<0.000000e+00> : vector<16x64xf32>
    %3 = tpu.matmul %0, %2, %cst {dimension_numbers = #tpu.dot_dimension_numbers<[1], [0], [0], [1], [0, 0, 1, 1], [], []>} : vector<16x8xf32>, vector<8x64xf32>, vector<16x64xf32> -> vector<16x64xf32>
    %c0_4 = arith.constant 0 : index
    %c0_5 = arith.constant 0 : index
    %4 = vector.load %arg3[%c0_4, %c0_5] : memref<16x1xf32, #tpu.memory_space<vmem>>, vector<16x1xf32>
    %5 = vector.broadcast %4 : vector<16x1xf32> to vector<16x64xf32>
    %6 = arith.addf %3, %5 : vector<16x64xf32>
    %c0_6 = arith.constant 0 : index
    %c0_7 = arith.constant 0 : index
    %c0_8 = arith.constant 0 : index
    %7 = vector.load %arg4[%c0_6, %c0_7, %c0_8] : memref<1x16x64xf32, #tpu.memory_space<vmem>>, vector<1x16x64xf32>
    %8 = vector.shape_cast %7 : vector<1x16x64xf32> to vector<16x64xf32>
    %9 = vector.shape_cast %6 : vector<16x64xf32> to vector<1x16x64xf32>
    tpu.vector_store %arg4[%c0_6, %c0_7, %c0_8], %9 {strides = array<i32>} : memref<1x16x64xf32, #tpu.memory_space<vmem>>, vector<1x16x64xf32>,
    return
  }
  func.func @transform_0(%arg0: i32) -> (i32, i32) {
    %c0_i32 = arith.constant 0 : i32
    %c0_i32_0 = arith.constant 0 : i32
    %c0_i32_1 = arith.constant 0 : i32
    return %c0_i32, %c0_i32_0 : i32, i32
  }
  func.func @transform_1(%arg0: i32) -> (i32, i32, i32) {
    %c0_i32 = arith.constant 0 : i32
    %c0_i32_0 = arith.constant 0 : i32
    %c0_i32_1 = arith.constant 0 : i32
    return %arg0, %c0_i32, %c0_i32_0 : i32, i32, i32
  }
  func.func @transform_2(%arg0: i32) -> (i32, i32) {
    %c0_i32 = arith.constant 0 : i32
    %c0_i32_0 = arith.constant 0 : i32
    %c0_i32_1 = arith.constant 0 : i32
    return %c0_i32, %c0_i32_0 : i32, i32
  }
  func.func @transform_3(%arg0: i32) -> (i32, i32, i32) {
    %c0_i32 = arith.constant 0 : i32
    %c0_i32_0 = arith.constant 0 : i32
    %c0_i32_1 = arith.constant 0 : i32
    return %arg0, %c0_i32, %c0_i32_0 : i32, i32, i32
  }
}

module attributes {stable_mosaic.version = 11 : i64} {
  func.func @_conv_in_act_kernel(%arg0: i32, %arg1: memref<1x144x64xf32, #tpu.memory_space<vmem>>, %arg2: memref<8x144xf32, #tpu.memory_space<vmem>>, %arg3: memref<8x1xf32, #tpu.memory_space<vmem>>, %arg4: memref<8x1xf32, #tpu.memory_space<vmem>>, %arg5: memref<8x1xf32, #tpu.memory_space<vmem>>, %arg6: memref<1x8x64xf32, #tpu.memory_space<vmem>>) attributes {dimension_semantics = [#tpu.dimension_semantics<parallel>], iteration_bounds = array<i64: 2>, scalar_prefetch = 0 : i64, scratch_operands = 0 : i64, tpu.core_type = #tpu.core_type<tc>, window_params = [{transform_indices = @transform_0, window_bounds = array<i64: 1, 144, 64>}, {pipeline_mode = #tpu.pipeline_mode<synchronous>, transform_indices = @transform_1, window_bounds = array<i64: 8, 144>}, {pipeline_mode = #tpu.pipeline_mode<synchronous>, transform_indices = @transform_2, window_bounds = array<i64: 8, 1>}, {pipeline_mode = #tpu.pipeline_mode<synchronous>, transform_indices = @transform_3, window_bounds = array<i64: 8, 1>}, {pipeline_mode = #tpu.pipeline_mode<synchronous>, transform_indices = @transform_4, window_bounds = array<i64: 8, 1>}, {transform_indices = @transform_5, window_bounds = array<i64: 1, 8, 64>}]} {
    %c0 = arith.constant 0 : index
    %c0_0 = arith.constant 0 : index
    %0 = vector.load %arg2[%c0, %c0_0] : memref<8x144xf32, #tpu.memory_space<vmem>>, vector<8x144xf32>
    %c0_1 = arith.constant 0 : index
    %c0_2 = arith.constant 0 : index
    %c0_3 = arith.constant 0 : index
    %1 = vector.load %arg1[%c0_1, %c0_2, %c0_3] : memref<1x144x64xf32, #tpu.memory_space<vmem>>, vector<1x144x64xf32>
    %2 = vector.shape_cast %1 : vector<1x144x64xf32> to vector<144x64xf32>
    %cst = arith.constant dense<0.000000e+00> : vector<8x64xf32>
    %3 = tpu.matmul %0, %2, %cst {dimension_numbers = #tpu.dot_dimension_numbers<[1], [0], [0], [1], [0, 0, 1, 1], [], []>} : vector<8x144xf32>, vector<144x64xf32>, vector<8x64xf32> -> vector<8x64xf32>
    %c0_4 = arith.constant 0 : index
    %c0_5 = arith.constant 0 : index
    %4 = vector.load %arg3[%c0_4, %c0_5] : memref<8x1xf32, #tpu.memory_space<vmem>>, vector<8x1xf32>
    %5 = vector.broadcast %4 : vector<8x1xf32> to vector<8x64xf32>
    %6 = arith.addf %3, %5 : vector<8x64xf32>
    %cst_6 = arith.constant dense<0.000000e+00> : vector<8xf32>
    %7 = vector.multi_reduction <add>, %6, %cst_6 [1] : vector<8x64xf32> to vector<8xf32>
    %8 = vector.shape_cast %7 : vector<8xf32> to vector<8x1xf32>
    %cst_7 = arith.constant 6.400000e+01 : f32
    %9 = vector.broadcast %cst_7 : f32 to vector<8x1xf32>
    %10 = arith.divf %8, %9 : vector<8x1xf32>
    %11 = vector.broadcast %10 : vector<8x1xf32> to vector<8x64xf32>
    %12 = arith.subf %6, %11 : vector<8x64xf32>
    %13 = arith.mulf %12, %12 : vector<8x64xf32>
    %cst_8 = arith.constant dense<0.000000e+00> : vector<8xf32>
    %14 = vector.multi_reduction <add>, %13, %cst_8 [1] : vector<8x64xf32> to vector<8xf32>
    %15 = vector.shape_cast %14 : vector<8xf32> to vector<8x1xf32>
    %cst_9 = arith.constant 6.400000e+01 : f32
    %16 = vector.broadcast %cst_9 : f32 to vector<8x1xf32>
    %17 = arith.divf %15, %16 : vector<8x1xf32>
    %18 = vector.broadcast %10 : vector<8x1xf32> to vector<8x64xf32>
    %19 = arith.subf %6, %18 : vector<8x64xf32>
    %cst_10 = arith.constant 9.99999974E-6 : f32
    %20 = vector.broadcast %cst_10 : f32 to vector<8x1xf32>
    %21 = arith.addf %17, %20 : vector<8x1xf32>
    %22 = math.rsqrt %21 : vector<8x1xf32>
    %23 = vector.broadcast %22 : vector<8x1xf32> to vector<8x64xf32>
    %24 = arith.mulf %19, %23 : vector<8x64xf32>
    %c0_11 = arith.constant 0 : index
    %c0_12 = arith.constant 0 : index
    %25 = vector.load %arg4[%c0_11, %c0_12] : memref<8x1xf32, #tpu.memory_space<vmem>>, vector<8x1xf32>
    %26 = vector.broadcast %25 : vector<8x1xf32> to vector<8x64xf32>
    %27 = arith.mulf %24, %26 : vector<8x64xf32>
    %c0_13 = arith.constant 0 : index
    %c0_14 = arith.constant 0 : index
    %28 = vector.load %arg5[%c0_13, %c0_14] : memref<8x1xf32, #tpu.memory_space<vmem>>, vector<8x1xf32>
    %29 = vector.broadcast %28 : vector<8x1xf32> to vector<8x64xf32>
    %30 = arith.addf %27, %29 : vector<8x64xf32>
    %cst_15 = arith.constant 0.000000e+00 : f32
    %31 = vector.broadcast %cst_15 : f32 to vector<8x64xf32>
    %32 = arith.cmpf oge, %30, %31 : vector<8x64xf32>
    %cst_16 = arith.constant 0.00999999977 : f32
    %33 = vector.broadcast %cst_16 : f32 to vector<8x64xf32>
    %34 = arith.mulf %33, %30 : vector<8x64xf32>
    %35 = arith.select %32, %30, %34 : vector<8x64xi1>, vector<8x64xf32>
    %c0_17 = arith.constant 0 : index
    %c0_18 = arith.constant 0 : index
    %c0_19 = arith.constant 0 : index
    %36 = vector.load %arg6[%c0_17, %c0_18, %c0_19] : memref<1x8x64xf32, #tpu.memory_space<vmem>>, vector<1x8x64xf32>
    %37 = vector.shape_cast %36 : vector<1x8x64xf32> to vector<8x64xf32>
    %38 = vector.shape_cast %35 : vector<8x64xf32> to vector<1x8x64xf32>
    tpu.vector_store %arg6[%c0_17, %c0_18, %c0_19], %38 {strides = array<i32>} : memref<1x8x64xf32, #tpu.memory_space<vmem>>, vector<1x8x64xf32>,
    return
  }
  func.func @transform_0(%arg0: i32) -> (i32, i32, i32) {
    %c0_i32 = arith.constant 0 : i32
    %c0_i32_0 = arith.constant 0 : i32
    %c0_i32_1 = arith.constant 0 : i32
    return %arg0, %c0_i32, %c0_i32_0 : i32, i32, i32
  }
  func.func @transform_1(%arg0: i32) -> (i32, i32) {
    %c0_i32 = arith.constant 0 : i32
    %c0_i32_0 = arith.constant 0 : i32
    %c0_i32_1 = arith.constant 0 : i32
    return %c0_i32, %c0_i32_0 : i32, i32
  }
  func.func @transform_2(%arg0: i32) -> (i32, i32) {
    %c0_i32 = arith.constant 0 : i32
    %c0_i32_0 = arith.constant 0 : i32
    %c0_i32_1 = arith.constant 0 : i32
    return %c0_i32, %c0_i32_0 : i32, i32
  }
  func.func @transform_3(%arg0: i32) -> (i32, i32) {
    %c0_i32 = arith.constant 0 : i32
    %c0_i32_0 = arith.constant 0 : i32
    %c0_i32_1 = arith.constant 0 : i32
    return %c0_i32, %c0_i32_0 : i32, i32
  }
  func.func @transform_4(%arg0: i32) -> (i32, i32) {
    %c0_i32 = arith.constant 0 : i32
    %c0_i32_0 = arith.constant 0 : i32
    %c0_i32_1 = arith.constant 0 : i32
    return %c0_i32, %c0_i32_0 : i32, i32
  }
  func.func @transform_5(%arg0: i32) -> (i32, i32, i32) {
    %c0_i32 = arith.constant 0 : i32
    %c0_i32_0 = arith.constant 0 : i32
    %c0_i32_1 = arith.constant 0 : i32
    return %arg0, %c0_i32, %c0_i32_0 : i32, i32, i32
  }
}

module attributes {stable_mosaic.version = 11 : i64} {
  func.func @_conv_in_act_kernel(%arg0: i32, %arg1: memref<1x72x256xf32, #tpu.memory_space<vmem>>, %arg2: memref<4x72xf32, #tpu.memory_space<vmem>>, %arg3: memref<4x1xf32, #tpu.memory_space<vmem>>, %arg4: memref<4x1xf32, #tpu.memory_space<vmem>>, %arg5: memref<4x1xf32, #tpu.memory_space<vmem>>, %arg6: memref<1x4x256xf32, #tpu.memory_space<vmem>>) attributes {dimension_semantics = [#tpu.dimension_semantics<parallel>], iteration_bounds = array<i64: 2>, scalar_prefetch = 0 : i64, scratch_operands = 0 : i64, tpu.core_type = #tpu.core_type<tc>, window_params = [{transform_indices = @transform_0, window_bounds = array<i64: 1, 72, 256>}, {pipeline_mode = #tpu.pipeline_mode<synchronous>, transform_indices = @transform_1, window_bounds = array<i64: 4, 72>}, {pipeline_mode = #tpu.pipeline_mode<synchronous>, transform_indices = @transform_2, window_bounds = array<i64: 4, 1>}, {pipeline_mode = #tpu.pipeline_mode<synchronous>, transform_indices = @transform_3, window_bounds = array<i64: 4, 1>}, {pipeline_mode = #tpu.pipeline_mode<synchronous>, transform_indices = @transform_4, window_bounds = array<i64: 4, 1>}, {transform_indices = @transform_5, window_bounds = array<i64: 1, 4, 256>}]} {
    %c0 = arith.constant 0 : index
    %c0_0 = arith.constant 0 : index
    %0 = vector.load %arg2[%c0, %c0_0] : memref<4x72xf32, #tpu.memory_space<vmem>>, vector<4x72xf32>
    %c0_1 = arith.constant 0 : index
    %c0_2 = arith.constant 0 : index
    %c0_3 = arith.constant 0 : index
    %1 = vector.load %arg1[%c0_1, %c0_2, %c0_3] : memref<1x72x256xf32, #tpu.memory_space<vmem>>, vector<1x72x256xf32>
    %2 = vector.shape_cast %1 : vector<1x72x256xf32> to vector<72x256xf32>
    %cst = arith.constant dense<0.000000e+00> : vector<4x256xf32>
    %3 = tpu.matmul %0, %2, %cst {dimension_numbers = #tpu.dot_dimension_numbers<[1], [0], [0], [1], [0, 0, 1, 1], [], []>} : vector<4x72xf32>, vector<72x256xf32>, vector<4x256xf32> -> vector<4x256xf32>
    %c0_4 = arith.constant 0 : index
    %c0_5 = arith.constant 0 : index
    %4 = vector.load %arg3[%c0_4, %c0_5] : memref<4x1xf32, #tpu.memory_space<vmem>>, vector<4x1xf32>
    %5 = vector.broadcast %4 : vector<4x1xf32> to vector<4x256xf32>
    %6 = arith.addf %3, %5 : vector<4x256xf32>
    %cst_6 = arith.constant dense<0.000000e+00> : vector<4xf32>
    %7 = vector.multi_reduction <add>, %6, %cst_6 [1] : vector<4x256xf32> to vector<4xf32>
    %8 = vector.shape_cast %7 : vector<4xf32> to vector<4x1xf32>
    %cst_7 = arith.constant 2.560000e+02 : f32
    %9 = vector.broadcast %cst_7 : f32 to vector<4x1xf32>
    %10 = arith.divf %8, %9 : vector<4x1xf32>
    %11 = vector.broadcast %10 : vector<4x1xf32> to vector<4x256xf32>
    %12 = arith.subf %6, %11 : vector<4x256xf32>
    %13 = arith.mulf %12, %12 : vector<4x256xf32>
    %cst_8 = arith.constant dense<0.000000e+00> : vector<4xf32>
    %14 = vector.multi_reduction <add>, %13, %cst_8 [1] : vector<4x256xf32> to vector<4xf32>
    %15 = vector.shape_cast %14 : vector<4xf32> to vector<4x1xf32>
    %cst_9 = arith.constant 2.560000e+02 : f32
    %16 = vector.broadcast %cst_9 : f32 to vector<4x1xf32>
    %17 = arith.divf %15, %16 : vector<4x1xf32>
    %18 = vector.broadcast %10 : vector<4x1xf32> to vector<4x256xf32>
    %19 = arith.subf %6, %18 : vector<4x256xf32>
    %cst_10 = arith.constant 9.99999974E-6 : f32
    %20 = vector.broadcast %cst_10 : f32 to vector<4x1xf32>
    %21 = arith.addf %17, %20 : vector<4x1xf32>
    %22 = math.rsqrt %21 : vector<4x1xf32>
    %23 = vector.broadcast %22 : vector<4x1xf32> to vector<4x256xf32>
    %24 = arith.mulf %19, %23 : vector<4x256xf32>
    %c0_11 = arith.constant 0 : index
    %c0_12 = arith.constant 0 : index
    %25 = vector.load %arg4[%c0_11, %c0_12] : memref<4x1xf32, #tpu.memory_space<vmem>>, vector<4x1xf32>
    %26 = vector.broadcast %25 : vector<4x1xf32> to vector<4x256xf32>
    %27 = arith.mulf %24, %26 : vector<4x256xf32>
    %c0_13 = arith.constant 0 : index
    %c0_14 = arith.constant 0 : index
    %28 = vector.load %arg5[%c0_13, %c0_14] : memref<4x1xf32, #tpu.memory_space<vmem>>, vector<4x1xf32>
    %29 = vector.broadcast %28 : vector<4x1xf32> to vector<4x256xf32>
    %30 = arith.addf %27, %29 : vector<4x256xf32>
    %cst_15 = arith.constant 0.000000e+00 : f32
    %31 = vector.broadcast %cst_15 : f32 to vector<4x256xf32>
    %32 = arith.cmpf oge, %30, %31 : vector<4x256xf32>
    %cst_16 = arith.constant 0.00999999977 : f32
    %33 = vector.broadcast %cst_16 : f32 to vector<4x256xf32>
    %34 = arith.mulf %33, %30 : vector<4x256xf32>
    %35 = arith.select %32, %30, %34 : vector<4x256xi1>, vector<4x256xf32>
    %c0_17 = arith.constant 0 : index
    %c0_18 = arith.constant 0 : index
    %c0_19 = arith.constant 0 : index
    %36 = vector.load %arg6[%c0_17, %c0_18, %c0_19] : memref<1x4x256xf32, #tpu.memory_space<vmem>>, vector<1x4x256xf32>
    %37 = vector.shape_cast %36 : vector<1x4x256xf32> to vector<4x256xf32>
    %38 = vector.shape_cast %35 : vector<4x256xf32> to vector<1x4x256xf32>
    tpu.vector_store %arg6[%c0_17, %c0_18, %c0_19], %38 {strides = array<i32>} : memref<1x4x256xf32, #tpu.memory_space<vmem>>, vector<1x4x256xf32>,
    return
  }
  func.func @transform_0(%arg0: i32) -> (i32, i32, i32) {
    %c0_i32 = arith.constant 0 : i32
    %c0_i32_0 = arith.constant 0 : i32
    %c0_i32_1 = arith.constant 0 : i32
    return %arg0, %c0_i32, %c0_i32_0 : i32, i32, i32
  }
  func.func @transform_1(%arg0: i32) -> (i32, i32) {
    %c0_i32 = arith.constant 0 : i32
    %c0_i32_0 = arith.constant 0 : i32
    %c0_i32_1 = arith.constant 0 : i32
    return %c0_i32, %c0_i32_0 : i32, i32
  }
  func.func @transform_2(%arg0: i32) -> (i32, i32) {
    %c0_i32 = arith.constant 0 : i32
    %c0_i32_0 = arith.constant 0 : i32
    %c0_i32_1 = arith.constant 0 : i32
    return %c0_i32, %c0_i32_0 : i32, i32
  }
  func.func @transform_3(%arg0: i32) -> (i32, i32) {
    %c0_i32 = arith.constant 0 : i32
    %c0_i32_0 = arith.constant 0 : i32
    %c0_i32_1 = arith.constant 0 : i32
    return %c0_i32, %c0_i32_0 : i32, i32
  }
  func.func @transform_4(%arg0: i32) -> (i32, i32) {
    %c0_i32 = arith.constant 0 : i32
    %c0_i32_0 = arith.constant 0 : i32
    %c0_i32_1 = arith.constant 0 : i32
    return %c0_i32, %c0_i32_0 : i32, i32
  }
  func.func @transform_5(%arg0: i32) -> (i32, i32, i32) {
    %c0_i32 = arith.constant 0 : i32
    %c0_i32_0 = arith.constant 0 : i32
    %c0_i32_1 = arith.constant 0 : i32
    return %arg0, %c0_i32, %c0_i32_0 : i32, i32, i32
  }
}

module attributes {stable_mosaic.version = 11 : i64} {
  func.func @_conv_in_act_kernel(%arg0: i32, %arg1: memref<1x8x256xf32, #tpu.memory_space<vmem>>, %arg2: memref<4x8xf32, #tpu.memory_space<vmem>>, %arg3: memref<4x1xf32, #tpu.memory_space<vmem>>, %arg4: memref<4x1xf32, #tpu.memory_space<vmem>>, %arg5: memref<4x1xf32, #tpu.memory_space<vmem>>, %arg6: memref<1x4x256xf32, #tpu.memory_space<vmem>>) attributes {dimension_semantics = [#tpu.dimension_semantics<parallel>], iteration_bounds = array<i64: 2>, scalar_prefetch = 0 : i64, scratch_operands = 0 : i64, tpu.core_type = #tpu.core_type<tc>, window_params = [{transform_indices = @transform_0, window_bounds = array<i64: 1, 8, 256>}, {pipeline_mode = #tpu.pipeline_mode<synchronous>, transform_indices = @transform_1, window_bounds = array<i64: 4, 8>}, {pipeline_mode = #tpu.pipeline_mode<synchronous>, transform_indices = @transform_2, window_bounds = array<i64: 4, 1>}, {pipeline_mode = #tpu.pipeline_mode<synchronous>, transform_indices = @transform_3, window_bounds = array<i64: 4, 1>}, {pipeline_mode = #tpu.pipeline_mode<synchronous>, transform_indices = @transform_4, window_bounds = array<i64: 4, 1>}, {transform_indices = @transform_5, window_bounds = array<i64: 1, 4, 256>}]} {
    %c0 = arith.constant 0 : index
    %c0_0 = arith.constant 0 : index
    %0 = vector.load %arg2[%c0, %c0_0] : memref<4x8xf32, #tpu.memory_space<vmem>>, vector<4x8xf32>
    %c0_1 = arith.constant 0 : index
    %c0_2 = arith.constant 0 : index
    %c0_3 = arith.constant 0 : index
    %1 = vector.load %arg1[%c0_1, %c0_2, %c0_3] : memref<1x8x256xf32, #tpu.memory_space<vmem>>, vector<1x8x256xf32>
    %2 = vector.shape_cast %1 : vector<1x8x256xf32> to vector<8x256xf32>
    %cst = arith.constant dense<0.000000e+00> : vector<4x256xf32>
    %3 = tpu.matmul %0, %2, %cst {dimension_numbers = #tpu.dot_dimension_numbers<[1], [0], [0], [1], [0, 0, 1, 1], [], []>} : vector<4x8xf32>, vector<8x256xf32>, vector<4x256xf32> -> vector<4x256xf32>
    %c0_4 = arith.constant 0 : index
    %c0_5 = arith.constant 0 : index
    %4 = vector.load %arg3[%c0_4, %c0_5] : memref<4x1xf32, #tpu.memory_space<vmem>>, vector<4x1xf32>
    %5 = vector.broadcast %4 : vector<4x1xf32> to vector<4x256xf32>
    %6 = arith.addf %3, %5 : vector<4x256xf32>
    %cst_6 = arith.constant dense<0.000000e+00> : vector<4xf32>
    %7 = vector.multi_reduction <add>, %6, %cst_6 [1] : vector<4x256xf32> to vector<4xf32>
    %8 = vector.shape_cast %7 : vector<4xf32> to vector<4x1xf32>
    %cst_7 = arith.constant 2.560000e+02 : f32
    %9 = vector.broadcast %cst_7 : f32 to vector<4x1xf32>
    %10 = arith.divf %8, %9 : vector<4x1xf32>
    %11 = vector.broadcast %10 : vector<4x1xf32> to vector<4x256xf32>
    %12 = arith.subf %6, %11 : vector<4x256xf32>
    %13 = arith.mulf %12, %12 : vector<4x256xf32>
    %cst_8 = arith.constant dense<0.000000e+00> : vector<4xf32>
    %14 = vector.multi_reduction <add>, %13, %cst_8 [1] : vector<4x256xf32> to vector<4xf32>
    %15 = vector.shape_cast %14 : vector<4xf32> to vector<4x1xf32>
    %cst_9 = arith.constant 2.560000e+02 : f32
    %16 = vector.broadcast %cst_9 : f32 to vector<4x1xf32>
    %17 = arith.divf %15, %16 : vector<4x1xf32>
    %18 = vector.broadcast %10 : vector<4x1xf32> to vector<4x256xf32>
    %19 = arith.subf %6, %18 : vector<4x256xf32>
    %cst_10 = arith.constant 9.99999974E-6 : f32
    %20 = vector.broadcast %cst_10 : f32 to vector<4x1xf32>
    %21 = arith.addf %17, %20 : vector<4x1xf32>
    %22 = math.rsqrt %21 : vector<4x1xf32>
    %23 = vector.broadcast %22 : vector<4x1xf32> to vector<4x256xf32>
    %24 = arith.mulf %19, %23 : vector<4x256xf32>
    %c0_11 = arith.constant 0 : index
    %c0_12 = arith.constant 0 : index
    %25 = vector.load %arg4[%c0_11, %c0_12] : memref<4x1xf32, #tpu.memory_space<vmem>>, vector<4x1xf32>
    %26 = vector.broadcast %25 : vector<4x1xf32> to vector<4x256xf32>
    %27 = arith.mulf %24, %26 : vector<4x256xf32>
    %c0_13 = arith.constant 0 : index
    %c0_14 = arith.constant 0 : index
    %28 = vector.load %arg5[%c0_13, %c0_14] : memref<4x1xf32, #tpu.memory_space<vmem>>, vector<4x1xf32>
    %29 = vector.broadcast %28 : vector<4x1xf32> to vector<4x256xf32>
    %30 = arith.addf %27, %29 : vector<4x256xf32>
    %c0_15 = arith.constant 0 : index
    %c0_16 = arith.constant 0 : index
    %c0_17 = arith.constant 0 : index
    %31 = vector.load %arg6[%c0_15, %c0_16, %c0_17] : memref<1x4x256xf32, #tpu.memory_space<vmem>>, vector<1x4x256xf32>
    %32 = vector.shape_cast %31 : vector<1x4x256xf32> to vector<4x256xf32>
    %33 = vector.shape_cast %30 : vector<4x256xf32> to vector<1x4x256xf32>
    tpu.vector_store %arg6[%c0_15, %c0_16, %c0_17], %33 {strides = array<i32>} : memref<1x4x256xf32, #tpu.memory_space<vmem>>, vector<1x4x256xf32>,
    return
  }
  func.func @transform_0(%arg0: i32) -> (i32, i32, i32) {
    %c0_i32 = arith.constant 0 : i32
    %c0_i32_0 = arith.constant 0 : i32
    %c0_i32_1 = arith.constant 0 : i32
    return %arg0, %c0_i32, %c0_i32_0 : i32, i32, i32
  }
  func.func @transform_1(%arg0: i32) -> (i32, i32) {
    %c0_i32 = arith.constant 0 : i32
    %c0_i32_0 = arith.constant 0 : i32
    %c0_i32_1 = arith.constant 0 : i32
    return %c0_i32, %c0_i32_0 : i32, i32
  }
  func.func @transform_2(%arg0: i32) -> (i32, i32) {
    %c0_i32 = arith.constant 0 : i32
    %c0_i32_0 = arith.constant 0 : i32
    %c0_i32_1 = arith.constant 0 : i32
    return %c0_i32, %c0_i32_0 : i32, i32
  }
  func.func @transform_3(%arg0: i32) -> (i32, i32) {
    %c0_i32 = arith.constant 0 : i32
    %c0_i32_0 = arith.constant 0 : i32
    %c0_i32_1 = arith.constant 0 : i32
    return %c0_i32, %c0_i32_0 : i32, i32
  }
  func.func @transform_4(%arg0: i32) -> (i32, i32) {
    %c0_i32 = arith.constant 0 : i32
    %c0_i32_0 = arith.constant 0 : i32
    %c0_i32_1 = arith.constant 0 : i32
    return %c0_i32, %c0_i32_0 : i32, i32
  }
  func.func @transform_5(%arg0: i32) -> (i32, i32, i32) {
    %c0_i32 = arith.constant 0 : i32
    %c0_i32_0 = arith.constant 0 : i32
    %c0_i32_1 = arith.constant 0 : i32
    return %arg0, %c0_i32, %c0_i32_0 : i32, i32, i32
  }
}

</mosaic_0001>

<bundles_post_ra>
// kernel: umamba_bot_forward.19
= control target key start
LH: loop header
LB: loop body
LE: loop exit
PB: predicated region body
PF: predicated region fallthrough
CT: control target
= control target key end

     0   :  { %s485_s18 = smov 0   ;;  %s525_s0 = inlined_call_operand.vmem [shape: f32[2,36,256], index: 0, kind: input, shape index: {}]   ;;  %s526_s1 = inlined_call_operand.vmem [shape: f32[4,36], index: 1, kind: input, shape index: {}]   ;;  %s527_s2 = inlined_call_operand.vmem [shape: f32[4,1], index: 2, kind: input, shape index: {}]   ;;  %s528_s3 = inlined_call_operand.vmem [shape: f32[4,1], index: 3, kind: input, shape index: {}]   ;;  %s529_s4 = inlined_call_operand.vmem [shape: f32[4,1], index: 4, kind: input, shape index: {}]   ;;  %s530_s5 = inlined_call_operand.vmem [shape: f32[2,4,256], index: 5, kind: output, shape index: {}]  }
   0x1 LB: > { %s412_s19 = sadd.s32 4294967295, %s451_s18   ;;  %p416_p0 = scmp.ge.s32.totalorder %s451_s18, 1  ;;  %s451_s18 = sphi %s485_s18, %s15_s18  }
   0x2   : > { %p187_p1 = scmp.lt.s32.totalorder %s451_s18, 3 }
   0x4   : > { %p188_p2 = pnand %p416_p0, %p187_p1 }
   0x5   : > { %p215_p3 = scmp.lt.s32.totalorder (!%p188_p2), %s412_s19, 1 }
   0x6   : > { %191 = sbr.rel (%p188_p2) target bundleno = 432 (0x1b0), region = 40 }
   0xb   : > { %v453_v0 = vmov 0   ;;  %v236_v1 = vld [vmem:[%s527_s2] sm:$0xf]  ;;  %s532_s19 = smov (!%p215_p3, %s412_s19), 1  ;;  %vm246_vm0 = vcmask 1043456   ;;  %vm242_vm1 = vcmask 293888  }
   0xc   : > { %438 = vset.pattern.permute.xlu0 %v453_v0  ;;  %439 = vset.pattern.permute.xlu1 %v453_v0  ;;  %s427_s22 = smul.u32 80, %s532_s19  ;;  %v225_v12 = vld [vmem:[%s526_s1] sm:$0xf]  ;;  %v454_v21 = vmov 256.0   ;;  %s426_s7 = sshll.u32 %s532_s19, 3 }
   0xd   : > { %239 = vperm.xlu0 %438, %v236_v1   ;;  %440 = vset.pattern.permute.xlu2 %v453_v0  ;;  %441 = vrcp.f32 %v454_v21  ;;  %v337_v32 = vld [vmem:[%s529_s4] sm:$0xf]  ;;  %s224_s10 = scalar_lea.vmem %s530_s5, %s426_s7 }
   0xe   : > { %s219_s25 = scalar_lea.vmem %s525_s0, %s427_s22  ;;  %340 = vperm.xlu2 %440, %v337_v32   ;;  %v329_v38 = vld [vmem:[%s528_s3] sm:$0xf] }
   0xf   : > { %v234_v2 = vld [vmem:[%s219_s25 + $0x40] sm:$0xf]  ;;  %v235_v3 = vld [vmem:[%s219_s25 + $0x48] sm:$0xf]  ;;  %v232_v4 = vld [vmem:[%s219_s25 + $0x30] sm:$0xff] }
  0x10   : > { %420 = vmatpush.msk.msra.mxu0 %vm246_vm0, %v234_v2  ;;  %422 = vmatpush.msk.msra.mxu1 %vm246_vm0, %v235_v3  ;;  %v233_v5 = vld [vmem:[%s219_s25 + $0x38] sm:$0xff]  ;;  %v230_v6 = vld [vmem:[%s219_s25 + $0x20] sm:$0xff]  ;;  %v231_v7 = vld [vmem:[%s219_s25 + $0x28] sm:$0xff] }
  0x11   : > { %v228_v8 = vld [vmem:[%s219_s25 + $0x10] sm:$0xff]  ;;  %v229_v9 = vld [vmem:[%s219_s25 + $0x18] sm:$0xff]  ;;  %v226_v10 = vld [vmem:[%s219_s25] sm:$0xff] }
  0x12   : > { %265 = vmatpush.msra.mxu0 %v232_v4  ;;  %285 = vmatpush.msra.mxu1 %v233_v5  ;;  %v227_v11 = vld [vmem:[%s219_s25 + $0x8] sm:$0xff] }
  0x13   : > { %v442_v22 = vpop.eup %441 }
  0x14   : > { %266 = vmatpush.msra.mxu0 %v230_v6  ;;  %286 = vmatpush.msra.mxu1 %v231_v7  ;;  %v299_v23 = vmul.f32 256.0, %v442_v22  ;;  %vm303_vm2 = vweird.f32 %v442_v22 }
  0x16   : > { %267 = vmatpush.msra.mxu0 %v228_v8  ;;  %287 = vmatpush.msra.mxu1 %v229_v9  ;;  %v300_v24 = vsub.f32 1.0, %v299_v23 }
  0x18   : > { %268 = vmatpush.msra.mxu0 %v226_v10  ;;  %288 = vmatpush.msra.mxu1 %v227_v11  ;;  %v301_v25 = vmul.f32 %v442_v22, %v300_v24 }
  0x19   : > { %421 = vmatmul.msk.f32.vlgmr.msra.gmra.mxu0 %vm242_vm1, %v225_v12  ;;  %423 = vmatmul.msk.f32.vlgmr.msra.gmra.mxu1 %vm242_vm1, %v225_v12 }
  0x1a   : > { %v302_v26 = vadd.f32 %v442_v22, %v301_v25 }
  0x1c   : > { %v304_v27 = vsel %vm303_vm2, %v442_v22, %v302_v26 }
  0x68   : > { %v341_v52 = vpop.permute.xlu2 %340 }
  0x7f   : > { %v240_v13 = vpop.permute.xlu0 %239 }
  0x96   : > { %v270_v14 = vpop.f32.mrf.mxu0  ;;  %v290_v15 = vpop.f32.mrf.mxu1 }
  0x97   : > { %v271_v16 = vadd.f32 %v270_v14, %v240_v13  ;;  %v291_v17 = vadd.f32 %v290_v15, %v240_v13 }
  0x99   : > { %v293_v18 = vsel %vm246_vm0, %v271_v16, 0.0  ;;  %v294_v19 = vsel %vm246_vm0, %v291_v17, 0.0 }
  0x9a   : > { %v295_v20 = vadd.f32 %v294_v19, %v293_v18 }
  0x9c   : > { %296 = vadd.xlane.f32.xlu0 %v295_v20 }
 0x10f   : > { %v297_v28 = vpop.xlane.xlu0 %296 }
 0x110   : > { %v305_v29 = vmul.f32 %v304_v27, %v297_v28 }
 0x112   : > { %v306_v30 = vsub.f32 %v271_v16, %v305_v29  ;;  %v307_v31 = vsub.f32 %v291_v17, %v305_v29 }
 0x114   : > { %v308_v33 = vmul.f32 %v306_v30, %v306_v30  ;;  %v309_v34 = vmul.f32 %v307_v31, %v307_v31 }
 0x116   : > { %v310_v35 = vsel %vm246_vm0, %v308_v33, 0.0  ;;  %v311_v36 = vsel %vm246_vm0, %v309_v34, 0.0 }
 0x117   : > { %v312_v37 = vadd.f32 %v311_v36, %v310_v35 }
 0x119   : > { %313 = vadd.xlane.f32.xlu1 %v312_v37 }
 0x132   : > { %332 = vperm.xlu1 %439, %v329_v38  }
 0x18c   : > { %v314_v39 = vpop.xlane.xlu1 %313 }
 0x18d   : > { %v315_v40 = vmul.f32 %v314_v39, %v304_v27 }
 0x18f   : > { %v316_v41 = vadd.f32 1e-05, %v315_v40 }
 0x191   : > { %443 = vrsqrt.f32 %v316_v41  ;;  %vm323_vm4 = vweird.f32 %v316_v41 }
 0x197   : > { %v444_v42 = vpop.eup %443 }
 0x198   : > { %v318_v43 = vmul.f32 %v444_v42, %v316_v41  ;;  %vm324_vm3 = vweird.f32 %v444_v42 }
 0x199   : > { %vm325_vm5 = vmor %vm323_vm4, %vm324_vm3 }
 0x19a   : > { %v319_v44 = vmul.f32 %v444_v42, %v318_v43 }
 0x19c   : > { %v320_v45 = vmul.f32 0.5, %v319_v44 }
 0x19e   : > { %v321_v46 = vsub.f32 1.5, %v320_v45 }
 0x1a0   : > { %v322_v47 = vmul.f32 %v444_v42, %v321_v46 }
 0x1a2   : > { %v326_v48 = vsel %vm325_vm5, %v444_v42, %v322_v47 }
 0x1a3   : > { %v327_v49 = vmul.f32 %v326_v48, %v306_v30  ;;  %v328_v50 = vmul.f32 %v326_v48, %v307_v31 }
 0x1a4   : > { %v333_v51 = vpop.permute.xlu1 %332 }
 0x1a5   : > { %v335_v53 = vmul.f32 %v333_v51, %v327_v49  ;;  %v336_v54 = vmul.f32 %v333_v51, %v328_v50 }
 0x1a7   : > { %v343_v55 = vadd.f32 %v341_v52, %v335_v53  ;;  %v344_v56 = vadd.f32 %v341_v52, %v336_v54 }
 0x1a9   : > { %vm346_vm6 = vcmp.ge.f32.partialorder %v344_v56, 0.0  ;;  %v347_v57 = vmul.f32 0.01, %v343_v55  ;;  %v348_v58 = vmul.f32 0.01, %v344_v56  ;;  %vm345_vm7 = vcmp.ge.f32.partialorder %v343_v55, 0.0 }
 0x1ab   : > { %v350_v59 = vsel %vm346_vm6, %v344_v56, %v348_v58  ;;  %v349_v61 = vsel %vm345_vm7, %v343_v55, %v347_v57 }
 0x1ac   : > { %v353_v60 = vrot.slane %v350_v59, 4 }
 0x1ae   : > { %v354_v62 = vsel %vm246_vm0, %v349_v61, %v353_v60 }
 0x1af   : > { %356 = vst [vmem:[%s224_s10] sm:$0xff] %v354_v62 }
 0x1b0 PF: > { %s15_s18 = sadd.s32 1, %s451_s18  }
 0x1b1   : > { %p12_p4 = scmp.ge.s32.totalorder %s15_s18, 4  }
 0x1b3   :  { %14 = sbr.rel (!%p12_p4) target bundleno = 1 (0x1), region = 70 }

// kernel: umamba_bot_forward.20
= control target key start
LH: loop header
LB: loop body
LE: loop exit
PB: predicated region body
PF: predicated region fallthrough
CT: control target
= control target key end

     0   :  { %s561_s21 = smov 0   ;;  %s608_s0 = inlined_call_operand.vmem [shape: f32[2,36,256], index: 0, kind: input, shape index: {}]   ;;  %s609_s1 = inlined_call_operand.vmem [shape: f32[4,36], index: 1, kind: input, shape index: {}]   ;;  %s610_s2 = inlined_call_operand.vmem [shape: f32[4,1], index: 2, kind: input, shape index: {}]   ;;  %s611_s3 = inlined_call_operand.vmem [shape: f32[4,1], index: 3, kind: input, shape index: {}]   ;;  %s612_s4 = inlined_call_operand.vmem [shape: f32[4,1], index: 4, kind: input, shape index: {}]   ;;  %s613_s5 = inlined_call_operand.vmem [shape: f32[2,4,256], index: 5, kind: input, shape index: {}]   ;;  %s614_s6 = inlined_call_operand.vmem [shape: f32[2,4,256], index: 6, kind: output, shape index: {}]  }
   0x1 LB: > { %s480_s22 = sadd.s32 4294967295, %s522_s21   ;;  %p484_p0 = scmp.ge.s32.totalorder %s522_s21, 1  ;;  %s522_s21 = sphi %s561_s21, %s16_s21  }
   0x2   : > { %p222_p1 = scmp.lt.s32.totalorder %s522_s21, 3 }
   0x4   : > { %p223_p2 = pnand %p484_p0, %p222_p1 }
   0x5   : > { %p257_p3 = scmp.lt.s32.totalorder (!%p223_p2), %s480_s22, 1 }
   0x6   : > { %226 = sbr.rel (%p223_p2) target bundleno = 434 (0x1b2), region = 44 }
   0xb   : > { %v524_v0 = vmov 0   ;;  %v283_v1 = vld [vmem:[%s610_s2] sm:$0xf]  ;;  %s616_s22 = smov (!%p257_p3, %s480_s22), 1  ;;  %vm293_vm0 = vcmask 1043456   ;;  %vm289_vm1 = vcmask 293888  }
   0xc   : > { %509 = vset.pattern.permute.xlu0 %v524_v0  ;;  %510 = vset.pattern.permute.xlu1 %v524_v0  ;;  %s498_s25 = smul.u32 80, %s616_s22  ;;  %v272_v12 = vld [vmem:[%s609_s1] sm:$0xf]  ;;  %v525_v21 = vmov 256.0   ;;  %s496_s11 = sshll.u32 %s616_s22, 3 }
   0xd   : > { %286 = vperm.xlu0 %509, %v283_v1   ;;  %511 = vset.pattern.permute.xlu2 %v524_v0  ;;  %512 = vrcp.f32 %v525_v21  ;;  %v384_v32 = vld [vmem:[%s612_s4] sm:$0xf]  ;;  %s266_s14 = scalar_lea.vmem %s613_s5, %s496_s11  ;;  %s271_s17 = scalar_lea.vmem %s614_s6, %s496_s11 }
   0xe   : > { %s261_s28 = scalar_lea.vmem %s608_s0, %s498_s25  ;;  %387 = vperm.xlu2 %511, %v384_v32   ;;  %v376_v38 = vld [vmem:[%s611_s3] sm:$0xf] }
   0xf   : > { %v281_v2 = vld [vmem:[%s261_s28 + $0x40] sm:$0xf]  ;;  %v282_v3 = vld [vmem:[%s261_s28 + $0x48] sm:$0xf]  ;;  %v279_v4 = vld [vmem:[%s261_s28 + $0x30] sm:$0xff] }
  0x10   : > { %490 = vmatpush.msk.msra.mxu0 %vm293_vm0, %v281_v2  ;;  %492 = vmatpush.msk.msra.mxu1 %vm293_vm0, %v282_v3  ;;  %v280_v5 = vld [vmem:[%s261_s28 + $0x38] sm:$0xff]  ;;  %v277_v6 = vld [vmem:[%s261_s28 + $0x20] sm:$0xff]  ;;  %v278_v7 = vld [vmem:[%s261_s28 + $0x28] sm:$0xff] }
  0x11   : > { %v275_v8 = vld [vmem:[%s261_s28 + $0x10] sm:$0xff]  ;;  %v276_v9 = vld [vmem:[%s261_s28 + $0x18] sm:$0xff]  ;;  %v273_v10 = vld [vmem:[%s261_s28] sm:$0xff] }
  0x12   : > { %312 = vmatpush.msra.mxu0 %v279_v4  ;;  %332 = vmatpush.msra.mxu1 %v280_v5  ;;  %v274_v11 = vld [vmem:[%s261_s28 + $0x8] sm:$0xff]  ;;  %v392_v39 = vld [vmem:[%s266_s14] sm:$0xff] }
  0x13   : > { %v513_v22 = vpop.eup %512  ;;  %394 = vst [vmem:[#allocation1] ss:$2 sm:$0xff] %v392_v39 }
  0x14   : > { %313 = vmatpush.msra.mxu0 %v277_v6  ;;  %333 = vmatpush.msra.mxu1 %v278_v7  ;;  %v346_v23 = vmul.f32 256.0, %v513_v22  ;;  %vm350_vm2 = vweird.f32 %v513_v22 }
  0x16   : > { %314 = vmatpush.msra.mxu0 %v275_v8  ;;  %334 = vmatpush.msra.mxu1 %v276_v9  ;;  %v347_v24 = vsub.f32 1.0, %v346_v23 }
  0x18   : > { %315 = vmatpush.msra.mxu0 %v273_v10  ;;  %335 = vmatpush.msra.mxu1 %v274_v11  ;;  %v348_v25 = vmul.f32 %v513_v22, %v347_v24 }
  0x19   : > { %491 = vmatmul.msk.f32.vlgmr.msra.gmra.mxu0 %vm289_vm1, %v272_v12  ;;  %493 = vmatmul.msk.f32.vlgmr.msra.gmra.mxu1 %vm289_vm1, %v272_v12 }
  0x1a   : > { %v349_v26 = vadd.f32 %v513_v22, %v348_v25  ;;  %v395_v56 = vld.sshfl [vmem:[#allocation1] sm:$0xff pattern:$0x75316420]  ;;  %v396_v57 = vld.sshfl [vmem:[#allocation1 + $0x8] sm:$0xff pattern:$0x75316420] }
  0x1c   : > { %v351_v27 = vsel %vm350_vm2, %v513_v22, %v349_v26 }
  0x68   : > { %v388_v53 = vpop.permute.xlu2 %387 }
  0x7f   : > { %v287_v13 = vpop.permute.xlu0 %286 }
  0x96   : > { %v317_v14 = vpop.f32.mrf.mxu0  ;;  %v337_v15 = vpop.f32.mrf.mxu1 }
  0x97   : > { %v318_v16 = vadd.f32 %v317_v14, %v287_v13  ;;  %v338_v17 = vadd.f32 %v337_v15, %v287_v13 }
  0x99   : > { %v340_v18 = vsel %vm293_vm0, %v318_v16, 0.0  ;;  %v341_v19 = vsel %vm293_vm0, %v338_v17, 0.0 }
  0x9a   : > { %v342_v20 = vadd.f32 %v341_v19, %v340_v18 }
  0x9c   : > { %343 = vadd.xlane.f32.xlu0 %v342_v20 }
 0x10f   : > { %v344_v28 = vpop.xlane.xlu0 %343 }
 0x110   : > { %v352_v29 = vmul.f32 %v351_v27, %v344_v28 }
 0x112   : > { %v353_v30 = vsub.f32 %v318_v16, %v352_v29  ;;  %v354_v31 = vsub.f32 %v338_v17, %v352_v29 }
 0x114   : > { %v355_v33 = vmul.f32 %v353_v30, %v353_v30  ;;  %v356_v34 = vmul.f32 %v354_v31, %v354_v31 }
 0x116   : > { %v357_v35 = vsel %vm293_vm0, %v355_v33, 0.0  ;;  %v358_v36 = vsel %vm293_vm0, %v356_v34, 0.0 }
 0x117   : > { %v359_v37 = vadd.f32 %v358_v36, %v357_v35 }
 0x119   : > { %360 = vadd.xlane.f32.xlu1 %v359_v37 }
 0x132   : > { %379 = vperm.xlu1 %510, %v376_v38  }
 0x18c   : > { %v361_v40 = vpop.xlane.xlu1 %360 }
 0x18d   : > { %v362_v41 = vmul.f32 %v361_v40, %v351_v27 }
 0x18f   : > { %v363_v42 = vadd.f32 1e-05, %v362_v41 }
 0x191   : > { %514 = vrsqrt.f32 %v363_v42  ;;  %vm370_vm4 = vweird.f32 %v363_v42 }
 0x197   : > { %v515_v43 = vpop.eup %514 }
 0x198   : > { %v365_v44 = vmul.f32 %v515_v43, %v363_v42  ;;  %vm371_vm3 = vweird.f32 %v515_v43 }
 0x199   : > { %vm372_vm5 = vmor %vm370_vm4, %vm371_vm3 }
 0x19a   : > { %v366_v45 = vmul.f32 %v515_v43, %v365_v44 }
 0x19c   : > { %v367_v46 = vmul.f32 0.5, %v366_v45 }
 0x19e   : > { %v368_v47 = vsub.f32 1.5, %v367_v46 }
 0x1a0   : > { %v369_v48 = vmul.f32 %v515_v43, %v368_v47 }
 0x1a2   : > { %v373_v49 = vsel %vm372_vm5, %v515_v43, %v369_v48 }
 0x1a3   : > { %v374_v50 = vmul.f32 %v373_v49, %v353_v30  ;;  %v375_v51 = vmul.f32 %v373_v49, %v354_v31 }
 0x1a4   : > { %v380_v52 = vpop.permute.xlu1 %379 }
 0x1a5   : > { %v382_v54 = vmul.f32 %v380_v52, %v374_v50  ;;  %v383_v55 = vmul.f32 %v380_v52, %v375_v51 }
 0x1a7   : > { %v390_v58 = vadd.f32 %v388_v53, %v382_v54  ;;  %v391_v59 = vadd.f32 %v388_v53, %v383_v55 }
 0x1a9   : > { %v399_v60 = vadd.f32 %v395_v56, %v390_v58  ;;  %v400_v61 = vadd.f32 %v396_v57, %v391_v59 }
 0x1ab   : > { %vm402_vm6 = vcmp.ge.f32.partialorder %v400_v61, 0.0  ;;  %v403_v62 = vmul.f32 0.01, %v399_v60  ;;  %v404_v63 = vmul.f32 0.01, %v400_v61  ;;  %vm401_vm7 = vcmp.ge.f32.partialorder %v399_v60, 0.0 }
 0x1ad   : > { %v406_v0 = vsel %vm402_vm6, %v400_v61, %v404_v63  ;;  %v405_v2 = vsel %vm401_vm7, %v399_v60, %v403_v62 }
 0x1ae   : > { %v409_v1 = vrot.slane %v406_v0, 4 }
 0x1b0   : > { %v410_v3 = vsel %vm293_vm0, %v405_v2, %v409_v1 }
 0x1b1   : > { %412 = vst [vmem:[%s271_s17] sm:$0xff] %v410_v3 }
 0x1b2 PF: > { %s16_s21 = sadd.s32 1, %s522_s21  }
 0x1b3   : > { %p13_p4 = scmp.ge.s32.totalorder %s16_s21, 4  }
 0x1b5   :  { %15 = sbr.rel (!%p13_p4) target bundleno = 1 (0x1), region = 77 }

// kernel: umamba_bot_forward.18
= control target key start
LH: loop header
LB: loop body
LE: loop exit
PB: predicated region body
PF: predicated region fallthrough
CT: control target
= control target key end

     0   :  { %s482_s18 = smov 0   ;;  %s520_s0 = inlined_call_operand.vmem [shape: f32[2,18,256], index: 0, kind: input, shape index: {}]   ;;  %s521_s1 = inlined_call_operand.vmem [shape: f32[4,18], index: 1, kind: input, shape index: {}]   ;;  %s522_s2 = inlined_call_operand.vmem [shape: f32[4,1], index: 2, kind: input, shape index: {}]   ;;  %s523_s3 = inlined_call_operand.vmem [shape: f32[4,1], index: 3, kind: input, shape index: {}]   ;;  %s524_s4 = inlined_call_operand.vmem [shape: f32[4,1], index: 4, kind: input, shape index: {}]   ;;  %s525_s5 = inlined_call_operand.vmem [shape: f32[2,4,256], index: 5, kind: output, shape index: {}]  }
   0x1 LB: > { %s409_s19 = sadd.s32 4294967295, %s448_s18   ;;  %p413_p0 = scmp.ge.s32.totalorder %s448_s18, 1  ;;  %s448_s18 = sphi %s482_s18, %s15_s18  }
   0x2   : > { %p187_p1 = scmp.lt.s32.totalorder %s448_s18, 3 }
   0x4   : > { %p188_p2 = pnand %p413_p0, %p187_p1 }
   0x5   : > { %p215_p3 = scmp.lt.s32.totalorder (!%p188_p2), %s409_s19, 1 }
   0x6   : > { %191 = sbr.rel (%p188_p2) target bundleno = 428 (0x1ac), region = 40 }
   0xb   : > { %v450_v0 = vmov 0   ;;  %v232_v1 = vld [vmem:[%s522_s2] sm:$0xf]  ;;  %s527_s19 = smov (!%p215_p3, %s409_s19), 1  ;;  %vm242_vm0 = vcmask 1041408   ;;  %vm238_vm1 = vcmask 146432  }
   0xc   : > { %435 = vset.pattern.permute.xlu0 %v450_v0  ;;  %436 = vset.pattern.permute.xlu1 %v450_v0  ;;  %s424_s22 = smul.u32 48, %s527_s19  ;;  %v225_v8 = vld [vmem:[%s521_s1] sm:$0xf]  ;;  %vm289_vm2 = vcmask 1043456   ;;  %v451_v17 = vmov 256.0   ;;  %s423_s7 = sshll.u32 %s527_s19, 3 }
   0xd   : > { %235 = vperm.xlu0 %435, %v232_v1   ;;  %437 = vset.pattern.permute.xlu2 %v450_v0  ;;  %438 = vrcp.f32 %v451_v17  ;;  %v334_v28 = vld [vmem:[%s524_s4] sm:$0xf]  ;;  %s224_s10 = scalar_lea.vmem %s525_s5, %s423_s7 }
   0xe   : > { %s219_s25 = scalar_lea.vmem %s520_s0, %s424_s22  ;;  %337 = vperm.xlu2 %437, %v334_v28   ;;  %v326_v34 = vld [vmem:[%s523_s3] sm:$0xf] }
   0xf   : > { %v230_v2 = vld [vmem:[%s219_s25 + $0x20] sm:$0x3]  ;;  %v231_v3 = vld [vmem:[%s219_s25 + $0x28] sm:$0x3]  ;;  %v228_v4 = vld [vmem:[%s219_s25 + $0x10] sm:$0xff] }
  0x10   : > { %417 = vmatpush.msk.msra.mxu0 %vm242_vm0, %v230_v2  ;;  %419 = vmatpush.msk.msra.mxu1 %vm242_vm0, %v231_v3  ;;  %v229_v5 = vld [vmem:[%s219_s25 + $0x18] sm:$0xff]  ;;  %v226_v6 = vld [vmem:[%s219_s25] sm:$0xff]  ;;  %v227_v7 = vld [vmem:[%s219_s25 + $0x8] sm:$0xff] }
  0x12   : > { %263 = vmatpush.msra.mxu0 %v228_v4  ;;  %283 = vmatpush.msra.mxu1 %v229_v5 }
  0x13   : > { %v439_v18 = vpop.eup %438 }
  0x14   : > { %264 = vmatpush.msra.mxu0 %v226_v6  ;;  %284 = vmatpush.msra.mxu1 %v227_v7  ;;  %v296_v19 = vmul.f32 256.0, %v439_v18  ;;  %vm300_vm3 = vweird.f32 %v439_v18 }
  0x15   : > { %418 = vmatmul.msk.f32.vlgmr.msra.gmra.mxu0 %vm238_vm1, %v225_v8  ;;  %420 = vmatmul.msk.f32.vlgmr.msra.gmra.mxu1 %vm238_vm1, %v225_v8 }
  0x16   : > { %v297_v20 = vsub.f32 1.0, %v296_v19 }
  0x18   : > { %v298_v21 = vmul.f32 %v439_v18, %v297_v20 }
  0x1a   : > { %v299_v22 = vadd.f32 %v439_v18, %v298_v21 }
  0x1c   : > { %v301_v23 = vsel %vm300_vm3, %v439_v18, %v299_v22 }
  0x68   : > { %v338_v48 = vpop.permute.xlu2 %337 }
  0x7f   : > { %v236_v9 = vpop.permute.xlu0 %235 }
  0x92   : > { %v266_v10 = vpop.f32.mrf.mxu0  ;;  %v286_v11 = vpop.f32.mrf.mxu1 }
  0x93   : > { %v267_v12 = vadd.f32 %v266_v10, %v236_v9  ;;  %v287_v13 = vadd.f32 %v286_v11, %v236_v9 }
  0x95   : > { %v290_v14 = vsel %vm289_vm2, %v267_v12, 0.0  ;;  %v291_v15 = vsel %vm289_vm2, %v287_v13, 0.0 }
  0x96   : > { %v292_v16 = vadd.f32 %v291_v15, %v290_v14 }
  0x98   : > { %293 = vadd.xlane.f32.xlu0 %v292_v16 }
 0x10b   : > { %v294_v24 = vpop.xlane.xlu0 %293 }
 0x10c   : > { %v302_v25 = vmul.f32 %v301_v23, %v294_v24 }
 0x10e   : > { %v303_v26 = vsub.f32 %v267_v12, %v302_v25  ;;  %v304_v27 = vsub.f32 %v287_v13, %v302_v25 }
 0x110   : > { %v305_v29 = vmul.f32 %v303_v26, %v303_v26  ;;  %v306_v30 = vmul.f32 %v304_v27, %v304_v27 }
 0x112   : > { %v307_v31 = vsel %vm289_vm2, %v305_v29, 0.0  ;;  %v308_v32 = vsel %vm289_vm2, %v306_v30, 0.0 }
 0x113   : > { %v309_v33 = vadd.f32 %v308_v32, %v307_v31 }
 0x115   : > { %310 = vadd.xlane.f32.xlu1 %v309_v33 }
 0x12e   : > { %329 = vperm.xlu1 %436, %v326_v34  }
 0x188   : > { %v311_v35 = vpop.xlane.xlu1 %310 }
 0x189   : > { %v312_v36 = vmul.f32 %v311_v35, %v301_v23 }
 0x18b   : > { %v313_v37 = vadd.f32 1e-05, %v312_v36 }
 0x18d   : > { %440 = vrsqrt.f32 %v313_v37  ;;  %vm320_vm5 = vweird.f32 %v313_v37 }
 0x193   : > { %v441_v38 = vpop.eup %440 }
 0x194   : > { %v315_v39 = vmul.f32 %v441_v38, %v313_v37  ;;  %vm321_vm4 = vweird.f32 %v441_v38 }
 0x195   : > { %vm322_vm6 = vmor %vm320_vm5, %vm321_vm4 }
 0x196   : > { %v316_v40 = vmul.f32 %v441_v38, %v315_v39 }
 0x198   : > { %v317_v41 = vmul.f32 0.5, %v316_v40 }
 0x19a   : > { %v318_v42 = vsub.f32 1.5, %v317_v41 }
 0x19c   : > { %v319_v43 = vmul.f32 %v441_v38, %v318_v42 }
 0x19e   : > { %v323_v44 = vsel %vm322_vm6, %v441_v38, %v319_v43 }
 0x19f   : > { %v324_v45 = vmul.f32 %v323_v44, %v303_v26  ;;  %v325_v46 = vmul.f32 %v323_v44, %v304_v27 }
 0x1a0   : > { %v330_v47 = vpop.permute.xlu1 %329 }
 0x1a1   : > { %v332_v49 = vmul.f32 %v330_v47, %v324_v45  ;;  %v333_v50 = vmul.f32 %v330_v47, %v325_v46 }
 0x1a3   : > { %v340_v51 = vadd.f32 %v338_v48, %v332_v49  ;;  %v341_v52 = vadd.f32 %v338_v48, %v333_v50 }
 0x1a5   : > { %vm343_vm7 = vcmp.ge.f32.partialorder %v341_v52, 0.0  ;;  %v344_v53 = vmul.f32 0.01, %v340_v51  ;;  %v345_v54 = vmul.f32 0.01, %v341_v52  ;;  %vm342_vm8 = vcmp.ge.f32.partialorder %v340_v51, 0.0 }
 0x1a7   : > { %v347_v55 = vsel %vm343_vm7, %v341_v52, %v345_v54  ;;  %v346_v57 = vsel %vm342_vm8, %v340_v51, %v344_v53 }
 0x1a8   : > { %v350_v56 = vrot.slane %v347_v55, 4 }
 0x1aa   : > { %v351_v58 = vsel %vm289_vm2, %v346_v57, %v350_v56 }
 0x1ab   : > { %353 = vst [vmem:[%s224_s10] sm:$0xff] %v351_v58 }
 0x1ac PF: > { %s15_s18 = sadd.s32 1, %s448_s18  }
 0x1ad   : > { %p12_p4 = scmp.ge.s32.totalorder %s15_s18, 4  }
 0x1af   :  { %14 = sbr.rel (!%p12_p4) target bundleno = 1 (0x1), region = 70 }

// kernel: umamba_bot_forward.21
= control target key start
LH: loop header
LB: loop body
LE: loop exit
PB: predicated region body
PF: predicated region fallthrough
CT: control target
= control target key end

     0   :  { %s433_s18 = smov 0   ;;  %s469_s0 = inlined_call_operand.vmem [shape: f32[2,36,64], index: 0, kind: input, shape index: {}]   ;;  %s470_s1 = inlined_call_operand.vmem [shape: f32[8,36], index: 1, kind: input, shape index: {}]   ;;  %s471_s2 = inlined_call_operand.vmem [shape: f32[8,1], index: 2, kind: input, shape index: {}]   ;;  %s472_s3 = inlined_call_operand.vmem [shape: f32[8,1], index: 3, kind: input, shape index: {}]   ;;  %s473_s4 = inlined_call_operand.vmem [shape: f32[8,1], index: 4, kind: input, shape index: {}]   ;;  %s474_s5 = inlined_call_operand.vmem [shape: f32[2,8,64], index: 5, kind: output, shape index: {}]  }
   0x1 LB: > { %s364_s19 = sadd.s32 4294967295, %s399_s18   ;;  %p368_p0 = scmp.ge.s32.totalorder %s399_s18, 1  ;;  %s399_s18 = sphi %s433_s18, %s15_s18  }
   0x2   : > { %p187_p1 = scmp.lt.s32.totalorder %s399_s18, 3 }
   0x4   : > { %p188_p2 = pnand %p368_p0, %p187_p1 }
   0x5   : > { %p214_p3 = scmp.lt.s32.totalorder (!%p188_p2), %s364_s19, 1 }
   0x6   : > { %191 = sbr.rel (%p188_p2) target bundleno = 425 (0x1a9), region = 40 }
   0xb   : > { %v229_v0 = vld [vmem:[%s471_s2] sm:$0xff]  ;;  %v401_v1 = vmov 0   ;;  %s476_s19 = smov (!%p214_p3, %s364_s19), 1  ;;  %vm239_vm0 = vcmask 1043456   ;;  %vm235_vm1 = vcmask 293888   ;;  %vm263_vm2 = vcmask 523264  }
   0xc   : > { %386 = vset.pattern.permute.xlu0 %v401_v1  ;;  %387 = vset.pattern.permute.xlu1 %v401_v1  ;;  %s375_s22 = smul.u32 40, %s476_s19  ;;  %v223_v7 = vld [vmem:[%s470_s1] sm:$0xff]  ;;  %v402_v12 = vmov 64.0   ;;  %s370_s7 = sshll.u32 %s476_s19, 3 }
   0xd   : > { %232 = vperm.xlu0 %386, %v229_v0   ;;  %388 = vset.pattern.permute.xlu2 %v401_v1  ;;  %389 = vrcp.f32 %v402_v12  ;;  %v300_v21 = vld [vmem:[%s473_s4] sm:$0xff]  ;;  %s222_s10 = scalar_lea.vmem %s474_s5, %s370_s7 }
   0xe   : > { %s218_s25 = scalar_lea.vmem %s469_s0, %s375_s22  ;;  %303 = vperm.xlu2 %388, %v300_v21   ;;  %v293_v25 = vld [vmem:[%s472_s3] sm:$0xff] }
   0xf   : > { %v228_v2 = vld [vmem:[%s218_s25 + $0x20] sm:$0xf]  ;;  %v227_v3 = vld [vmem:[%s218_s25 + $0x18] sm:$0xff]  ;;  %v226_v4 = vld [vmem:[%s218_s25 + $0x10] sm:$0xff] }
  0x10   : > { %371 = vmatpush.msk.msra.mxu0 %vm239_vm0, %v228_v2  ;;  %v225_v5 = vld [vmem:[%s218_s25 + $0x8] sm:$0xff]  ;;  %v224_v6 = vld [vmem:[%s218_s25] sm:$0xff] }
  0x12   : > { %255 = vmatpush.msra.mxu0 %v227_v3 }
  0x13   : > { %v390_v13 = vpop.eup %389 }
  0x14   : > { %256 = vmatpush.msra.mxu0 %v226_v4  ;;  %v268_v14 = vmul.f32 64.0, %v390_v13  ;;  %vm272_vm3 = vweird.f32 %v390_v13 }
  0x16   : > { %257 = vmatpush.msra.mxu0 %v225_v5  ;;  %v269_v15 = vsub.f32 1.0, %v268_v14 }
  0x18   : > { %258 = vmatpush.msra.mxu0 %v224_v6  ;;  %v270_v16 = vmul.f32 %v390_v13, %v269_v15 }
  0x19   : > { %372 = vmatmul.msk.f32.vlgmr.msra.gmra.mxu0 %vm235_vm1, %v223_v7 }
  0x1a   : > { %v271_v17 = vadd.f32 %v390_v13, %v270_v16 }
  0x1c   : > { %v273_v18 = vsel %vm272_vm3, %v390_v13, %v271_v17 }
  0x68   : > { %v304_v38 = vpop.permute.xlu2 %303 }
  0x7f   : > { %v233_v8 = vpop.permute.xlu0 %232 }
  0x96   : > { %v260_v9 = vpop.f32.mrf.mxu0 }
  0x97   : > { %v261_v10 = vadd.f32 %v260_v9, %v233_v8 }
  0x99   : > { %v264_v11 = vsel %vm263_vm2, %v261_v10, 0.0 }
  0x9a   : > { %265 = vadd.xlane.f32.xlu0 %v264_v11 }
 0x10d   : > { %v266_v19 = vpop.xlane.xlu0 %265 }
 0x10e   : > { %v274_v20 = vmul.f32 %v273_v18, %v266_v19 }
 0x110   : > { %v275_v22 = vsub.f32 %v261_v10, %v274_v20 }
 0x112   : > { %v276_v23 = vmul.f32 %v275_v22, %v275_v22 }
 0x114   : > { %v277_v24 = vsel %vm263_vm2, %v276_v23, 0.0 }
 0x115   : > { %278 = vadd.xlane.f32.xlu1 %v277_v24 }
 0x12e   : > { %296 = vperm.xlu1 %387, %v293_v25  }
 0x188   : > { %v279_v26 = vpop.xlane.xlu1 %278 }
 0x189   : > { %v280_v27 = vmul.f32 %v279_v26, %v273_v18 }
 0x18b   : > { %v281_v28 = vadd.f32 1e-05, %v280_v27 }
 0x18d   : > { %391 = vrsqrt.f32 %v281_v28  ;;  %vm288_vm5 = vweird.f32 %v281_v28 }
 0x193   : > { %v392_v29 = vpop.eup %391 }
 0x194   : > { %v283_v30 = vmul.f32 %v392_v29, %v281_v28  ;;  %vm289_vm4 = vweird.f32 %v392_v29 }
 0x195   : > { %vm290_vm6 = vmor %vm288_vm5, %vm289_vm4 }
 0x196   : > { %v284_v31 = vmul.f32 %v392_v29, %v283_v30 }
 0x198   : > { %v285_v32 = vmul.f32 0.5, %v284_v31 }
 0x19a   : > { %v286_v33 = vsub.f32 1.5, %v285_v32 }
 0x19c   : > { %v287_v34 = vmul.f32 %v392_v29, %v286_v33 }
 0x19e   : > { %v291_v35 = vsel %vm290_vm6, %v392_v29, %v287_v34 }
 0x19f   : > { %v292_v36 = vmul.f32 %v291_v35, %v275_v22 }
 0x1a0   : > { %v297_v37 = vpop.permute.xlu1 %296 }
 0x1a1   : > { %v299_v39 = vmul.f32 %v297_v37, %v292_v36 }
 0x1a3   : > { %v306_v40 = vadd.f32 %v304_v38, %v299_v39 }
 0x1a5   : > { %vm307_vm7 = vcmp.ge.f32.partialorder %v306_v40, 0.0  ;;  %v308_v41 = vmul.f32 0.01, %v306_v40 }
 0x1a7   : > { %v309_v42 = vsel %vm307_vm7, %v306_v40, %v308_v41 }
 0x1a8   : > { %310 = vst.msk [vmem:[%s222_s10] sm:$0xff] %vm263_vm2, %v309_v42 }
 0x1a9 PF: > { %s15_s18 = sadd.s32 1, %s399_s18  }
 0x1aa   : > { %p12_p4 = scmp.ge.s32.totalorder %s15_s18, 4  }
 0x1ac   :  { %14 = sbr.rel (!%p12_p4) target bundleno = 1 (0x1), region = 70 }

// kernel: umamba_bot_forward.22
= control target key start
LH: loop header
LB: loop body
LE: loop exit
PB: predicated region body
PF: predicated region fallthrough
CT: control target
= control target key end

     0   :  { %s422_s18 = smov 0   ;;  %s458_s0 = inlined_call_operand.vmem [shape: f32[2,4,64], index: 0, kind: input, shape index: {}]   ;;  %s459_s1 = inlined_call_operand.vmem [shape: f32[8,4], index: 1, kind: input, shape index: {}]   ;;  %s460_s2 = inlined_call_operand.vmem [shape: f32[8,1], index: 2, kind: input, shape index: {}]   ;;  %s461_s3 = inlined_call_operand.vmem [shape: f32[8,1], index: 3, kind: input, shape index: {}]   ;;  %s462_s4 = inlined_call_operand.vmem [shape: f32[8,1], index: 4, kind: input, shape index: {}]   ;;  %s463_s5 = inlined_call_operand.vmem [shape: f32[2,8,64], index: 5, kind: output, shape index: {}]  }
   0x1 LB: > { %s354_s19 = sadd.s32 4294967295, %s388_s18   ;;  %p358_p0 = scmp.ge.s32.totalorder %s388_s18, 1  ;;  %s388_s18 = sphi %s422_s18, %s15_s18  }
   0x2   : > { %p186_p1 = scmp.lt.s32.totalorder %s388_s18, 3 }
   0x4   : > { %p187_p2 = pnand %p358_p0, %p186_p1 }
   0x5   : > { %p212_p3 = scmp.lt.s32.totalorder (!%p187_p2), %s354_s19, 1 }
   0x6   : > { %190 = sbr.rel (%p187_p2) target bundleno = 413 (0x19d), region = 40 }
   0xb   : > { %v222_v0 = vld [vmem:[%s460_s2] sm:$0xff]  ;;  %v390_v1 = vmov 0   ;;  %s465_s19 = smov (!%p212_p3, %s354_s19), 1  ;;  %vm232_vm0 = vcmask 1043456   ;;  %vm228_vm1 = vcmask 31744   ;;  %vm256_vm2 = vcmask 523264  }
   0xc   : > { %375 = vset.pattern.permute.xlu0 %v390_v1  ;;  %376 = vset.pattern.permute.xlu1 %v390_v1  ;;  %s359_s22 = sshll.u32 %s465_s19, 2  ;;  %v220_v2 = vld [vmem:[%s459_s1] sm:$0xff]  ;;  %v391_v8 = vmov 64.0   ;;  %s360_s7 = sshll.u32 %s465_s19, 3 }
   0xd   : > { %225 = vperm.xlu0 %375, %v222_v0   ;;  %377 = vset.pattern.permute.xlu2 %v390_v1  ;;  %s215_s25 = scalar_lea.vmem %s458_s0, %s359_s22  ;;  %378 = vrcp.f32 %v391_v8  ;;  %v293_v17 = vld [vmem:[%s462_s4] sm:$0xff]  ;;  %s219_s10 = scalar_lea.vmem %s463_s5, %s360_s7 }
   0xe   : > { %v221_v3 = vld [vmem:[%s215_s25] sm:$0xf]  ;;  %296 = vperm.xlu2 %377, %v293_v17  }
   0xf   : > { %361 = vmatpush.msk.msra.mxu0 %vm232_vm0, %v221_v3  ;;  %v286_v21 = vld [vmem:[%s461_s3] sm:$0xff] }
  0x10   : > { %362 = vmatmul.msk.f32.vlgmr.msra.gmra.mxu0 %vm228_vm1, %v220_v2 }
  0x13   : > { %v379_v9 = vpop.eup %378 }
  0x14   : > { %v261_v10 = vmul.f32 64.0, %v379_v9  ;;  %vm265_vm3 = vweird.f32 %v379_v9 }
  0x16   : > { %v262_v11 = vsub.f32 1.0, %v261_v10 }
  0x18   : > { %v263_v12 = vmul.f32 %v379_v9, %v262_v11 }
  0x1a   : > { %v264_v13 = vadd.f32 %v379_v9, %v263_v12 }
  0x1c   : > { %v266_v14 = vsel %vm265_vm3, %v379_v9, %v264_v13 }
  0x68   : > { %v297_v34 = vpop.permute.xlu2 %296 }
  0x7f   : > { %v226_v4 = vpop.permute.xlu0 %225 }
  0x8d   : > { %v253_v5 = vpop.f32.mrf.mxu0 }
  0x8e   : > { %v254_v6 = vadd.f32 %v253_v5, %v226_v4 }
  0x90   : > { %v257_v7 = vsel %vm256_vm2, %v254_v6, 0.0 }
  0x91   : > { %258 = vadd.xlane.f32.xlu0 %v257_v7 }
 0x104   : > { %v259_v15 = vpop.xlane.xlu0 %258 }
 0x105   : > { %v267_v16 = vmul.f32 %v266_v14, %v259_v15 }
 0x107   : > { %v268_v18 = vsub.f32 %v254_v6, %v267_v16 }
 0x109   : > { %v269_v19 = vmul.f32 %v268_v18, %v268_v18 }
 0x10b   : > { %v270_v20 = vsel %vm256_vm2, %v269_v19, 0.0 }
 0x10c   : > { %271 = vadd.xlane.f32.xlu1 %v270_v20 }
 0x125   : > { %289 = vperm.xlu1 %376, %v286_v21  }
 0x17f   : > { %v272_v22 = vpop.xlane.xlu1 %271 }
 0x180   : > { %v273_v23 = vmul.f32 %v272_v22, %v266_v14 }
 0x182   : > { %v274_v24 = vadd.f32 1e-05, %v273_v23 }
 0x184   : > { %380 = vrsqrt.f32 %v274_v24  ;;  %vm281_vm5 = vweird.f32 %v274_v24 }
 0x18a   : > { %v381_v25 = vpop.eup %380 }
 0x18b   : > { %v276_v26 = vmul.f32 %v381_v25, %v274_v24  ;;  %vm282_vm4 = vweird.f32 %v381_v25 }
 0x18c   : > { %vm283_vm6 = vmor %vm281_vm5, %vm282_vm4 }
 0x18d   : > { %v277_v27 = vmul.f32 %v381_v25, %v276_v26 }
 0x18f   : > { %v278_v28 = vmul.f32 0.5, %v277_v27 }
 0x191   : > { %v279_v29 = vsub.f32 1.5, %v278_v28 }
 0x193   : > { %v280_v30 = vmul.f32 %v381_v25, %v279_v29 }
 0x195   : > { %v284_v31 = vsel %vm283_vm6, %v381_v25, %v280_v30 }
 0x196   : > { %v285_v32 = vmul.f32 %v284_v31, %v268_v18 }
 0x197   : > { %v290_v33 = vpop.permute.xlu1 %289 }
 0x198   : > { %v292_v35 = vmul.f32 %v290_v33, %v285_v32 }
 0x19a   : > { %v299_v36 = vadd.f32 %v297_v34, %v292_v35 }
 0x19c   : > { %300 = vst.msk [vmem:[%s219_s10] sm:$0xff] %vm256_vm2, %v299_v36 }
 0x19d PF: > { %s15_s18 = sadd.s32 1, %s388_s18  }
 0x19e   : > { %p12_p4 = scmp.ge.s32.totalorder %s15_s18, 4  }
 0x1a0   :  { %14 = sbr.rel (!%p12_p4) target bundleno = 1 (0x1), region = 70 }

// kernel: umamba_bot_forward.23
= control target key start
LH: loop header
LB: loop body
LE: loop exit
PB: predicated region body
PF: predicated region fallthrough
CT: control target
= control target key end

     0   :  { %s496_s21 = smov 0   ;;  %s535_s0 = inlined_call_operand.vmem [shape: f32[2,72,64], index: 0, kind: input, shape index: {}]   ;;  %s536_s1 = inlined_call_operand.vmem [shape: f32[8,72], index: 1, kind: input, shape index: {}]   ;;  %s537_s2 = inlined_call_operand.vmem [shape: f32[8,1], index: 2, kind: input, shape index: {}]   ;;  %s538_s3 = inlined_call_operand.vmem [shape: f32[8,1], index: 3, kind: input, shape index: {}]   ;;  %s539_s4 = inlined_call_operand.vmem [shape: f32[8,1], index: 4, kind: input, shape index: {}]   ;;  %s540_s5 = inlined_call_operand.vmem [shape: f32[2,8,64], index: 5, kind: input, shape index: {}]   ;;  %s541_s6 = inlined_call_operand.vmem [shape: f32[2,8,64], index: 6, kind: output, shape index: {}]  }
   0x1 LB: > { %s422_s22 = sadd.s32 4294967295, %s457_s21   ;;  %p426_p0 = scmp.ge.s32.totalorder %s457_s21, 1  ;;  %s457_s21 = sphi %s496_s21, %s16_s21  }
   0x2   : > { %p221_p1 = scmp.lt.s32.totalorder %s457_s21, 3 }
   0x4   : > { %p222_p2 = pnand %p426_p0, %p221_p1 }
   0x5   : > { %p254_p3 = scmp.lt.s32.totalorder (!%p222_p2), %s422_s22, 1 }
   0x6   : > { %225 = sbr.rel (%p222_p2) target bundleno = 435 (0x1b3), region = 44 }
   0xb   : > { %v277_v0 = vld [vmem:[%s537_s2] sm:$0xff]  ;;  %v459_v1 = vmov 0   ;;  %s543_s22 = smov (!%p254_p3, %s422_s22), 1  ;;  %vm283_vm0 = vcmask 588800   ;;  %vm307_vm1 = vcmask 523264   ;;  %v460_v16 = vmov 64.0  }
   0xc   : > { %444 = vset.pattern.permute.xlu0 %v459_v1  ;;  %445 = vset.pattern.permute.xlu1 %v459_v1  ;;  %s433_s25 = smul.u32 72, %s543_s22  ;;  %v267_v11 = vld [vmem:[%s536_s1] sm:$0xff]  ;;  %447 = vrcp.f32 %v460_v16  ;;  %s428_s11 = sshll.u32 %s543_s22, 3 }
   0xd   : > { %280 = vperm.xlu0 %444, %v277_v0   ;;  %446 = vset.pattern.permute.xlu2 %v459_v1  ;;  %v344_v25 = vld [vmem:[%s539_s4] sm:$0xff]  ;;  %s262_s14 = scalar_lea.vmem %s540_s5, %s428_s11  ;;  %s266_s17 = scalar_lea.vmem %s541_s6, %s428_s11 }
   0xe   : > { %s258_s28 = scalar_lea.vmem %s535_s0, %s433_s25  ;;  %347 = vperm.xlu2 %446, %v344_v25   ;;  %v337_v29 = vld [vmem:[%s538_s3] sm:$0xff] }
   0xf   : > { %v276_v2 = vld [vmem:[%s258_s28 + $0x40] sm:$0xff]  ;;  %v275_v3 = vld [vmem:[%s258_s28 + $0x38] sm:$0xff]  ;;  %v274_v4 = vld [vmem:[%s258_s28 + $0x30] sm:$0xff] }
  0x10   : > { %294 = vmatpush.msra.mxu0 %v276_v2  ;;  %v273_v5 = vld [vmem:[%s258_s28 + $0x28] sm:$0xff]  ;;  %v272_v6 = vld [vmem:[%s258_s28 + $0x20] sm:$0xff]  ;;  %v271_v7 = vld [vmem:[%s258_s28 + $0x18] sm:$0xff] }
  0x11   : > { %v270_v8 = vld [vmem:[%s258_s28 + $0x10] sm:$0xff]  ;;  %v269_v9 = vld [vmem:[%s258_s28 + $0x8] sm:$0xff]  ;;  %v268_v10 = vld [vmem:[%s258_s28] sm:$0xff] }
  0x12   : > { %295 = vmatpush.msra.mxu0 %v275_v3  ;;  %v448_v17 = vpop.eup %447  ;;  %v351_v44 = vld [vmem:[%s262_s14] sm:$0xff] }
  0x13   : > { %v312_v18 = vmul.f32 64.0, %v448_v17  ;;  %vm316_vm2 = vweird.f32 %v448_v17 }
  0x14   : > { %296 = vmatpush.msra.mxu0 %v274_v4 }
  0x15   : > { %v313_v19 = vsub.f32 1.0, %v312_v18 }
  0x16   : > { %297 = vmatpush.msra.mxu0 %v273_v5 }
  0x17   : > { %v314_v20 = vmul.f32 %v448_v17, %v313_v19 }
  0x18   : > { %298 = vmatpush.msra.mxu0 %v272_v6 }
  0x19   : > { %v315_v21 = vadd.f32 %v448_v17, %v314_v20 }
  0x1a   : > { %299 = vmatpush.msra.mxu0 %v271_v7 }
  0x1b   : > { %v317_v22 = vsel %vm316_vm2, %v448_v17, %v315_v21 }
  0x1c   : > { %300 = vmatpush.msra.mxu0 %v270_v8 }
  0x1e   : > { %301 = vmatpush.msra.mxu0 %v269_v9 }
  0x20   : > { %302 = vmatpush.msra.mxu0 %v268_v10 }
  0x21   : > { %430 = vmatmul.msk.f32.vlgmr.msra.gmra.mxu0 %vm283_vm0, %v267_v11 }
  0x68   : > { %v348_v42 = vpop.permute.xlu2 %347 }
  0x7f   : > { %v281_v12 = vpop.permute.xlu0 %280 }
  0x9e   : > { %v304_v13 = vpop.f32.mrf.mxu0 }
  0x9f   : > { %v305_v14 = vadd.f32 %v304_v13, %v281_v12 }
  0xa1   : > { %v308_v15 = vsel %vm307_vm1, %v305_v14, 0.0 }
  0xa2   : > { %309 = vadd.xlane.f32.xlu0 %v308_v15 }
 0x115   : > { %v310_v23 = vpop.xlane.xlu0 %309 }
 0x116   : > { %v318_v24 = vmul.f32 %v317_v22, %v310_v23 }
 0x118   : > { %v319_v26 = vsub.f32 %v305_v14, %v318_v24 }
 0x11a   : > { %v320_v27 = vmul.f32 %v319_v26, %v319_v26 }
 0x11c   : > { %v321_v28 = vsel %vm307_vm1, %v320_v27, 0.0 }
 0x11d   : > { %322 = vadd.xlane.f32.xlu1 %v321_v28 }
 0x136   : > { %340 = vperm.xlu1 %445, %v337_v29  }
 0x190   : > { %v323_v30 = vpop.xlane.xlu1 %322 }
 0x191   : > { %v324_v31 = vmul.f32 %v323_v30, %v317_v22 }
 0x193   : > { %v325_v32 = vadd.f32 1e-05, %v324_v31 }
 0x195   : > { %449 = vrsqrt.f32 %v325_v32  ;;  %vm332_vm4 = vweird.f32 %v325_v32 }
 0x19b   : > { %v450_v33 = vpop.eup %449 }
 0x19c   : > { %v327_v34 = vmul.f32 %v450_v33, %v325_v32  ;;  %vm333_vm3 = vweird.f32 %v450_v33 }
 0x19d   : > { %vm334_vm5 = vmor %vm332_vm4, %vm333_vm3 }
 0x19e   : > { %v328_v35 = vmul.f32 %v450_v33, %v327_v34 }
 0x1a0   : > { %v329_v36 = vmul.f32 0.5, %v328_v35 }
 0x1a2   : > { %v330_v37 = vsub.f32 1.5, %v329_v36 }
 0x1a4   : > { %v331_v38 = vmul.f32 %v450_v33, %v330_v37 }
 0x1a6   : > { %v335_v39 = vsel %vm334_vm5, %v450_v33, %v331_v38 }
 0x1a7   : > { %v336_v40 = vmul.f32 %v335_v39, %v319_v26 }
 0x1a8   : > { %v341_v41 = vpop.permute.xlu1 %340 }
 0x1a9   : > { %v343_v43 = vmul.f32 %v341_v41, %v336_v40 }
 0x1ab   : > { %v350_v45 = vadd.f32 %v348_v42, %v343_v43 }
 0x1ad   : > { %v352_v46 = vadd.f32 %v351_v44, %v350_v45 }
 0x1af   : > { %vm353_vm6 = vcmp.ge.f32.partialorder %v352_v46, 0.0  ;;  %v354_v47 = vmul.f32 0.01, %v352_v46 }
 0x1b1   : > { %v355_v48 = vsel %vm353_vm6, %v352_v46, %v354_v47 }
 0x1b2   : > { %356 = vst.msk [vmem:[%s266_s17] sm:$0xff] %vm307_vm1, %v355_v48 }
 0x1b3 PF: > { %s16_s21 = sadd.s32 1, %s457_s21  }
 0x1b4   : > { %p13_p4 = scmp.ge.s32.totalorder %s16_s21, 4  }
 0x1b6   :  { %15 = sbr.rel (!%p13_p4) target bundleno = 1 (0x1), region = 77 }

// kernel: umamba_bot_forward.24
= control target key start
LH: loop header
LB: loop body
LE: loop exit
PB: predicated region body
PF: predicated region fallthrough
CT: control target
= control target key end

     0   :  { %s503_s18 = smov 0   ;;  %s554_s0 = inlined_call_operand.vmem [shape: f32[2,72,16], index: 0, kind: input, shape index: {}]   ;;  %s555_s1 = inlined_call_operand.vmem [shape: f32[16,72], index: 1, kind: input, shape index: {}]   ;;  %s556_s2 = inlined_call_operand.vmem [shape: f32[16,1], index: 2, kind: input, shape index: {}]   ;;  %s557_s3 = inlined_call_operand.vmem [shape: f32[16,1], index: 3, kind: input, shape index: {}]   ;;  %s558_s4 = inlined_call_operand.vmem [shape: f32[16,1], index: 4, kind: input, shape index: {}]   ;;  %s559_s5 = inlined_call_operand.vmem [shape: f32[2,16,16], index: 5, kind: output, shape index: {}]  }
   0x1 LB: > { %s421_s19 = sadd.s32 4294967295, %s469_s18   ;;  %p425_p0 = scmp.ge.s32.totalorder %s469_s18, 1  ;;  %s469_s18 = sphi %s503_s18, %s15_s18  }
   0x2   : > { %p187_p1 = scmp.lt.s32.totalorder %s469_s18, 3 }
   0x4   : > { %p188_p2 = pnand %p425_p0, %p187_p1 }
   0x5   : > { %p215_p3 = scmp.lt.s32.totalorder (!%p188_p2), %s421_s19, 1 }
   0x6   : > { %191 = sbr.rel (%p188_p2) target bundleno = 441 (0x1b9), region = 40 }
   0xb   : > { %v236_v0 = vld [vmem:[%s556_s2] sm:$0xff]  ;;  %v471_v1 = vmov 0   ;;  %s561_s19 = smov (!%p215_p3, %s421_s19), 1  ;;  %v237_v4 = vld [vmem:[%s556_s2 + $0x8] sm:$0xff]  ;;  %vm248_vm0 = vcmask 588800   ;;  %vm278_vm1 = vcmask 130048  }
   0xc   : > { %454 = vset.pattern.permute.xlu0 %v471_v1  ;;  %455 = vset.pattern.permute.xlu1 %v471_v1  ;;  %s443_s22 = smul.u32 72, %s561_s19  ;;  %v330_v9 = vld [vmem:[%s557_s3] sm:$0xff]  ;;  %v226_v14 = vld [vmem:[%s555_s1 + $0x8] sm:$0xff]  ;;  %v472_v24 = vmov 16.0   ;;  %s433_s15 = sshll.u32 %s561_s19, 4 }
   0xd   : > { %240 = vperm.xlu0 %454, %v236_v0   ;;  %456 = vset.pattern.permute.xlu2 %v471_v1  ;;  %v225_v13 = vld [vmem:[%s555_s1] sm:$0xff]  ;;  %v345_v15 = vld [vmem:[%s558_s4 + $0x8] sm:$0xff]  ;;  %457 = vrcp.f32 %v472_v24  ;;  %s224_s20 = scalar_lea.vmem %s559_s5, %s433_s15 }
   0xe   : > { %s219_s25 = scalar_lea.vmem %s554_s0, %s443_s22  ;;  %v331_v27 = vld [vmem:[%s557_s3 + $0x8] sm:$0xff]  ;;  %v344_v42 = vld [vmem:[%s558_s4] sm:$0xff] }
   0xf   : > { %v235_v2 = vld [vmem:[%s219_s25 + $0x40] sm:$0xff]  ;;  %v234_v3 = vld [vmem:[%s219_s25 + $0x38] sm:$0xff]  ;;  %v233_v5 = vld [vmem:[%s219_s25 + $0x30] sm:$0xff] }
  0x10   : > { %262 = vmatpush.msra.mxu0 %v235_v2  ;;  %434 = vmatpush.msra.mxu1 %v235_v2  ;;  %v232_v6 = vld [vmem:[%s219_s25 + $0x28] sm:$0xff]  ;;  %v231_v7 = vld [vmem:[%s219_s25 + $0x20] sm:$0xff]  ;;  %v230_v8 = vld [vmem:[%s219_s25 + $0x18] sm:$0xff] }
  0x11   : > { %v229_v10 = vld [vmem:[%s219_s25 + $0x10] sm:$0xff]  ;;  %v228_v11 = vld [vmem:[%s219_s25 + $0x8] sm:$0xff]  ;;  %v227_v12 = vld [vmem:[%s219_s25] sm:$0xff] }
  0x12   : > { %263 = vmatpush.msra.mxu0 %v234_v3  ;;  %435 = vmatpush.msra.mxu1 %v234_v3 }
  0x13   : > { %v458_v25 = vpop.eup %457 }
  0x14   : > { %264 = vmatpush.msra.mxu0 %v233_v5  ;;  %436 = vmatpush.msra.mxu1 %v233_v5  ;;  %v286_v26 = vmul.f32 16.0, %v458_v25  ;;  %vm290_vm2 = vweird.f32 %v458_v25 }
  0x15   : > { %245 = vperm.xlu0 %454, %v237_v4  }
  0x16   : > { %265 = vmatpush.msra.mxu0 %v232_v6  ;;  %437 = vmatpush.msra.mxu1 %v232_v6  ;;  %v287_v28 = vsub.f32 1.0, %v286_v26 }
  0x18   : > { %266 = vmatpush.msra.mxu0 %v231_v7  ;;  %438 = vmatpush.msra.mxu1 %v231_v7  ;;  %v288_v29 = vmul.f32 %v458_v25, %v287_v28 }
  0x1a   : > { %267 = vmatpush.msra.mxu0 %v230_v8  ;;  %439 = vmatpush.msra.mxu1 %v230_v8  ;;  %v289_v30 = vadd.f32 %v458_v25, %v288_v29 }
  0x1c   : > { %268 = vmatpush.msra.mxu0 %v229_v10  ;;  %440 = vmatpush.msra.mxu1 %v229_v10  ;;  %v291_v31 = vsel %vm290_vm2, %v458_v25, %v289_v30 }
  0x1d   : > { %334 = vperm.xlu0 %454, %v330_v9  }
  0x1e   : > { %269 = vmatpush.msra.mxu0 %v228_v11  ;;  %441 = vmatpush.msra.mxu1 %v228_v11 }
  0x20   : > { %270 = vmatpush.msra.mxu0 %v227_v12  ;;  %442 = vmatpush.msra.mxu1 %v227_v12 }
  0x21   : > { %429 = vmatmul.msk.f32.vlgmr.msra.gmra.mxu0 %vm248_vm0, %v225_v13  ;;  %430 = vmatmul.msk.f32.vlgmr.msra.gmra.mxu1 %vm248_vm0, %v226_v14 }
  0x25   : > { %353 = vperm.xlu0 %454, %v345_v15  }
  0x7f   : > { %v241_v16 = vpop.permute.xlu0 %240 }
  0x87   : > { %v246_v21 = vpop.permute.xlu0 %245 }
  0x8f   : > { %v335_v60 = vpop.permute.xlu0 %334 }
  0x97   : > { %v354_v9 = vpop.permute.xlu0 %353 }
  0x9e   : > { %v272_v17 = vpop.f32.mrf.mxu0  ;;  %v275_v20 = vpop.f32.mrf.mxu1 }
  0x9f   : > { %v273_v18 = vadd.f32 %v272_v17, %v241_v16  ;;  %v276_v22 = vadd.f32 %v275_v20, %v246_v21 }
  0xa1   : > { %v279_v19 = vsel %vm278_vm1, %v273_v18, 0.0  ;;  %v282_v23 = vsel %vm278_vm1, %v276_v22, 0.0 }
  0xa2   : > { %280 = vadd.xlane.f32.xlu1 %v279_v19 }
  0xaa   : > { %283 = vadd.xlane.f32.xlu1 %v282_v23 }
  0xc3   : > { %339 = vperm.xlu1 %455, %v331_v27  }
 0x115   : > { %v281_v32 = vpop.xlane.xlu1 %280 }
 0x116   : > { %v292_v33 = vmul.f32 %v291_v31, %v281_v32 }
 0x118   : > { %v294_v34 = vsub.f32 %v273_v18, %v292_v33 }
 0x11a   : > { %v296_v35 = vmul.f32 %v294_v34, %v294_v34 }
 0x11c   : > { %v298_v36 = vsel %vm278_vm1, %v296_v35, 0.0 }
 0x11d   : > { %299 = vadd.xlane.f32.xlu2 %v298_v36  ;;  %v284_v37 = vpop.xlane.xlu1 %283 }
 0x11e   : > { %v293_v38 = vmul.f32 %v291_v31, %v284_v37 }
 0x120   : > { %v295_v39 = vsub.f32 %v276_v22, %v293_v38 }
 0x122   : > { %v297_v40 = vmul.f32 %v295_v39, %v295_v39 }
 0x124   : > { %v301_v41 = vsel %vm278_vm1, %v297_v40, 0.0 }
 0x125   : > { %302 = vadd.xlane.f32.xlu2 %v301_v41 }
 0x135   : > { %v340_v5 = vpop.permute.xlu1 %339 }
 0x13d   : > { %348 = vperm.xlu2 %456, %v344_v42  }
 0x190   : > { %v300_v43 = vpop.xlane.xlu2 %299 }
 0x191   : > { %v304_v44 = vmul.f32 %v300_v43, %v291_v31 }
 0x193   : > { %v306_v45 = vadd.f32 1e-05, %v304_v44 }
 0x195   : > { %459 = vrsqrt.f32 %v306_v45  ;;  %vm314_vm4 = vweird.f32 %v306_v45 }
 0x198   : > { %v303_v46 = vpop.xlane.xlu2 %302 }
 0x199   : > { %v305_v47 = vmul.f32 %v303_v46, %v291_v31 }
 0x19b   : > { %v460_v48 = vpop.eup %459  ;;  %v307_v49 = vadd.f32 1e-05, %v305_v47 }
 0x19c   : > { %v309_v50 = vmul.f32 %v460_v48, %v306_v45  ;;  %vm315_vm3 = vweird.f32 %v460_v48 }
 0x19d   : > { %461 = vrsqrt.f32 %v307_v49  ;;  %vm316_vm5 = vmor %vm314_vm4, %vm315_vm3  ;;  %vm324_vm7 = vweird.f32 %v307_v49 }
 0x19e   : > { %v310_v51 = vmul.f32 %v460_v48, %v309_v50 }
 0x1a0   : > { %v311_v52 = vmul.f32 0.5, %v310_v51  ;;  %v349_v62 = vpop.permute.xlu2 %348 }
 0x1a2   : > { %v312_v53 = vsub.f32 1.5, %v311_v52 }
 0x1a3   : > { %v462_v54 = vpop.eup %461 }
 0x1a4   : > { %v319_v55 = vmul.f32 %v462_v54, %v307_v49  ;;  %v313_v56 = vmul.f32 %v460_v48, %v312_v53  ;;  %vm325_vm6 = vweird.f32 %v462_v54 }
 0x1a5   : > { %vm326_vm9 = vmor %vm324_vm7, %vm325_vm6 }
 0x1a6   : > { %v320_v57 = vmul.f32 %v462_v54, %v319_v55  ;;  %v317_v58 = vsel %vm316_vm5, %v460_v48, %v313_v56 }
 0x1a7   : > { %v328_v59 = vmul.f32 %v317_v58, %v294_v34 }
 0x1a8   : > { %v321_v61 = vmul.f32 0.5, %v320_v57 }
 0x1a9   : > { %v342_v63 = vmul.f32 %v335_v60, %v328_v59 }
 0x1aa   : > { %v322_v0 = vsub.f32 1.5, %v321_v61 }
 0x1ab   : > { %v356_v1 = vadd.f32 %v349_v62, %v342_v63 }
 0x1ac   : > { %v323_v2 = vmul.f32 %v462_v54, %v322_v0 }
 0x1ad   : > { %vm358_vm8 = vcmp.ge.f32.partialorder %v356_v1, 0.0  ;;  %v360_v3 = vmul.f32 0.01, %v356_v1 }
 0x1ae   : > { %v327_v4 = vsel %vm326_vm9, %v462_v54, %v323_v2 }
 0x1af   : > { %v362_v6 = vsel %vm358_vm8, %v356_v1, %v360_v3  ;;  %v329_v7 = vmul.f32 %v327_v4, %v295_v39 }
 0x1b0   : > { %364 = vst.msk [vmem:[%s224_s20] sm:$0xff] %vm278_vm1, %v362_v6 }
 0x1b1   : > { %v343_v8 = vmul.f32 %v340_v5, %v329_v7 }
 0x1b3   : > { %v357_v10 = vadd.f32 %v354_v9, %v343_v8 }
 0x1b5   : > { %vm359_vm10 = vcmp.ge.f32.partialorder %v357_v10, 0.0  ;;  %v361_v11 = vmul.f32 0.01, %v357_v10 }
 0x1b7   : > { %v363_v12 = vsel %vm359_vm10, %v357_v10, %v361_v11 }
 0x1b8   : > { %365 = vst.msk [vmem:[%s224_s20 + $0x8] sm:$0xff] %vm278_vm1, %v363_v12 }
 0x1b9 PF: > { %s15_s18 = sadd.s32 1, %s469_s18  }
 0x1ba   : > { %p12_p4 = scmp.ge.s32.totalorder %s15_s18, 4  }
 0x1bc   :  { %14 = sbr.rel (!%p12_p4) target bundleno = 1 (0x1), region = 70 }

// kernel: umamba_bot_forward.25
= control target key start
LH: loop header
LB: loop body
LE: loop exit
PB: predicated region body
PF: predicated region fallthrough
CT: control target
= control target key end

     0   :  { %s477_s18 = smov 0   ;;  %s528_s0 = inlined_call_operand.vmem [shape: f32[2,8,16], index: 0, kind: input, shape index: {}]   ;;  %s529_s1 = inlined_call_operand.vmem [shape: f32[16,8], index: 1, kind: input, shape index: {}]   ;;  %s530_s2 = inlined_call_operand.vmem [shape: f32[16,1], index: 2, kind: input, shape index: {}]   ;;  %s531_s3 = inlined_call_operand.vmem [shape: f32[16,1], index: 3, kind: input, shape index: {}]   ;;  %s532_s4 = inlined_call_operand.vmem [shape: f32[16,1], index: 4, kind: input, shape index: {}]   ;;  %s533_s5 = inlined_call_operand.vmem [shape: f32[2,16,16], index: 5, kind: output, shape index: {}]  }
   0x1 LB: > { %s404_s19 = sadd.s32 4294967295, %s443_s18   ;;  %p408_p0 = scmp.ge.s32.totalorder %s443_s18, 1  ;;  %s443_s18 = sphi %s477_s18, %s15_s18  }
   0x2   : > { %p186_p1 = scmp.lt.s32.totalorder %s443_s18, 3 }
   0x4   : > { %p187_p2 = pnand %p408_p0, %p186_p1 }
   0x5   : > { %p213_p3 = scmp.lt.s32.totalorder (!%p187_p2), %s404_s19, 1 }
   0x6   : > { %190 = sbr.rel (%p187_p2) target bundleno = 421 (0x1a5), region = 40 }
   0xb   : > { %v225_v0 = vld [vmem:[%s530_s2] sm:$0xff]  ;;  %v445_v1 = vmov 0   ;;  %s535_s19 = smov (!%p213_p3, %s404_s19), 1  ;;  %vm237_vm0 = vcmask 64512   ;;  %v223_v3 = vld [vmem:[%s529_s1 + $0x8] sm:$0xff]  ;;  %vm267_vm1 = vcmask 130048  }
   0xc   : > { %428 = vset.pattern.permute.xlu0 %v445_v1  ;;  %429 = vset.pattern.permute.xlu1 %v445_v1  ;;  %s409_s22 = sshll.u32 %s535_s19, 3  ;;  %v222_v2 = vld [vmem:[%s529_s1] sm:$0xff]  ;;  %v226_v5 = vld [vmem:[%s530_s2 + $0x8] sm:$0xff]  ;;  %v446_v16 = vmov 16.0   ;;  %s416_s15 = sshll.u32 %s535_s19, 4 }
   0xd   : > { %229 = vperm.xlu0 %428, %v225_v0   ;;  %430 = vset.pattern.permute.xlu2 %v445_v1  ;;  %s216_s25 = scalar_lea.vmem %s528_s0, %s409_s22  ;;  %v319_v6 = vld [vmem:[%s531_s3] sm:$0xff]  ;;  %v334_v7 = vld [vmem:[%s532_s4 + $0x8] sm:$0xff]  ;;  %431 = vrcp.f32 %v446_v16  ;;  %s221_s20 = scalar_lea.vmem %s533_s5, %s416_s15 }
   0xe   : > { %v224_v4 = vld [vmem:[%s216_s25] sm:$0xff]  ;;  %v320_v19 = vld [vmem:[%s531_s3 + $0x8] sm:$0xff] }
   0xf   : > { %259 = vmatpush.msra.mxu0 %v224_v4  ;;  %417 = vmatpush.msra.mxu1 %v224_v4  ;;  %v333_v34 = vld [vmem:[%s532_s4] sm:$0xff] }
  0x10   : > { %412 = vmatmul.msk.f32.vlgmr.msra.gmra.mxu0 %vm237_vm0, %v222_v2  ;;  %413 = vmatmul.msk.f32.vlgmr.msra.gmra.mxu1 %vm237_vm0, %v223_v3 }
  0x13   : > { %v432_v17 = vpop.eup %431 }
  0x14   : > { %v275_v18 = vmul.f32 16.0, %v432_v17  ;;  %vm279_vm2 = vweird.f32 %v432_v17 }
  0x15   : > { %234 = vperm.xlu0 %428, %v226_v5  }
  0x16   : > { %v276_v20 = vsub.f32 1.0, %v275_v18 }
  0x18   : > { %v277_v21 = vmul.f32 %v432_v17, %v276_v20 }
  0x1a   : > { %v278_v22 = vadd.f32 %v432_v17, %v277_v21 }
  0x1c   : > { %v280_v23 = vsel %vm279_vm2, %v432_v17, %v278_v22 }
  0x1d   : > { %323 = vperm.xlu0 %428, %v319_v6  }
  0x25   : > { %342 = vperm.xlu0 %428, %v334_v7  }
  0x7f   : > { %v230_v8 = vpop.permute.xlu0 %229 }
  0x87   : > { %v235_v13 = vpop.permute.xlu0 %234 }
  0x8d   : > { %v261_v9 = vpop.f32.mrf.mxu0  ;;  %v264_v12 = vpop.f32.mrf.mxu1 }
  0x8e   : > { %v262_v10 = vadd.f32 %v261_v9, %v230_v8  ;;  %v265_v14 = vadd.f32 %v264_v12, %v235_v13 }
  0x8f   : > { %v324_v52 = vpop.permute.xlu0 %323 }
  0x90   : > { %v268_v11 = vsel %vm267_vm1, %v262_v10, 0.0  ;;  %v271_v15 = vsel %vm267_vm1, %v265_v14, 0.0 }
  0x91   : > { %269 = vadd.xlane.f32.xlu1 %v268_v11 }
  0x97   : > { %v343_v63 = vpop.permute.xlu0 %342 }
  0x99   : > { %272 = vadd.xlane.f32.xlu1 %v271_v15 }
  0xb2   : > { %328 = vperm.xlu1 %429, %v320_v19  }
 0x104   : > { %v270_v24 = vpop.xlane.xlu1 %269 }
 0x105   : > { %v281_v25 = vmul.f32 %v280_v23, %v270_v24 }
 0x107   : > { %v283_v26 = vsub.f32 %v262_v10, %v281_v25 }
 0x109   : > { %v285_v27 = vmul.f32 %v283_v26, %v283_v26 }
 0x10b   : > { %v287_v28 = vsel %vm267_vm1, %v285_v27, 0.0 }
 0x10c   : > { %288 = vadd.xlane.f32.xlu2 %v287_v28  ;;  %v273_v29 = vpop.xlane.xlu1 %272 }
 0x10d   : > { %v282_v30 = vmul.f32 %v280_v23, %v273_v29 }
 0x10f   : > { %v284_v31 = vsub.f32 %v265_v14, %v282_v30 }
 0x111   : > { %v286_v32 = vmul.f32 %v284_v31, %v284_v31 }
 0x113   : > { %v290_v33 = vsel %vm267_vm1, %v286_v32, 0.0 }
 0x114   : > { %291 = vadd.xlane.f32.xlu2 %v290_v33 }
 0x124   : > { %v329_v60 = vpop.permute.xlu1 %328 }
 0x12c   : > { %337 = vperm.xlu2 %430, %v333_v34  }
 0x17f   : > { %v289_v35 = vpop.xlane.xlu2 %288 }
 0x180   : > { %v293_v36 = vmul.f32 %v289_v35, %v280_v23 }
 0x182   : > { %v295_v37 = vadd.f32 1e-05, %v293_v36 }
 0x184   : > { %433 = vrsqrt.f32 %v295_v37  ;;  %vm303_vm4 = vweird.f32 %v295_v37 }
 0x187   : > { %v292_v38 = vpop.xlane.xlu2 %291 }
 0x188   : > { %v294_v39 = vmul.f32 %v292_v38, %v280_v23 }
 0x18a   : > { %v434_v40 = vpop.eup %433  ;;  %v296_v41 = vadd.f32 1e-05, %v294_v39 }
 0x18b   : > { %v298_v42 = vmul.f32 %v434_v40, %v295_v37  ;;  %vm304_vm3 = vweird.f32 %v434_v40 }
 0x18c   : > { %435 = vrsqrt.f32 %v296_v41  ;;  %vm305_vm5 = vmor %vm303_vm4, %vm304_vm3  ;;  %vm313_vm7 = vweird.f32 %v296_v41 }
 0x18d   : > { %v299_v43 = vmul.f32 %v434_v40, %v298_v42 }
 0x18f   : > { %v300_v44 = vmul.f32 0.5, %v299_v43  ;;  %v338_v54 = vpop.permute.xlu2 %337 }
 0x191   : > { %v301_v45 = vsub.f32 1.5, %v300_v44 }
 0x192   : > { %v436_v46 = vpop.eup %435 }
 0x193   : > { %v308_v47 = vmul.f32 %v436_v46, %v296_v41  ;;  %v302_v48 = vmul.f32 %v434_v40, %v301_v45  ;;  %vm314_vm6 = vweird.f32 %v436_v46 }
 0x194   : > { %vm315_vm8 = vmor %vm313_vm7, %vm314_vm6 }
 0x195   : > { %v309_v49 = vmul.f32 %v436_v46, %v308_v47  ;;  %v306_v50 = vsel %vm305_vm5, %v434_v40, %v302_v48 }
 0x196   : > { %v317_v51 = vmul.f32 %v306_v50, %v283_v26 }
 0x197   : > { %v310_v53 = vmul.f32 0.5, %v309_v49 }
 0x198   : > { %v331_v55 = vmul.f32 %v324_v52, %v317_v51 }
 0x199   : > { %v311_v56 = vsub.f32 1.5, %v310_v53 }
 0x19a   : > { %v345_v57 = vadd.f32 %v338_v54, %v331_v55 }
 0x19b   : > { %v312_v58 = vmul.f32 %v436_v46, %v311_v56 }
 0x19c   : > { %347 = vst.msk [vmem:[%s221_s20] sm:$0xff] %vm267_vm1, %v345_v57 }
 0x19d   : > { %v316_v59 = vsel %vm315_vm8, %v436_v46, %v312_v58 }
 0x19e   : > { %v318_v61 = vmul.f32 %v316_v59, %v284_v31 }
 0x1a0   : > { %v332_v62 = vmul.f32 %v329_v60, %v318_v61 }
 0x1a2   : > { %v346_v0 = vadd.f32 %v343_v63, %v332_v62 }
 0x1a4   : > { %348 = vst.msk [vmem:[%s221_s20 + $0x8] sm:$0xff] %vm267_vm1, %v346_v0 }
 0x1a5 PF: > { %s15_s18 = sadd.s32 1, %s443_s18  }
 0x1a6   : > { %p12_p4 = scmp.ge.s32.totalorder %s15_s18, 4  }
 0x1a8   :  { %14 = sbr.rel (!%p12_p4) target bundleno = 1 (0x1), region = 70 }

// kernel: umamba_bot_forward.28
= control target key start
LH: loop header
LB: loop body
LE: loop exit
PB: predicated region body
PF: predicated region fallthrough
CT: control target
= control target key end

     0   :  { %s365_s12 = smov 0   ;;  %s418_s0 = inlined_call_operand.vmem [shape: f32[32,16], index: 0, kind: input, shape index: {}]   ;;  %s419_s1 = inlined_call_operand.vmem [shape: f32[2,16,16], index: 1, kind: input, shape index: {}]   ;;  %s420_s2 = inlined_call_operand.vmem [shape: f32[32,1], index: 2, kind: input, shape index: {}]   ;;  %s421_s3 = inlined_call_operand.vmem [shape: f32[2,32,16], index: 3, kind: output, shape index: {}]  }
   0x1 LB: > { %s302_s13 = sadd.s32 4294967295, %s342_s12   ;;  %p306_p0 = scmp.ge.s32.totalorder %s342_s12, 1  ;;  %s342_s12 = sphi %s365_s12, %s13_s12  }
   0x2   : > { %p137_p1 = scmp.lt.s32.totalorder %s342_s12, 3 }
   0x4   : > { %p138_p2 = pnand %p306_p0, %p137_p1 }
   0x5   : > { %p161_p3 = scmp.lt.s32.totalorder (!%p138_p2), %s302_s13, 1 }
   0x6   : > { %141 = sbr.rel (%p138_p2) target bundleno = 156 (0x9c), region = 32 }
   0xb   : > { %v344_v0 = vmov 0   ;;  %v179_v1 = vld [vmem:[%s420_s2 + $0x10] sm:$0xff]  ;;  %v177_v2 = vld [vmem:[%s420_s2] sm:$0xff]  ;;  %s423_s13 = smov (!%p161_p3, %s302_s13), 1  ;;  %vm201_vm0 = vcmask 130048   ;;  %v172_v6 = vld [vmem:[%s418_s0 + $0x8] sm:$0xff] }
   0xc   : > { %335 = vset.pattern.permute.xlu1 %v344_v0  ;;  %334 = vset.pattern.permute.xlu0 %v344_v0  ;;  %s317_s18 = sshll.u32 %s423_s13, 4  ;;  %v171_v5 = vld [vmem:[%s418_s0] sm:$0xff]  ;;  %v173_v7 = vld [vmem:[%s418_s0 + $0x10] sm:$0xff]  ;;  %v174_v8 = vld [vmem:[%s418_s0 + $0x18] sm:$0xff]  ;;  %s318_s7 = sshll.u32 %s423_s13, 5 }
   0xd   : > { %193 = vperm.xlu1 %335, %v179_v1   ;;  %183 = vperm.xlu0 %334, %v177_v2   ;;  %s165_s21 = scalar_lea.vmem %s419_s1, %s317_s18  ;;  %v180_v9 = vld [vmem:[%s420_s2 + $0x18] sm:$0xff]  ;;  %v178_v10 = vld [vmem:[%s420_s2 + $0x8] sm:$0xff]  ;;  %s170_s10 = scalar_lea.vmem %s421_s3, %s318_s7 }
   0xe   : > { %v176_v3 = vld [vmem:[%s165_s21 + $0x8] sm:$0xff]  ;;  %v175_v4 = vld [vmem:[%s165_s21] sm:$0xff] }
   0xf   : > { %228 = vmatpush.msra.mxu0 %v176_v3  ;;  %319 = vmatpush.msra.mxu1 %v176_v3 }
  0x10   : > { %320 = vmatpush.msra.mxu2 %v176_v3  ;;  %321 = vmatpush.msra.mxu3 %v176_v3 }
  0x11   : > { %229 = vmatpush.msra.mxu0 %v175_v4  ;;  %322 = vmatpush.msra.mxu1 %v175_v4 }
  0x12   : > { %323 = vmatpush.msra.mxu2 %v175_v4  ;;  %324 = vmatpush.msra.mxu3 %v175_v4 }
  0x13   : > { %311 = vmatmul.msk.f32.vlgmr.msra.gmra.mxu0 %vm201_vm0, %v171_v5  ;;  %312 = vmatmul.msk.f32.vlgmr.msra.gmra.mxu1 %vm201_vm0, %v172_v6 }
  0x14   : > { %313 = vmatmul.msk.f32.vlgmr.msra.gmra.mxu2 %vm201_vm0, %v173_v7  ;;  %314 = vmatmul.msk.f32.vlgmr.msra.gmra.mxu3 %vm201_vm0, %v174_v8 }
  0x15   : > { %198 = vperm.xlu1 %335, %v180_v9   ;;  %188 = vperm.xlu0 %334, %v178_v10  }
  0x7f   : > { %v184_v11 = vpop.permute.xlu0 %183  ;;  %v194_v12 = vpop.permute.xlu1 %193 }
  0x87   : > { %v189_v13 = vpop.permute.xlu0 %188  ;;  %v199_v18 = vpop.permute.xlu1 %198 }
  0x90   : > { %v231_v14 = vpop.f32.mrf.mxu0  ;;  %v234_v15 = vpop.f32.mrf.mxu1 }
  0x91   : > { %v232_v16 = vadd.f32 %v231_v14, %v184_v11  ;;  %v235_v17 = vadd.f32 %v234_v15, %v189_v13 }
  0x93   : > { %243 = vst.msk [vmem:[%s170_s10] sm:$0xff] %vm201_vm0, %v232_v16 }
  0x94   : > { %244 = vst.msk [vmem:[%s170_s10 + $0x8] sm:$0xff] %vm201_vm0, %v235_v17 }
  0x97   : > { %v237_v19 = vpop.f32.mrf.mxu2  ;;  %v240_v20 = vpop.f32.mrf.mxu3 }
  0x98   : > { %v238_v21 = vadd.f32 %v237_v19, %v194_v12  ;;  %v241_v22 = vadd.f32 %v240_v20, %v199_v18 }
  0x9a   : > { %245 = vst.msk [vmem:[%s170_s10 + $0x10] sm:$0xff] %vm201_vm0, %v238_v21 }
  0x9b   : > { %246 = vst.msk [vmem:[%s170_s10 + $0x18] sm:$0xff] %vm201_vm0, %v241_v22 }
  0x9c PF: > { %s13_s12 = sadd.s32 1, %s342_s12  }
  0x9d   : > { %p10_p4 = scmp.ge.s32.totalorder %s13_s12, 4  }
  0x9f   :  { %12 = sbr.rel (!%p10_p4) target bundleno = 1 (0x1), region = 62 }

// kernel: umamba_bot_forward.26
= control target key start
LH: loop header
LB: loop body
LE: loop exit
PB: predicated region body
PF: predicated region fallthrough
CT: control target
= control target key end

     0   :  { %s614_s21 = smov 0   ;;  %s696_s0 = inlined_call_operand.vmem [shape: f32[2,144,16], index: 0, kind: input, shape index: {}]   ;;  %s697_s1 = inlined_call_operand.vmem [shape: f32[16,144], index: 1, kind: input, shape index: {}]   ;;  %s698_s2 = inlined_call_operand.vmem [shape: f32[16,1], index: 2, kind: input, shape index: {}]   ;;  %s699_s3 = inlined_call_operand.vmem [shape: f32[16,1], index: 3, kind: input, shape index: {}]   ;;  %s700_s4 = inlined_call_operand.vmem [shape: f32[16,1], index: 4, kind: input, shape index: {}]   ;;  %s701_s5 = inlined_call_operand.vmem [shape: f32[2,16,16], index: 5, kind: input, shape index: {}]   ;;  %s702_s6 = inlined_call_operand.vmem [shape: f32[2,16,16], index: 6, kind: output, shape index: {}]  }
   0x1 LB: > { %s517_s22 = sadd.s32 4294967295, %s575_s21   ;;  %p521_p0 = scmp.ge.s32.totalorder %s575_s21, 1  ;;  %s575_s21 = sphi %s614_s21, %s16_s21  }
   0x2   : > { %p222_p1 = scmp.lt.s32.totalorder %s575_s21, 3 }
   0x4   : > { %p223_p2 = pnand %p521_p0, %p222_p1 }
   0x5   : > { %p257_p3 = scmp.lt.s32.totalorder (!%p223_p2), %s517_s22, 1 }
   0x6   : > { %226 = sbr.rel (%p223_p2) target bundleno = 459 (0x1cb), region = 44 }
   0xb   : > { %v294_v0 = vld [vmem:[%s698_s2] sm:$0xff]  ;;  %v577_v1 = vmov 0   ;;  %s704_s22 = smov (!%p257_p3, %s517_s22), 1  ;;  %v295_v4 = vld [vmem:[%s698_s2 + $0x8] sm:$0xff]  ;;  %vm306_vm0 = vcmask 130048   ;;  %v275_v16 = vld [vmem:[%s697_s1 + $0x18] sm:$0xff] }
   0xc   : > { %560 = vset.pattern.permute.xlu0 %v577_v1  ;;  %561 = vset.pattern.permute.xlu1 %v577_v1  ;;  %s549_s25 = smul.u32 144, %s704_s22  ;;  %v273_v10 = vld [vmem:[%s697_s1 + $0x8] sm:$0xff]  ;;  %v410_v12 = vld [vmem:[%s699_s3] sm:$0xff]  ;;  %v274_v26 = vld [vmem:[%s697_s1 + $0x10] sm:$0xff]  ;;  %v578_v39 = vmov 16.0  }
   0xd   : > { %298 = vperm.xlu0 %560, %v294_v0   ;;  %562 = vset.pattern.permute.xlu2 %v577_v1  ;;  %v425_v18 = vld [vmem:[%s700_s4 + $0x8] sm:$0xff]  ;;  %v272_v25 = vld [vmem:[%s697_s1] sm:$0xff]  ;;  %563 = vrcp.f32 %v578_v39 }
   0xe   : > { %s631_s28 = scalar_lea.vmem %s696_s0, %s549_s25  ;;  %v411_v42 = vld [vmem:[%s699_s3 + $0x8] sm:$0xff]  ;;  %v424_v57 = vld [vmem:[%s700_s4] sm:$0xff]  ;;  %s531_s25 = sshll.u32 %s704_s22, 4 }
   0xf   : > { %v291_v2 = vld [vmem:[%s631_s28 + $0x78] sm:$0xff]  ;;  %v290_v3 = vld [vmem:[%s631_s28 + $0x70] sm:$0xff]  ;;  %v289_v5 = vld [vmem:[%s631_s28 + $0x68] sm:$0xff]  ;;  %s271_s30 = scalar_lea.vmem %s702_s6, %s531_s25 }
  0x10   : > { %313 = vmatpush.msra.mxu0 %v291_v2  ;;  %533 = vmatpush.msra.mxu2 %v291_v2  ;;  %v288_v6 = vld [vmem:[%s631_s28 + $0x60] sm:$0xff]  ;;  %v293_v7 = vld [vmem:[%s631_s28 + $0x88] sm:$0xff]  ;;  %v287_v9 = vld [vmem:[%s631_s28 + $0x58] sm:$0xff] }
  0x11   : > { %v292_v8 = vld [vmem:[%s631_s28 + $0x80] sm:$0xff]  ;;  %350 = vmatpush.msra.mxu1 %v293_v7  ;;  %v286_v11 = vld [vmem:[%s631_s28 + $0x50] sm:$0xff]  ;;  %v285_v13 = vld [vmem:[%s631_s28 + $0x48] sm:$0xff] }
  0x12   : > { %314 = vmatpush.msra.mxu0 %v290_v3  ;;  %534 = vmatpush.msra.mxu2 %v290_v3  ;;  %v284_v14 = vld [vmem:[%s631_s28 + $0x40] sm:$0xff]  ;;  %v283_v15 = vld [vmem:[%s631_s28 + $0x38] sm:$0xff]  ;;  %v282_v17 = vld [vmem:[%s631_s28 + $0x30] sm:$0xff] }
  0x13   : > { %351 = vmatpush.msra.mxu1 %v292_v8  ;;  %v281_v19 = vld [vmem:[%s631_s28 + $0x28] sm:$0xff]  ;;  %v280_v20 = vld [vmem:[%s631_s28 + $0x20] sm:$0xff]  ;;  %v279_v21 = vld [vmem:[%s631_s28 + $0x18] sm:$0xff]  ;;  %v564_v40 = vpop.eup %563 }
  0x14   : > { %315 = vmatpush.msra.mxu0 %v289_v5  ;;  %535 = vmatpush.msra.mxu2 %v289_v5  ;;  %v278_v22 = vld [vmem:[%s631_s28 + $0x10] sm:$0xff]  ;;  %v277_v23 = vld [vmem:[%s631_s28 + $0x8] sm:$0xff]  ;;  %v276_v24 = vld [vmem:[%s631_s28] sm:$0xff]  ;;  %v366_v41 = vmul.f32 16.0, %v564_v40  ;;  %vm370_vm1 = vweird.f32 %v564_v40  ;;  %s266_s28 = scalar_lea.vmem %s701_s5, %s531_s25 }
  0x15   : > { %303 = vperm.xlu0 %560, %v295_v4   ;;  %527 = vmatmul.msk.f32.vlgmr.msra.gmra.mxu1 %vm306_vm0, %v273_v10 }
  0x16   : > { %316 = vmatpush.msra.mxu0 %v288_v6  ;;  %536 = vmatpush.msra.mxu2 %v288_v6  ;;  %v367_v43 = vsub.f32 1.0, %v366_v41 }
  0x18   : > { %317 = vmatpush.msra.mxu0 %v287_v9  ;;  %537 = vmatpush.msra.mxu2 %v287_v9  ;;  %v368_v44 = vmul.f32 %v564_v40, %v367_v43 }
  0x1a   : > { %318 = vmatpush.msra.mxu0 %v286_v11  ;;  %538 = vmatpush.msra.mxu2 %v286_v11  ;;  %v369_v45 = vadd.f32 %v564_v40, %v368_v44 }
  0x1c   : > { %319 = vmatpush.msra.mxu0 %v285_v13  ;;  %539 = vmatpush.msra.mxu2 %v285_v13  ;;  %v371_v46 = vsel %vm370_vm1, %v564_v40, %v369_v45 }
  0x1d   : > { %414 = vperm.xlu0 %560, %v410_v12   ;;  %528 = vmatmul.msk.f32.gmra.mxu1 %vm306_vm0, %v275_v16  ;;  %v438_v16 = vld [vmem:[%s266_s28] sm:$0xff] }
  0x1e   : > { %320 = vmatpush.msra.mxu0 %v284_v14  ;;  %540 = vmatpush.msra.mxu2 %v284_v14 }
  0x20   : > { %321 = vmatpush.msra.mxu0 %v283_v15  ;;  %541 = vmatpush.msra.mxu2 %v283_v15 }
  0x22   : > { %322 = vmatpush.msra.mxu0 %v282_v17  ;;  %542 = vmatpush.msra.mxu2 %v282_v17 }
  0x24   : > { %323 = vmatpush.msra.mxu0 %v281_v19  ;;  %543 = vmatpush.msra.mxu2 %v281_v19 }
  0x25   : > { %433 = vperm.xlu0 %560, %v425_v18  }
  0x26   : > { %324 = vmatpush.msra.mxu0 %v280_v20  ;;  %544 = vmatpush.msra.mxu2 %v280_v20 }
  0x28   : > { %325 = vmatpush.msra.mxu0 %v279_v21  ;;  %545 = vmatpush.msra.mxu2 %v279_v21 }
  0x2a   : > { %326 = vmatpush.msra.mxu0 %v278_v22  ;;  %546 = vmatpush.msra.mxu2 %v278_v22 }
  0x2c   : > { %327 = vmatpush.msra.mxu0 %v277_v23  ;;  %547 = vmatpush.msra.mxu2 %v277_v23 }
  0x2e   : > { %328 = vmatpush.msra.mxu0 %v276_v24  ;;  %548 = vmatpush.msra.mxu2 %v276_v24 }
  0x2f   : > { %329 = vmatmul.f32.vlgmr.msra.gmra.mxu0 %v272_v25  ;;  %332 = vmatmul.f32.vlgmr.msra.gmra.mxu2 %v274_v26 }
  0x7f   : > { %v299_v27 = vpop.permute.xlu0 %298 }
  0x87   : > { %v304_v32 = vpop.permute.xlu0 %303 }
  0x8f   : > { %v415_v11 = vpop.permute.xlu0 %414 }
  0x92   : > { %v353_v28 = vpop.f32.mrf.mxu1 }
  0x97   : > { %v434_v26 = vpop.permute.xlu0 %433 }
  0x9a   : > { %v356_v35 = vpop.f32.mrf.mxu1 }
  0xac   : > { %v330_v29 = vpop.f32.mrf.mxu0 }
  0xad   : > { %v331_v30 = vadd.f32 %v330_v29, %v299_v27  ;;  %v439_v27 = vld [vmem:[%s266_s28 + $0x8] sm:$0xff] }
  0xaf   : > { %v354_v31 = vadd.f32 %v353_v28, %v331_v30 }
  0xb1   : > { %v359_v33 = vsel %vm306_vm0, %v354_v31, 0.0 }
  0xb2   : > { %v333_v34 = vpop.f32.mrf.mxu2  ;;  %360 = vadd.xlane.f32.xlu1 %v359_v33 }
  0xb3   : > { %v334_v36 = vadd.f32 %v333_v34, %v304_v32 }
  0xb5   : > { %v357_v37 = vadd.f32 %v356_v35, %v334_v36 }
  0xb7   : > { %v362_v38 = vsel %vm306_vm0, %v357_v37, 0.0 }
  0xba   : > { %363 = vadd.xlane.f32.xlu1 %v362_v38 }
  0xd3   : > { %419 = vperm.xlu1 %561, %v411_v42  }
 0x125   : > { %v361_v47 = vpop.xlane.xlu1 %360 }
 0x126   : > { %v372_v48 = vmul.f32 %v371_v46, %v361_v47 }
 0x128   : > { %v374_v49 = vsub.f32 %v354_v31, %v372_v48 }
 0x12a   : > { %v376_v50 = vmul.f32 %v374_v49, %v374_v49 }
 0x12c   : > { %v378_v51 = vsel %vm306_vm0, %v376_v50, 0.0 }
 0x12d   : > { %379 = vadd.xlane.f32.xlu2 %v378_v51  ;;  %v364_v52 = vpop.xlane.xlu1 %363 }
 0x12e   : > { %v373_v53 = vmul.f32 %v371_v46, %v364_v52 }
 0x130   : > { %v375_v54 = vsub.f32 %v357_v37, %v373_v53 }
 0x132   : > { %v377_v55 = vmul.f32 %v375_v54, %v375_v54 }
 0x134   : > { %v381_v56 = vsel %vm306_vm0, %v377_v55, 0.0 }
 0x135   : > { %382 = vadd.xlane.f32.xlu2 %v381_v56 }
 0x145   : > { %v420_v21 = vpop.permute.xlu1 %419 }
 0x14d   : > { %428 = vperm.xlu2 %562, %v424_v57  }
 0x1a0   : > { %v380_v58 = vpop.xlane.xlu2 %379 }
 0x1a1   : > { %v384_v59 = vmul.f32 %v380_v58, %v371_v46 }
 0x1a3   : > { %v386_v60 = vadd.f32 1e-05, %v384_v59 }
 0x1a5   : > { %565 = vrsqrt.f32 %v386_v60  ;;  %vm394_vm3 = vweird.f32 %v386_v60 }
 0x1a8   : > { %v383_v61 = vpop.xlane.xlu2 %382 }
 0x1a9   : > { %v385_v62 = vmul.f32 %v383_v61, %v371_v46 }
 0x1ab   : > { %v566_v63 = vpop.eup %565  ;;  %v387_v0 = vadd.f32 1e-05, %v385_v62 }
 0x1ac   : > { %v389_v1 = vmul.f32 %v566_v63, %v386_v60  ;;  %vm395_vm2 = vweird.f32 %v566_v63 }
 0x1ad   : > { %567 = vrsqrt.f32 %v387_v0  ;;  %vm396_vm4 = vmor %vm394_vm3, %vm395_vm2  ;;  %vm404_vm6 = vweird.f32 %v387_v0 }
 0x1ae   : > { %v390_v2 = vmul.f32 %v566_v63, %v389_v1 }
 0x1b0   : > { %v391_v3 = vmul.f32 0.5, %v390_v2  ;;  %v429_v13 = vpop.permute.xlu2 %428 }
 0x1b2   : > { %v392_v4 = vsub.f32 1.5, %v391_v3 }
 0x1b3   : > { %v568_v5 = vpop.eup %567 }
 0x1b4   : > { %v399_v6 = vmul.f32 %v568_v5, %v387_v0  ;;  %v393_v7 = vmul.f32 %v566_v63, %v392_v4  ;;  %vm405_vm5 = vweird.f32 %v568_v5 }
 0x1b5   : > { %vm406_vm7 = vmor %vm404_vm6, %vm405_vm5 }
 0x1b6   : > { %v400_v8 = vmul.f32 %v568_v5, %v399_v6  ;;  %v397_v9 = vsel %vm396_vm4, %v566_v63, %v393_v7 }
 0x1b7   : > { %v408_v10 = vmul.f32 %v397_v9, %v374_v49 }
 0x1b8   : > { %v401_v12 = vmul.f32 0.5, %v400_v8 }
 0x1b9   : > { %v422_v14 = vmul.f32 %v415_v11, %v408_v10 }
 0x1ba   : > { %v402_v15 = vsub.f32 1.5, %v401_v12 }
 0x1bb   : > { %v436_v17 = vadd.f32 %v429_v13, %v422_v14 }
 0x1bc   : > { %v403_v18 = vmul.f32 %v568_v5, %v402_v15 }
 0x1bd   : > { %v440_v19 = vadd.f32 %v438_v16, %v436_v17 }
 0x1be   : > { %v407_v20 = vsel %vm406_vm7, %v568_v5, %v403_v18 }
 0x1bf   : > { %vm442_vm8 = vcmp.ge.f32.partialorder %v440_v19, 0.0  ;;  %v444_v22 = vmul.f32 0.01, %v440_v19  ;;  %v409_v23 = vmul.f32 %v407_v20, %v375_v54 }
 0x1c1   : > { %v446_v24 = vsel %vm442_vm8, %v440_v19, %v444_v22  ;;  %v423_v25 = vmul.f32 %v420_v21, %v409_v23 }
 0x1c2   : > { %448 = vst.msk [vmem:[%s271_s30] sm:$0xff] %vm306_vm0, %v446_v24 }
 0x1c3   : > { %v437_v28 = vadd.f32 %v434_v26, %v423_v25 }
 0x1c5   : > { %v441_v29 = vadd.f32 %v439_v27, %v437_v28 }
 0x1c7   : > { %vm443_vm9 = vcmp.ge.f32.partialorder %v441_v29, 0.0  ;;  %v445_v30 = vmul.f32 0.01, %v441_v29 }
 0x1c9   : > { %v447_v31 = vsel %vm443_vm9, %v441_v29, %v445_v30 }
 0x1ca   : > { %449 = vst.msk [vmem:[%s271_s30 + $0x8] sm:$0xff] %vm306_vm0, %v447_v31 }
 0x1cb PF: > { %s16_s21 = sadd.s32 1, %s575_s21  }
 0x1cc   : > { %p13_p4 = scmp.ge.s32.totalorder %s16_s21, 4  }
 0x1ce   :  { %15 = sbr.rel (!%p13_p4) target bundleno = 1 (0x1), region = 77 }

// kernel: umamba_bot_forward.27
= control target key start
LH: loop header
LB: loop body
LE: loop exit
PB: predicated region body
PF: predicated region fallthrough
CT: control target
= control target key end

     0   :  { %s1220_s21 = smov 0   ;;  %s1450_s0 = inlined_call_operand.vmem [shape: f32[2,16,16], index: 0, kind: input, shape index: {}]   ;;  %s1451_s1 = inlined_call_operand.vmem [shape: f32[1,16], index: 1, kind: input, shape index: {}]   ;;  %s1452_s2 = inlined_call_operand.vmem [shape: f32[1,16], index: 2, kind: input, shape index: {}]   ;;  %s1453_s3 = inlined_call_operand.vmem [shape: f32[16,64], index: 3, kind: input, shape index: {}]   ;;  %s1454_s4 = inlined_call_operand.vmem [shape: f32[4,32], index: 4, kind: input, shape index: {}]   ;;  %s1455_s5 = inlined_call_operand.vmem [shape: f32[1,32], index: 5, kind: input, shape index: {}]   ;;  %s1456_s6 = inlined_call_operand.vmem [shape: f32[32,33], index: 6, kind: input, shape index: {}]   ;;  %s1457_s7 = inlined_call_operand.vmem [shape: f32[1,32], index: 7, kind: input, shape index: {}]   ;;  %s1458_s8 = inlined_call_operand.vmem [shape: f32[1,32], index: 8, kind: input, shape index: {}]   ;;  %s1459_s9 = inlined_call_operand.vmem [shape: f32[16,32], index: 9, kind: input, shape index: {}]   ;;  %s1460_s10 = inlined_call_operand.vmem [shape: f32[1,32], index: 10, kind: input, shape index: {}]   ;;  %s1461_s11 = inlined_call_operand.vmem [shape: f32[32,16], index: 11, kind: input, shape index: {}]   ;;  %s1462_s12 = inlined_call_operand.vmem [shape: f32[2,16,16], index: 12, kind: output, shape index: {}]  }
   0x1 LB: > { %s967_s22 = sadd.s32 4294967295, %s1127_s21   ;;  %p971_p0 = scmp.ge.s32.totalorder %s1127_s21, 1  ;;  %s1127_s21 = sphi %s1220_s21, %s22_s21  }
   0x2   : > { %p362_p1 = scmp.lt.s32.totalorder %s1127_s21, 3 }
   0x4   : > { %p363_p2 = pnand %p971_p0, %p362_p1 }
   0x5   : > { %p404_p3 = scmp.lt.s32.totalorder (!%p363_p2), %s967_s22, 1  ;;  %s1350_s15 = smov (!%p363_p2), 0  }
   0x6   : > { %366 = sbr.rel (%p363_p2) target bundleno = 1321 (0x529), region = 68 }
   0xb   : > { %s1468_s22 = smov (!%p404_p3, %s967_s22), 1  ;;  %vm416_vm0 = vcmask 130048   ;;  %v1149_v4 = vmov 16.0   ;;  %v481_v21 = vld [vmem:[%s1453_s3 + $0x8] sm:$0xff]  ;;  %v480_v22 = vld [vmem:[%s1453_s3] sm:$0xff]  ;;  %vm511_vm8 = vcmask 256000  }
   0xc   : > { %s991_s23 = sshll.u32 %s1468_s22, 4  ;;  %1062 = vrcp.f32 %v1149_v4  ;;  %502 = vmatpush.msra.mxu0 %v481_v21  ;;  %v1053_v37 = vld [vmem:[%s1451_s1] ss:$0 sm:$0xff]  ;;  %v1150_v51 = vmov 0.0   ;;  %v596_v52 = vld [vmem:[%s1456_s6 + $0x18] sm:$0xff]  ;;  %v595_v53 = vld [vmem:[%s1456_s6 + $0x10] sm:$0xff] }
   0xd   : > { %s408_s26 = scalar_lea.vmem %s1450_s0, %s991_s23  ;;  %s1234_s29 = scalar_lea.vmem %s1462_s12, %s991_s23  ;;  %v1054_v41 = vld [vmem:[%s1452_s2] ss:$0 sm:$0xff]  ;;  %512 = vst.msk [vmem:[#allocation2] sm:$0x7] %vm511_vm8, %v1150_v51  ;;  %615 = vmatpush.msra.mxu1 %v596_v52  ;;  %993 = vmatpush.msra.mxu3 %v596_v52  ;;  %v594_v54 = vld [vmem:[%s1456_s6 + $0x8] sm:$0xff]  ;;  %vm513_vm9 = vcmask 261120  }
   0xe   : > { %v414_v0 = vld [vmem:[%s408_s26] sm:$0xff]  ;;  %v415_v2 = vld [vmem:[%s408_s26 + $0x8] sm:$0xff]  ;;  %503 = vmatpush.msra.mxu0 %v480_v22  ;;  %v1151_v51 = vmov 0   ;;  %s1152_s23 = smov 127  }
   0xf   : > { %v417_v1 = vsel %vm416_vm0, %v414_v0, 0.0  ;;  %v420_v3 = vsel %vm416_vm0, %v415_v2, 0.0  ;;  %616 = vmatpush.msra.mxu1 %v595_v53  ;;  %994 = vmatpush.msra.mxu3 %v595_v53  ;;  %v593_v55 = vld [vmem:[%s1456_s6] sm:$0xff] }
  0x10   : > { %418 = vadd.xlane.f32.xlu0 %v417_v1  ;;  %v1056_v57 = vld [vmem:[%s1454_s4] ss:$0 sm:$0xff]  ;;  %v1057_v59 = vld [vmem:[%s1454_s4 + $0x1] ss:$0 sm:$0xff]  ;;  %v1059_v4 = vld [vmem:[%s1454_s4 + $0x3] ss:$0 sm:$0xff]  ;;  %1051 = vset.pattern.permute.xlu2 %v1151_v51 }
  0x11   : > { %617 = vmatpush.msra.mxu1 %v594_v54  ;;  %995 = vmatpush.msra.mxu3 %v594_v54  ;;  %v1055_v58 = vld [vmem:[%s1455_s5] ss:$0 sm:$0xff] }
  0x12   : > { %v1063_v5 = vpop.eup %1062  ;;  %1052 = vset.pattern.permute.xlu0 %v1151_v51 }
  0x13   : > { %v424_v6 = vmul.f32 16.0, %v1063_v5  ;;  %vm428_vm1 = vweird.f32 %v1063_v5  ;;  %618 = vmatpush.msra.mxu1 %v593_v55  ;;  %996 = vmatpush.msra.mxu3 %v593_v55  ;;  %v1060_v55 = vld [vmem:[%s1457_s7] ss:$0 sm:$0xff] }
  0x15   : > { %v425_v7 = vsub.f32 1.0, %v424_v6 }
  0x17   : > { %v426_v8 = vmul.f32 %v1063_v5, %v425_v7 }
  0x18   : > { %421 = vadd.xlane.f32.xlu0 %v420_v3 }
  0x19   : > { %v427_v9 = vadd.f32 %v1063_v5, %v426_v8 }
  0x1b   : > { %v429_v10 = vsel %vm428_vm1, %v1063_v5, %v427_v9 }
  0x83   : > { %v419_v11 = vpop.xlane.xlu0 %418 }
  0x84   : > { %v430_v12 = vmul.f32 %v429_v10, %v419_v11 }
  0x86   : > { %v432_v13 = vsub.f32 %v414_v0, %v430_v12  ;;  %v1058_v0 = vld [vmem:[%s1454_s4 + $0x2] ss:$0 sm:$0xff] }
  0x88   : > { %v434_v14 = vmul.f32 %v432_v13, %v432_v13 }
  0x8a   : > { %v436_v15 = vsel %vm416_vm0, %v434_v14, 0.0 }
  0x8b   : > { %437 = vadd.xlane.f32.xlu1 %v436_v15  ;;  %v422_v16 = vpop.xlane.xlu0 %421 }
  0x8c   : > { %v431_v17 = vmul.f32 %v429_v10, %v422_v16 }
  0x8e   : > { %v433_v18 = vsub.f32 %v415_v2, %v431_v17 }
  0x90   : > { %v435_v19 = vmul.f32 %v433_v18, %v433_v18 }
  0x92   : > { %v439_v20 = vsel %vm416_vm0, %v435_v19, 0.0 }
  0x93   : > { %440 = vadd.xlane.f32.xlu1 %v439_v20 }
  0xfe   : > { %v438_v23 = vpop.xlane.xlu1 %437 }
  0xff   : > { %v442_v24 = vmul.f32 %v438_v23, %v429_v10 }
 0x101   : > { %v444_v25 = vadd.f32 1e-05, %v442_v24 }
 0x103   : > { %1064 = vrsqrt.f32 %v444_v25  ;;  %vm452_vm3 = vweird.f32 %v444_v25 }
 0x106   : > { %v441_v26 = vpop.xlane.xlu1 %440 }
 0x107   : > { %v443_v27 = vmul.f32 %v441_v26, %v429_v10 }
 0x109   : > { %v1065_v28 = vpop.eup %1064  ;;  %v445_v29 = vadd.f32 1e-05, %v443_v27 }
 0x10a   : > { %v447_v30 = vmul.f32 %v1065_v28, %v444_v25  ;;  %vm453_vm2 = vweird.f32 %v1065_v28 }
 0x10b   : > { %1066 = vrsqrt.f32 %v445_v29  ;;  %vm454_vm4 = vmor %vm452_vm3, %vm453_vm2  ;;  %vm462_vm6 = vweird.f32 %v445_v29 }
 0x10c   : > { %v448_v31 = vmul.f32 %v1065_v28, %v447_v30 }
 0x10e   : > { %v449_v32 = vmul.f32 0.5, %v448_v31 }
 0x110   : > { %v450_v33 = vsub.f32 1.5, %v449_v32 }
 0x111   : > { %v1067_v34 = vpop.eup %1066 }
 0x112   : > { %v451_v35 = vmul.f32 %v1065_v28, %v450_v33  ;;  %v457_v36 = vmul.f32 %v1067_v34, %v445_v29  ;;  %vm463_vm5 = vweird.f32 %v1067_v34 }
 0x113   : > { %vm464_vm7 = vmor %vm462_vm6, %vm463_vm5 }
 0x114   : > { %v455_v38 = vsel %vm454_vm4, %v1065_v28, %v451_v35  ;;  %v458_v39 = vmul.f32 %v1067_v34, %v457_v36 }
 0x115   : > { %v466_v40 = vmul.f32 %v455_v38, %v432_v13 }
 0x116   : > { %v459_v42 = vmul.f32 0.5, %v458_v39 }
 0x117   : > { %v472_v43 = vmul.f32 %v1053_v37, %v466_v40 }
 0x118   : > { %v460_v44 = vsub.f32 1.5, %v459_v42 }
 0x119   : > { %v478_v45 = vadd.f32 %v1054_v41, %v472_v43 }
 0x11a   : > { %v461_v46 = vmul.f32 %v1067_v34, %v460_v44 }
 0x11b   : > { %976 = vmatmul.msk.f32.vlgmr.msra.gmra.mxu0 %vm416_vm0, %v478_v45 }
 0x11c   : > { %v465_v47 = vsel %vm464_vm7, %v1067_v34, %v461_v46 }
 0x11d   : > { %v467_v48 = vmul.f32 %v465_v47, %v433_v18 }
 0x11f   : > { %v473_v49 = vmul.f32 %v1053_v37, %v467_v48 }
 0x121   : > { %v479_v50 = vadd.f32 %v1054_v41, %v473_v49 }
 0x123   : > { %977 = vmatmul.msk.f32.gmra.mxu0 %vm416_vm0, %v479_v50 }
 0x198   : > { %v1266_v56 = vpop.f32.mrf.mxu0 }
 0x199   : > { %514 = vst.msk [vmem:[#allocation2 + $0x3] sm:$0xff] %vm513_vm9, %v1266_v56 }
 0x1a0   : > { %v1279_v60 = vpop.f32.mrf.mxu0  ;;  %v521_v61 = vld [vmem:[#allocation2] sm:$0xff] }
 0x1a1   : > { %v529_v62 = vld [vmem:[#allocation2 + $0x1] sm:$0xff]  ;;  %515 = vst.msk [vmem:[#allocation2 + $0xb] sm:$0xff] %vm513_vm9, %v1279_v60  ;;  %v525_v63 = vmul.f32 %v1056_v57, %v521_v61 }
 0x1a2   : > { %v537_v1 = vld [vmem:[#allocation2 + $0x2] sm:$0xff]  ;;  %v533_v3 = vmul.f32 %v1057_v59, %v529_v62 }
 0x1a3   : > { %v527_v2 = vadd.f32 %v1055_v58, %v525_v63  ;;  %v545_v5 = vld [vmem:[#allocation2 + $0x3] sm:$0xff]  ;;  %v541_v7 = vmul.f32 %v1058_v0, %v537_v1 }
 0x1a4   : > { %v549_v9 = vmul.f32 %v1059_v4, %v545_v5 }
 0x1a5   : > { %v535_v6 = vadd.f32 %v533_v3, %v527_v2 }
 0x1a7   : > { %v543_v8 = vadd.f32 %v541_v7, %v535_v6 }
 0x1a8   : > { %v522_v10 = vld [vmem:[#allocation2 + $0x8] sm:$0xff] }
 0x1a9   : > { %v530_v11 = vld [vmem:[#allocation2 + $0x9] sm:$0xff]  ;;  %v551_v12 = vadd.f32 %v549_v9, %v543_v8  ;;  %v526_v13 = vmul.f32 %v1056_v57, %v522_v10  ;;  %v1061_v57 = vld [vmem:[%s1458_s8] ss:$0 sm:$0xff] }
 0x1aa   : > { %v538_v14 = vld [vmem:[#allocation2 + $0xa] sm:$0xff]  ;;  %v534_v17 = vmul.f32 %v1057_v59, %v530_v11 }
 0x1ab   : > { %v978_v15 = vmul.f32 -1.442695, %v551_v12  ;;  %v528_v16 = vadd.f32 %v1055_v58, %v526_v13  ;;  %v546_v18 = vld [vmem:[#allocation2 + $0xb] sm:$0xff]  ;;  %v542_v20 = vmul.f32 %v1058_v0, %v538_v14 }
 0x1ac   : > { %v550_v22 = vmul.f32 %v1059_v4, %v546_v18  ;;  %v702_v18 = vld [vmem:[%s1459_s9] sm:$0xff] }
 0x1ad   : > { %1068 = vpow2.f32 %v978_v15  ;;  %v536_v19 = vadd.f32 %v534_v17, %v528_v16 }
 0x1af   : > { %v544_v21 = vadd.f32 %v542_v20, %v536_v19  ;;  %v703_v19 = vld [vmem:[%s1459_s9 + $0x8] sm:$0xff]  ;;  %v704_v20 = vmul.f32 1.442695, %v702_v18 }
 0x1b1   : > { %v552_v23 = vadd.f32 %v550_v22, %v544_v21  ;;  %v706_v21 = vmul.f32 1.442695, %v703_v19  ;;  %v712_v22 = vlaneseq }
 0x1b3   : > { %v1069_v24 = vpop.eup %1068  ;;  %v979_v25 = vmul.f32 -1.442695, %v552_v23 }
 0x1b4   : > { %v559_v26 = vadd.f32 1.0, %v1069_v24 }
 0x1b5   : > { %1070 = vpow2.f32 %v979_v25  ;;  %v1325_v25 = vand.u32 127, %v712_v22 }
 0x1b6   : > { %1072 = vrcp.f32 %v559_v26  ;;  %v572_v32 = vand.u32 2147483648, %v559_v26  ;;  %v570_v34 = vand.u32 2147483647, %v559_v26  ;;  %vm566_vm11 = vweird.f32 %v559_v26 }
 0x1b8   : > { %v573_v37 = vor.u32 1.1754944e-38, %v572_v32  ;;  %vm571_vm13 = vcmp.eq.f32.partialorder %v570_v34, 8.507059e+37  ;;  %v1342_v34 = vmov 0.0  }
 0x1bb   : > { %v1071_v27 = vpop.eup %1070 }
 0x1bc   : > { %v1073_v28 = vpop.eup %1072  ;;  %v560_v29 = vadd.f32 1.0, %v1071_v27 }
 0x1bd   : > { %v562_v30 = vmul.f32 %v1073_v28, %v559_v26  ;;  %vm567_vm10 = vweird.f32 %v1073_v28 }
 0x1be   : > { %1074 = vrcp.f32 %v560_v29  ;;  %vm568_vm12 = vmor %vm566_vm11, %vm567_vm10  ;;  %v587_v43 = vand.u32 2147483648, %v560_v29  ;;  %v585_v45 = vand.u32 2147483647, %v560_v29  ;;  %vm581_vm15 = vweird.f32 %v560_v29 }
 0x1bf   : > { %v563_v31 = vsub.f32 1.0, %v562_v30 }
 0x1c0   : > { %v588_v47 = vor.u32 1.1754944e-38, %v587_v43  ;;  %vm586_vm2 = vcmp.eq.f32.partialorder %v585_v45, 8.507059e+37 }
 0x1c1   : > { %v564_v33 = vmul.f32 %v1073_v28, %v563_v31 }
 0x1c3   : > { %v565_v35 = vadd.f32 %v1073_v28, %v564_v33 }
 0x1c4   : > { %v1075_v36 = vpop.eup %1074 }
 0x1c5   : > { %v569_v38 = vsel %vm568_vm12, %v1073_v28, %v565_v35  ;;  %v577_v39 = vmul.f32 %v1075_v36, %v560_v29  ;;  %vm582_vm14 = vweird.f32 %v1075_v36  ;;  %v1344_v35 = vmov 0.0  }
 0x1c6   : > { %v574_v40 = vsel %vm571_vm13, %v573_v37, %v569_v38  ;;  %vm583_vm1 = vmor %vm581_vm15, %vm582_vm14  ;;  %v1348_v37 = vmov 0.0  }
 0x1c7   : > { %v1289_v41 = vmul.f32 %v574_v40, %v551_v12  ;;  %v578_v42 = vsub.f32 1.0, %v577_v39 }
 0x1c9   : > { %980 = vmatmul.msk.f32.vlgmr.msra.gmra.mxu1 %vm513_vm9, %v1289_v41  ;;  %v579_v44 = vmul.f32 %v1075_v36, %v578_v42 }
 0x1cb   : > { %v580_v46 = vadd.f32 %v1075_v36, %v579_v44 }
 0x1cd   : > { %v584_v48 = vsel %vm583_vm1, %v1075_v36, %v580_v46  ;;  %v1346_v36 = vmov 0.0  }
 0x1ce   : > { %v589_v49 = vsel %vm586_vm2, %v588_v47, %v584_v48 }
 0x1cf   : > { %v1293_v50 = vmul.f32 %v589_v49, %v552_v23  ;;  %v1321_v23 = vshrl.u32 %v712_v22, 7 }
 0x1d1   : > { %981 = vmatmul.msk.f32.vlgmr.msra.gmra.mxu3 %vm513_vm9, %v1293_v50  ;;  %v1331_v28 = vadd.s32 8, %v1321_v23 }
 0x246   : > { %v620_v52 = vpop.f32.mrf.mxu1 }
 0x247   : > { %628 = vrot.lane.b32.xlu2 %v620_v52, %s1152_s23 }
 0x24f   : > { %668 = vperm.xlu2 %1051, %v620_v52  }
 0x254   : > { %v623_v53 = vpop.f32.mrf.mxu3 }
 0x255   : > { %630 = vrot.lane.b32.xlu1 %v623_v53, %s1152_s23  ;;  %672 = vperm.xlu0 %1052, %v623_v53  }
 0x2a1   : > { %v629_v54 = vpop.permute.xlu2 %628 }
 0x2a2   : > { %634 = vxpose.xlu2.b32.start [1/2] (short) (narrow) %v629_v54, 32 }
 0x2a9   : > { %v669_v58 = vpop.permute.xlu2 %668 }
 0x2aa   : > { %v678_v59 = vmul.f32 %v1060_v55, %v669_v58 }
 0x2ac   : > { %v684_v61 = vadd.f32 %v1061_v57, %v678_v59 }
 0x2ae   : > { %v688_v62 = vmin.f32 %v684_v61, 20.0  ;;  %vm686_vm3 = vcmp.gt.f32.partialorder %v684_v61, 20.0 }
 0x2b0   : > { %v690_v63 = vmul.f32 1.442695, %v688_v62 }
 0x2b2   : > { %1076 = vpow2.f32 %v690_v63 }
 0x2b8   : > { %v1077_v0 = vpop.eup %1076 }
 0x2b9   : > { %v694_v1 = vadd.f32 1.0, %v1077_v0 }
 0x2bb   : > { %1078 = vlog2.f32 %v694_v1 }
 0x2c1   : > { %v1079_v2 = vpop.eup %1078 }
 0x2c2   : > { %v697_v3 = vmul.f32 0.6931472, %v1079_v2 }
 0x2c4   : > { %v1303_v4 = vsel %vm686_vm3, %v684_v61, %v697_v3 }
 0x2c5   : > { %v1307_v5 = vmul.f32 %v1303_v4, %v1289_v41 }
 0x2c7   : > { %v631_v6 = vpop.permute.xlu1 %630  ;;  %v673_v7 = vpop.permute.xlu0 %672 }
 0x2c8   : > { %v679_v8 = vmul.f32 %v1060_v55, %v673_v7  ;;  %635 = vxpose.xlu2.b32.end [2/2] (short) (narrow) %v631_v6, 32 }
 0x2ca   : > { %v685_v9 = vadd.f32 %v1061_v57, %v679_v8 }
 0x2cc   : > { %v689_v10 = vmin.f32 %v685_v9, 20.0  ;;  %vm687_vm4 = vcmp.gt.f32.partialorder %v685_v9, 20.0 }
 0x2ce   : > { %v692_v11 = vmul.f32 1.442695, %v689_v10 }
 0x2d0   : > { %1080 = vpow2.f32 %v692_v11 }
 0x2d6   : > { %v1081_v12 = vpop.eup %1080 }
 0x2d7   : > { %v695_v13 = vadd.f32 1.0, %v1081_v12 }
 0x2d9   : > { %1082 = vlog2.f32 %v695_v13 }
 0x2da   : > { %1084 = vpow2.f32 %v704_v20 }
 0x2db   : > { %1086 = vpow2.f32 %v706_v21 }
 0x2df   : > { %v1083_v14 = vpop.eup %1082 }
 0x2e0   : > { %v699_v15 = vmul.f32 0.6931472, %v1083_v14  ;;  %v1323_v24 = vpop.eup %1084 }
 0x2e1   : > { %v1327_v26 = vpop.eup %1086  ;;  %v708_v27 = vsub.f32 0.0, %v1323_v24 }
 0x2e2   : > { %v1309_v16 = vsel %vm687_vm4, %v685_v9, %v699_v15  ;;  %v709_v29 = vsub.f32 0.0, %v1327_v26 }
 0x2e3   : > { %v1313_v17 = vmul.f32 %v1309_v16, %v1293_v50 }
 0x359   : > { %v1334_v30 = vpop.trf.xlu2 }
 0x361   : > { %v1336_v31 = vpop.trf.xlu2 }
 0x369   : > { %v1338_v32 = vpop.trf.xlu2 }
 0x371   : > { %v1340_v33 = vpop.trf.xlu2 }
 0x372 LB: >> { %v727_v38 = vstv %s1147_s15  ;;  %v1153_v39 = vmov 0.0   ;;  %s722_s15 = sadd.s32 1, %s1147_s15   ;;  %s1147_s15 = sphi %s1350_s15, %s722_s15   ;;  %v1143_v37 = vphi %v1348_v37, %v785_v37   ;;  %v1139_v36 = vphi %v1346_v36, %v786_v36   ;;  %v1135_v35 = vphi %v1344_v35, %v1466_v35   ;;  %v1131_v34 = vphi %v1342_v34, %v1465_v34  }
 0x373   : >> { %vm734_vm5 = vcmp.eq.s32.totalorder %v1325_v25, %v727_v38  ;;  %vm728_vm6 = vcmp.eq.s32.totalorder %v1321_v23, %v727_v38  ;;  %vm729_vm7 = vcmp.eq.s32.totalorder %v1331_v28, %v727_v38  ;;  %p719_p4 = scmp.ge.s32.totalorder %s722_s15, 16  }
 0x374   : >> { %v984_v40 = vsel %vm734_vm5, 1.0, %v1153_v39  ;;  %v1367_v42 = vsel %vm728_vm6, 1.0, %v1153_v39  ;;  %v1369_v43 = vsel %vm729_vm7, 1.0, %v1153_v39  ;;  %s1154_s23 = smov (%p719_p4), 96  }
 0x375   : >> { %v759_v44 = vmul.f32 %v984_v40, %v1334_v30  ;;  %v737_v45 = vmul.f32 %v1367_v42, %v1303_v4  ;;  %v738_v46 = vmul.f32 %v1369_v43, %v1309_v16  ;;  %v767_v47 = vmul.f32 %v984_v40, %v1338_v32 }
 0x376   : >> { %v760_v54 = vmul.f32 %v984_v40, %v1336_v31  ;;  %v768_v55 = vmul.f32 %v984_v40, %v1340_v33  ;;  %v748_v59 = vmul.f32 %v1367_v42, %v1307_v5  ;;  %v749_v61 = vmul.f32 %v1369_v43, %v1313_v17 }
 0x377   : >> { %v761_v48 = vsel %vm416_vm0, %v759_v44, 0.0  ;;  %v739_v49 = vsel %vm513_vm9, %v737_v45, 0.0  ;;  %v740_v51 = vsel %vm513_vm9, %v738_v46, 0.0  ;;  %v769_v52 = vsel %vm416_vm0, %v767_v47, 0.0 }
 0x378   : >> { %762 = vadd.xlane.f32.xlu0 %v761_v48  ;;  %v741_v53 = vadd.f32 %v740_v51, %v739_v49  ;;  %770 = vadd.xlane.f32.xlu1 %v769_v52  ;;  %v764_v57 = vsel %vm416_vm0, %v760_v54, 0.0  ;;  %v772_v58 = vsel %vm416_vm0, %v768_v55, 0.0  ;;  %v750_v62 = vsel %vm513_vm9, %v748_v59, 0.0 }
 0x379   : >> { %v751_v63 = vsel %vm513_vm9, %v749_v61, 0.0 }
 0x37a   : >> { %v752_v0 = vadd.f32 %v751_v63, %v750_v62  ;;  %v742_v1 = vrot.slane %v741_v53, 4 }
 0x37c   : >> { %v743_v2 = vadd.f32 %v742_v1, %v741_v53  ;;  %v753_v8 = vrot.slane %v752_v0, 4 }
 0x37e   : >> { %v744_v3 = vrot.slane %v743_v2, 2  ;;  %v754_v10 = vadd.f32 %v753_v8, %v752_v0 }
 0x380   : >> { %765 = vadd.xlane.f32.xlu0 %v764_v57  ;;  %773 = vadd.xlane.f32.xlu1 %v772_v58  ;;  %v745_v6 = vadd.f32 %v744_v3, %v743_v2  ;;  %v755_v12 = vrot.slane %v754_v10, 2  ;;  %v863_v3 = vld [vmem:[%s1461_s11 + $0x18] sm:$0xff] (%p719_p4) }
 0x381   : > { %882 = vmatpush.msra.mxu2 (%p719_p4), %v863_v3 }
 0x382   : >> { %v746_v7 = vrot.slane %v745_v6, 1  ;;  %v756_v14 = vadd.f32 %v755_v12, %v754_v10 }
 0x384   : >> { %v747_v9 = vadd.f32 %v746_v7, %v745_v6  ;;  %v757_v18 = vrot.slane %v756_v14, 1  ;;  %v862_v6 = vld [vmem:[%s1461_s11 + $0x10] sm:$0xff] (%p719_p4) }
 0x385   : > { %883 = vmatpush.msra.mxu2 (%p719_p4), %v862_v6 }
 0x386   : >> { %v775_v11 = vmul.f32 %v747_v9, %v708_v27  ;;  %v776_v15 = vmul.f32 %v747_v9, %v709_v29  ;;  %v758_v21 = vadd.f32 %v757_v18, %v756_v14  ;;  %v1092_v18 = vld [vmem:[%s1460_s10] ss:$0 sm:$0xff] (%p719_p4) }
 0x388   : >> { %v777_v13 = vmul.f32 1.442695, %v775_v11  ;;  %v779_v19 = vmul.f32 1.442695, %v776_v15  ;;  %v860_v15 = vld [vmem:[%s1461_s11] sm:$0xff] (%p719_p4) }
 0x38a   : >> { %1088 = vpow2.f32 %v777_v13 }
 0x38b   : >> { %1090 = vpow2.f32 %v779_v19 }
 0x390   : >> { %v1089_v20 = vpop.eup %1088 }
 0x391   : >> { %v781_v22 = vmul.f32 %v1143_v37, %v1089_v20  ;;  %v1091_v44 = vpop.eup %1090 }
 0x392   : >> { %v782_v45 = vmul.f32 %v1139_v36, %v1091_v44 }
 0x3eb   : >> { %v763_v38 = vpop.xlane.xlu0 %762  ;;  %v771_v39 = vpop.xlane.xlu1 %770 }
 0x3ec   : >> { %v783_v40 = vmul.f32 %v763_v38, %v758_v21 }
 0x3ee   : >> { %v785_v37 = vadd.f32 %v783_v40, %v781_v22  }
 0x3f0   : >> { %v787_v49 = vmul.f32 %v785_v37, %v771_v39  ;;  %v861_v37 = vld [vmem:[%s1461_s11 + $0x8] sm:$0xff] (%p719_p4) }
 0x3f1   : > { %884 = vmatpush.msra.mxu2 (%p719_p4), %v861_v37 }
 0x3f2   : >> { %v789_v52 = vsel %vm513_vm9, %v787_v49, 0.0 }
 0x3f3   : >> { %v766_v46 = vpop.xlane.xlu0 %765  ;;  %v774_v48 = vpop.xlane.xlu1 %773  ;;  %885 = vmatpush.msra.mxu2 (%p719_p4), %v860_v15 }
 0x3f4   : >> { %v784_v47 = vmul.f32 %v766_v46, %v758_v21 }
 0x3f6   : >> { %v786_v36 = vadd.f32 %v784_v47, %v782_v45  }
 0x3f8   : >> { %v788_v51 = vmul.f32 %v786_v36, %v774_v48 }
 0x3fa   : >> { %v790_v53 = vsel %vm513_vm9, %v788_v51, 0.0 }
 0x3fb   : >> { %v791_v54 = vadd.f32 %v790_v53, %v789_v52 }
 0x3fd   : >> { %v792_v55 = vrot.slane %v791_v54, 4 }
 0x3ff   : >> { %v793_v57 = vadd.f32 %v792_v55, %v791_v54 }
 0x401   : >> { %v794_v58 = vrot.slane %v793_v57, 2 }
 0x403   : >> { %v795_v59 = vadd.f32 %v794_v58, %v793_v57 }
 0x405   : >> { %v796_v61 = vrot.slane %v795_v59, 1 }
 0x407   : >> { %v797_v62 = vadd.f32 %v796_v61, %v795_v59 }
 0x409   : >> { %v798_v63 = vmul.f32 %v1367_v42, %v797_v62  ;;  %v799_v0 = vmul.f32 %v1369_v43, %v797_v62  ;;  %v985_v42 = vmul.f32 (%p719_p4), -1.442695, %v1266_v56  ;;  %v986_v43 = vmul.f32 (%p719_p4), -1.442695, %v1279_v60 }
 0x40a   : > { %721 = sbr.rel (!%p719_p4) target bundleno = 882 (0x372), region = 105 }
 0x40b   : >> { %v1400_v35 = vadd.f32 %v1135_v35, %v798_v63   ;;  %v1403_v34 = vadd.f32 %v1131_v34, %v799_v0   ;;  %1093 = vpow2.f32 (%p719_p4), %v985_v42 }
 0x40c   : > { %1095 = vpow2.f32 (%p719_p4), %v986_v43 }
 0x40d   : >> { %v1463_v1 = vmov %v1400_v35  ;;  %v1464_v2 = vmov %v1403_v34 }
 0x40e   : >> { %v1465_v34 = vmov %v1464_v2  ;;  %v1466_v35 = vmov %v1463_v1 }
 0x411   : > { %v1094_v7 = vpop.eup %1093 }
 0x412   : > { %v1096_v4 = vpop.eup %1095  ;;  %v816_v5 = vadd.f32 1.0, %v1094_v7 }
 0x413   : > { %v817_v16 = vadd.f32 1.0, %v1096_v4 }
 0x414   : > { %1097 = vrcp.f32 %v816_v5  ;;  %v829_v25 = vand.u32 2147483648, %v816_v5  ;;  %vm823_vm8 = vweird.f32 %v816_v5  ;;  %v827_v28 = vand.u32 2147483647, %v816_v5 }
 0x415   : > { %1099 = vrcp.f32 %v817_v16  ;;  %vm838_vm11 = vweird.f32 %v817_v16  ;;  %v844_v33 = vand.u32 2147483648, %v817_v16  ;;  %v842_v35 = vand.u32 2147483647, %v817_v16 }
 0x416   : > { %v830_v31 = vor.u32 1.1754944e-38, %v829_v25  ;;  %vm828_vm14 = vcmp.eq.f32.partialorder %v827_v28, 8.507059e+37 }
 0x417   : > { %v845_v10 = vor.u32 1.1754944e-38, %v844_v33  ;;  %vm843_vm1 = vcmp.eq.f32.partialorder %v842_v35, 8.507059e+37 }
 0x41a   : > { %v1098_v17 = vpop.eup %1097 }
 0x41b   : > { %v1100_v23 = vpop.eup %1099  ;;  %v819_v24 = vmul.f32 %v1098_v17, %v816_v5  ;;  %vm824_vm10 = vweird.f32 %v1098_v17 }
 0x41c   : > { %v834_v26 = vmul.f32 %v1100_v23, %v817_v16  ;;  %vm839_vm12 = vweird.f32 %v1100_v23  ;;  %vm825_vm13 = vmor %vm823_vm8, %vm824_vm10 }
 0x41d   : > { %v820_v27 = vsub.f32 1.0, %v819_v24  ;;  %vm840_vm15 = vmor %vm838_vm11, %vm839_vm12 }
 0x41e   : > { %v835_v29 = vsub.f32 1.0, %v834_v26 }
 0x41f   : > { %v821_v30 = vmul.f32 %v1098_v17, %v820_v27 }
 0x420   : > { %v836_v32 = vmul.f32 %v1100_v23, %v835_v29 }
 0x421   : > { %v822_v34 = vadd.f32 %v1098_v17, %v821_v30 }
 0x422   : > { %v837_v36 = vadd.f32 %v1100_v23, %v836_v32 }
 0x423   : > { %v826_v8 = vsel %vm825_vm13, %v1098_v17, %v822_v34 }
 0x424   : > { %v831_v9 = vsel %vm828_vm14, %v830_v31, %v826_v8  ;;  %v841_v12 = vsel %vm840_vm15, %v1100_v23, %v837_v36 }
 0x425   : > { %v848_v11 = vmul.f32 %v831_v9, %v1266_v56  ;;  %v846_v13 = vsel %vm843_vm1, %v845_v10, %v841_v12  ;;  %v806_v56 = vmul.f32 %v1092_v18, %v1289_v41 }
 0x426   : > { %v849_v14 = vmul.f32 %v846_v13, %v1279_v60  ;;  %v807_v60 = vmul.f32 %v1092_v18, %v1293_v50 }
 0x427   : > { %852 = vrot.lane.b32.xlu0 %v848_v11, %s1154_s23  ;;  %v808_v19 = vadd.f32 %v806_v56, %v1463_v1 }
 0x428   : > { %v809_v22 = vadd.f32 %v807_v60, %v1464_v2 }
 0x42f   : > { %854 = vrot.lane.b32.xlu0 %v849_v14, %s1154_s23 }
 0x499   : > { %v853_v20 = vpop.permute.xlu0 %852 }
 0x49a   : > { %v858_v21 = vmul.f32 %v853_v20, %v808_v19 }
 0x49c   : > { %987 = vmatmul.msk.f32.vlgmr.msra.gmra.mxu2 %vm513_vm9, %v858_v21 }
 0x4a1   : > { %v855_v38 = vpop.permute.xlu0 %854 }
 0x4a2   : > { %v859_v39 = vmul.f32 %v855_v38, %v809_v22 }
 0x4a4   : > { %988 = vmatmul.msk.f32.gmra.mxu2 %vm513_vm9, %v859_v39 }
 0x51f   : > { %v887_v40 = vpop.f32.mrf.mxu2 }
 0x520   : > { %893 = vst.msk [vmem:[%s1234_s29] sm:$0xff] %vm416_vm0, %v887_v40 }
 0x527   : > { %v890_v44 = vpop.f32.mrf.mxu2 }
 0x528   : > { %894 = vst.msk [vmem:[%s1234_s29 + $0x8] sm:$0xff] %vm416_vm0, %v890_v44 }
 0x529 PF: > { %s22_s21 = sadd.s32 1, %s1127_s21  }
 0x52a   : > { %p19_p5 = scmp.ge.s32.totalorder %s22_s21, 4  }
 0x52c   :  { %21 = sbr.rel (!%p19_p5) target bundleno = 1 (0x1), region = 116 }

// kernel: umamba_bot_forward.30
= control target key start
LH: loop header
LB: loop body
LE: loop exit
PB: predicated region body
PF: predicated region fallthrough
CT: control target
= control target key end

     0   :  { %s423_s18 = smov 0   ;;  %s459_s0 = inlined_call_operand.vmem [shape: f32[2,16,64], index: 0, kind: input, shape index: {}]   ;;  %s460_s1 = inlined_call_operand.vmem [shape: f32[8,16], index: 1, kind: input, shape index: {}]   ;;  %s461_s2 = inlined_call_operand.vmem [shape: f32[8,1], index: 2, kind: input, shape index: {}]   ;;  %s462_s3 = inlined_call_operand.vmem [shape: f32[8,1], index: 3, kind: input, shape index: {}]   ;;  %s463_s4 = inlined_call_operand.vmem [shape: f32[8,1], index: 4, kind: input, shape index: {}]   ;;  %s464_s5 = inlined_call_operand.vmem [shape: f32[2,8,64], index: 5, kind: output, shape index: {}]  }
   0x1 LB: > { %s354_s19 = sadd.s32 4294967295, %s389_s18   ;;  %p358_p0 = scmp.ge.s32.totalorder %s389_s18, 1  ;;  %s389_s18 = sphi %s423_s18, %s15_s18  }
   0x2   : > { %p187_p1 = scmp.lt.s32.totalorder %s389_s18, 3 }
   0x4   : > { %p188_p2 = pnand %p358_p0, %p187_p1 }
   0x5   : > { %p214_p3 = scmp.lt.s32.totalorder (!%p188_p2), %s354_s19, 1 }
   0x6   : > { %191 = sbr.rel (%p188_p2) target bundleno = 415 (0x19f), region = 40 }
   0xb   : > { %v226_v0 = vld [vmem:[%s461_s2] sm:$0xff]  ;;  %v391_v1 = vmov 0   ;;  %s466_s19 = smov (!%p214_p3, %s354_s19), 1  ;;  %vm232_vm0 = vcmask 130048   ;;  %vm256_vm1 = vcmask 523264   ;;  %v392_v9 = vmov 64.0  }
   0xc   : > { %376 = vset.pattern.permute.xlu0 %v391_v1  ;;  %377 = vset.pattern.permute.xlu1 %v391_v1  ;;  %s365_s22 = sshll.u32 %s466_s19, 4  ;;  %v223_v4 = vld [vmem:[%s460_s1] sm:$0xff]  ;;  %379 = vrcp.f32 %v392_v9  ;;  %s361_s7 = sshll.u32 %s466_s19, 3 }
   0xd   : > { %229 = vperm.xlu0 %376, %v226_v0   ;;  %378 = vset.pattern.permute.xlu2 %v391_v1  ;;  %s218_s25 = scalar_lea.vmem %s459_s0, %s365_s22  ;;  %v293_v18 = vld [vmem:[%s463_s4] sm:$0xff]  ;;  %s222_s10 = scalar_lea.vmem %s464_s5, %s361_s7 }
   0xe   : > { %v225_v2 = vld [vmem:[%s218_s25 + $0x8] sm:$0xff]  ;;  %v224_v3 = vld [vmem:[%s218_s25] sm:$0xff]  ;;  %296 = vperm.xlu2 %378, %v293_v18  }
   0xf   : > { %250 = vmatpush.msra.mxu0 %v225_v2  ;;  %v286_v22 = vld [vmem:[%s462_s3] sm:$0xff] }
  0x11   : > { %251 = vmatpush.msra.mxu0 %v224_v3 }
  0x12   : > { %362 = vmatmul.msk.f32.vlgmr.msra.gmra.mxu0 %vm232_vm0, %v223_v4  ;;  %v380_v10 = vpop.eup %379 }
  0x13   : > { %v261_v11 = vmul.f32 64.0, %v380_v10  ;;  %vm265_vm2 = vweird.f32 %v380_v10 }
  0x15   : > { %v262_v12 = vsub.f32 1.0, %v261_v11 }
  0x17   : > { %v263_v13 = vmul.f32 %v380_v10, %v262_v12 }
  0x19   : > { %v264_v14 = vadd.f32 %v380_v10, %v263_v13 }
  0x1b   : > { %v266_v15 = vsel %vm265_vm2, %v380_v10, %v264_v14 }
  0x68   : > { %v297_v35 = vpop.permute.xlu2 %296 }
  0x7f   : > { %v230_v5 = vpop.permute.xlu0 %229 }
  0x8f   : > { %v253_v6 = vpop.f32.mrf.mxu0 }
  0x90   : > { %v254_v7 = vadd.f32 %v253_v6, %v230_v5 }
  0x92   : > { %v257_v8 = vsel %vm256_vm1, %v254_v7, 0.0 }
  0x93   : > { %258 = vadd.xlane.f32.xlu0 %v257_v8 }
 0x106   : > { %v259_v16 = vpop.xlane.xlu0 %258 }
 0x107   : > { %v267_v17 = vmul.f32 %v266_v15, %v259_v16 }
 0x109   : > { %v268_v19 = vsub.f32 %v254_v7, %v267_v17 }
 0x10b   : > { %v269_v20 = vmul.f32 %v268_v19, %v268_v19 }
 0x10d   : > { %v270_v21 = vsel %vm256_vm1, %v269_v20, 0.0 }
 0x10e   : > { %271 = vadd.xlane.f32.xlu1 %v270_v21 }
 0x127   : > { %289 = vperm.xlu1 %377, %v286_v22  }
 0x181   : > { %v272_v23 = vpop.xlane.xlu1 %271 }
 0x182   : > { %v273_v24 = vmul.f32 %v272_v23, %v266_v15 }
 0x184   : > { %v274_v25 = vadd.f32 1e-05, %v273_v24 }
 0x186   : > { %381 = vrsqrt.f32 %v274_v25  ;;  %vm281_vm4 = vweird.f32 %v274_v25 }
 0x18c   : > { %v382_v26 = vpop.eup %381 }
 0x18d   : > { %v276_v27 = vmul.f32 %v382_v26, %v274_v25  ;;  %vm282_vm3 = vweird.f32 %v382_v26 }
 0x18e   : > { %vm283_vm5 = vmor %vm281_vm4, %vm282_vm3 }
 0x18f   : > { %v277_v28 = vmul.f32 %v382_v26, %v276_v27 }
 0x191   : > { %v278_v29 = vmul.f32 0.5, %v277_v28 }
 0x193   : > { %v279_v30 = vsub.f32 1.5, %v278_v29 }
 0x195   : > { %v280_v31 = vmul.f32 %v382_v26, %v279_v30 }
 0x197   : > { %v284_v32 = vsel %vm283_vm5, %v382_v26, %v280_v31 }
 0x198   : > { %v285_v33 = vmul.f32 %v284_v32, %v268_v19 }
 0x199   : > { %v290_v34 = vpop.permute.xlu1 %289 }
 0x19a   : > { %v292_v36 = vmul.f32 %v290_v34, %v285_v33 }
 0x19c   : > { %v299_v37 = vadd.f32 %v297_v35, %v292_v36 }
 0x19e   : > { %300 = vst.msk [vmem:[%s222_s10] sm:$0xff] %vm256_vm1, %v299_v37 }
 0x19f PF: > { %s15_s18 = sadd.s32 1, %s389_s18  }
 0x1a0   : > { %p12_p4 = scmp.ge.s32.totalorder %s15_s18, 4  }
 0x1a2   :  { %14 = sbr.rel (!%p12_p4) target bundleno = 1 (0x1), region = 70 }

// kernel: umamba_bot_forward.32
= control target key start
LH: loop header
LB: loop body
LE: loop exit
PB: predicated region body
PF: predicated region fallthrough
CT: control target
= control target key end

     0   :  { %s324_s12 = smov 0   ;;  %s353_s0 = inlined_call_operand.vmem [shape: f32[16,8], index: 0, kind: input, shape index: {}]   ;;  %s354_s1 = inlined_call_operand.vmem [shape: f32[2,8,64], index: 1, kind: input, shape index: {}]   ;;  %s355_s2 = inlined_call_operand.vmem [shape: f32[16,1], index: 2, kind: input, shape index: {}]   ;;  %s356_s3 = inlined_call_operand.vmem [shape: f32[2,16,64], index: 3, kind: output, shape index: {}]  }
   0x1 LB: > { %s271_s13 = sadd.s32 4294967295, %s301_s12   ;;  %p275_p0 = scmp.ge.s32.totalorder %s301_s12, 1  ;;  %s301_s12 = sphi %s324_s12, %s13_s12  }
   0x2   : > { %p136_p1 = scmp.lt.s32.totalorder %s301_s12, 3 }
   0x4   : > { %p137_p2 = pnand %p275_p0, %p136_p1 }
   0x5   : > { %p159_p3 = scmp.lt.s32.totalorder (!%p137_p2), %s271_s13, 1 }
   0x6   : > { %140 = sbr.rel (%p137_p2) target bundleno = 146 (0x92), region = 32 }
   0xb   : > { %v171_v0 = vld [vmem:[%s355_s2] sm:$0xff]  ;;  %v303_v1 = vmov 0   ;;  %s358_s13 = smov (!%p159_p3, %s271_s13), 1  ;;  %vm183_vm0 = vcmask 64512   ;;  %v169_v3 = vld [vmem:[%s353_s0 + $0x8] sm:$0xff]  ;;  %vm213_vm1 = vcmask 523264  }
   0xc   : > { %294 = vset.pattern.permute.xlu0 %v303_v1  ;;  %s276_s16 = sshll.u32 %s358_s13, 3  ;;  %v168_v2 = vld [vmem:[%s353_s0] sm:$0xff]  ;;  %v172_v5 = vld [vmem:[%s355_s2 + $0x8] sm:$0xff]  ;;  %s283_s26 = sshll.u32 %s358_s13, 4 }
   0xd   : > { %175 = vperm.xlu0 %294, %v171_v0   ;;  %s162_s19 = scalar_lea.vmem %s354_s1, %s276_s16  ;;  %s167_s29 = scalar_lea.vmem %s356_s3, %s283_s26 }
   0xe   : > { %v170_v4 = vld [vmem:[%s162_s19] sm:$0xff] }
   0xf   : > { %205 = vmatpush.msra.mxu0 %v170_v4  ;;  %284 = vmatpush.msra.mxu1 %v170_v4 }
  0x10   : > { %279 = vmatmul.msk.f32.vlgmr.msra.gmra.mxu0 %vm183_vm0, %v168_v2  ;;  %280 = vmatmul.msk.f32.vlgmr.msra.gmra.mxu1 %vm183_vm0, %v169_v3 }
  0x15   : > { %180 = vperm.xlu0 %294, %v172_v5  }
  0x7f   : > { %v176_v6 = vpop.permute.xlu0 %175 }
  0x87   : > { %v181_v7 = vpop.permute.xlu0 %180 }
  0x8d   : > { %v207_v8 = vpop.f32.mrf.mxu0  ;;  %v210_v9 = vpop.f32.mrf.mxu1 }
  0x8e   : > { %v208_v10 = vadd.f32 %v207_v8, %v176_v6  ;;  %v211_v11 = vadd.f32 %v210_v9, %v181_v7 }
  0x90   : > { %214 = vst.msk [vmem:[%s167_s29] sm:$0xff] %vm213_vm1, %v208_v10 }
  0x91   : > { %215 = vst.msk [vmem:[%s167_s29 + $0x8] sm:$0xff] %vm213_vm1, %v211_v11 }
  0x92 PF: > { %s13_s12 = sadd.s32 1, %s301_s12  }
  0x93   : > { %p10_p4 = scmp.ge.s32.totalorder %s13_s12, 4  }
  0x95   :  { %12 = sbr.rel (!%p10_p4) target bundleno = 1 (0x1), region = 62 }

// kernel: umamba_bot_forward.29
= control target key start
LH: loop header
LB: loop body
LE: loop exit
PB: predicated region body
PF: predicated region fallthrough
CT: control target
= control target key end

     0   :  { %s462_s18 = smov 0   ;;  %s521_s0 = inlined_call_operand.vmem [shape: f32[2,144,64], index: 0, kind: input, shape index: {}]   ;;  %s522_s1 = inlined_call_operand.vmem [shape: f32[8,144], index: 1, kind: input, shape index: {}]   ;;  %s523_s2 = inlined_call_operand.vmem [shape: f32[8,1], index: 2, kind: input, shape index: {}]   ;;  %s524_s3 = inlined_call_operand.vmem [shape: f32[8,1], index: 3, kind: input, shape index: {}]   ;;  %s525_s4 = inlined_call_operand.vmem [shape: f32[8,1], index: 4, kind: input, shape index: {}]   ;;  %s526_s5 = inlined_call_operand.vmem [shape: f32[2,8,64], index: 5, kind: output, shape index: {}]  }
   0x1 LB: > { %s394_s19 = sadd.s32 4294967295, %s428_s18   ;;  %p398_p0 = scmp.ge.s32.totalorder %s428_s18, 1  ;;  %s428_s18 = sphi %s462_s18, %s15_s18  }
   0x2   : > { %p187_p1 = scmp.lt.s32.totalorder %s428_s18, 3 }
   0x4   : > { %p188_p2 = pnand %p398_p0, %p187_p1 }
   0x5   : > { %p214_p3 = scmp.lt.s32.totalorder (!%p188_p2), %s394_s19, 1 }
   0x6   : > { %191 = sbr.rel (%p188_p2) target bundleno = 449 (0x1c1), region = 40 }
   0xb   : > { %s528_s19 = smov (!%p214_p3, %s394_s19), 1  ;;  %v430_v2 = vmov 0   ;;  %v224_v8 = vld [vmem:[%s522_s1 + $0x8] sm:$0xff]  ;;  %vm249_vm0 = vcmask 130048   ;;  %v243_v9 = vld [vmem:[%s523_s2] sm:$0xff]  ;;  %vm293_vm1 = vcmask 523264  }
   0xc   : > { %s404_s20 = smul.u32 144, %s528_s19  ;;  %415 = vset.pattern.permute.xlu0 %v430_v2  ;;  %416 = vset.pattern.permute.xlu1 %v430_v2  ;;  %v223_v21 = vld [vmem:[%s522_s1] sm:$0xff]  ;;  %v431_v28 = vmov 64.0   ;;  %s400_s9 = sshll.u32 %s528_s19, 3 }
   0xd   : > { %417 = vset.pattern.permute.xlu2 %v430_v2  ;;  %246 = vperm.xlu0 %415, %v243_v9   ;;  %418 = vrcp.f32 %v431_v28  ;;  %v330_v37 = vld [vmem:[%s525_s4] sm:$0xff]  ;;  %s222_s12 = scalar_lea.vmem %s526_s5, %s400_s9 }
   0xe   : > { %s476_s23 = scalar_lea.vmem %s521_s0, %s404_s20  ;;  %333 = vperm.xlu2 %417, %v330_v37   ;;  %v323_v41 = vld [vmem:[%s524_s3] sm:$0xff] }
   0xf   : > { %v240_v0 = vld [vmem:[%s476_s23 + $0x78] sm:$0xff]  ;;  %v239_v1 = vld [vmem:[%s476_s23 + $0x70] sm:$0xff]  ;;  %v238_v3 = vld [vmem:[%s476_s23 + $0x68] sm:$0xff] }
  0x10   : > { %253 = vmatpush.msra.mxu0 %v240_v0  ;;  %v237_v4 = vld [vmem:[%s476_s23 + $0x60] sm:$0xff]  ;;  %v242_v5 = vld [vmem:[%s476_s23 + $0x88] sm:$0xff]  ;;  %v236_v7 = vld [vmem:[%s476_s23 + $0x58] sm:$0xff] }
  0x11   : > { %v241_v6 = vld [vmem:[%s476_s23 + $0x80] sm:$0xff]  ;;  %287 = vmatpush.msra.mxu1 %v242_v5  ;;  %v235_v10 = vld [vmem:[%s476_s23 + $0x50] sm:$0xff]  ;;  %v234_v11 = vld [vmem:[%s476_s23 + $0x48] sm:$0xff] }
  0x12   : > { %254 = vmatpush.msra.mxu0 %v239_v1  ;;  %v233_v12 = vld [vmem:[%s476_s23 + $0x40] sm:$0xff]  ;;  %v232_v13 = vld [vmem:[%s476_s23 + $0x38] sm:$0xff]  ;;  %v231_v14 = vld [vmem:[%s476_s23 + $0x30] sm:$0xff] }
  0x13   : > { %288 = vmatpush.msra.mxu1 %v241_v6  ;;  %v230_v15 = vld [vmem:[%s476_s23 + $0x28] sm:$0xff]  ;;  %v229_v16 = vld [vmem:[%s476_s23 + $0x20] sm:$0xff]  ;;  %v228_v17 = vld [vmem:[%s476_s23 + $0x18] sm:$0xff]  ;;  %v419_v29 = vpop.eup %418 }
  0x14   : > { %255 = vmatpush.msra.mxu0 %v238_v3  ;;  %401 = vmatmul.msk.f32.vlgmr.msra.gmra.mxu1 %vm249_vm0, %v224_v8  ;;  %v227_v18 = vld [vmem:[%s476_s23 + $0x10] sm:$0xff]  ;;  %v226_v19 = vld [vmem:[%s476_s23 + $0x8] sm:$0xff]  ;;  %v225_v20 = vld [vmem:[%s476_s23] sm:$0xff]  ;;  %v298_v30 = vmul.f32 64.0, %v419_v29  ;;  %vm302_vm2 = vweird.f32 %v419_v29 }
  0x16   : > { %256 = vmatpush.msra.mxu0 %v237_v4  ;;  %v299_v31 = vsub.f32 1.0, %v298_v30 }
  0x18   : > { %257 = vmatpush.msra.mxu0 %v236_v7  ;;  %v300_v32 = vmul.f32 %v419_v29, %v299_v31 }
  0x1a   : > { %258 = vmatpush.msra.mxu0 %v235_v10  ;;  %v301_v33 = vadd.f32 %v419_v29, %v300_v32 }
  0x1c   : > { %259 = vmatpush.msra.mxu0 %v234_v11  ;;  %v303_v34 = vsel %vm302_vm2, %v419_v29, %v301_v33 }
  0x1e   : > { %260 = vmatpush.msra.mxu0 %v233_v12 }
  0x20   : > { %261 = vmatpush.msra.mxu0 %v232_v13 }
  0x22   : > { %262 = vmatpush.msra.mxu0 %v231_v14 }
  0x24   : > { %263 = vmatpush.msra.mxu0 %v230_v15 }
  0x26   : > { %264 = vmatpush.msra.mxu0 %v229_v16 }
  0x28   : > { %265 = vmatpush.msra.mxu0 %v228_v17 }
  0x2a   : > { %266 = vmatpush.msra.mxu0 %v227_v18 }
  0x2c   : > { %267 = vmatpush.msra.mxu0 %v226_v19 }
  0x2e   : > { %268 = vmatpush.msra.mxu0 %v225_v20 }
  0x2f   : > { %269 = vmatmul.f32.vlgmr.msra.gmra.mxu0 %v223_v21 }
  0x68   : > { %v334_v54 = vpop.permute.xlu2 %333 }
  0x7f   : > { %v247_v22 = vpop.permute.xlu0 %246 }
  0x91   : > { %v290_v24 = vpop.f32.mrf.mxu1 }
  0xac   : > { %v270_v23 = vpop.f32.mrf.mxu0 }
  0xad   : > { %v271_v25 = vadd.f32 %v270_v23, %v247_v22 }
  0xaf   : > { %v291_v26 = vadd.f32 %v290_v24, %v271_v25 }
  0xb1   : > { %v294_v27 = vsel %vm293_vm1, %v291_v26, 0.0 }
  0xb2   : > { %295 = vadd.xlane.f32.xlu0 %v294_v27 }
 0x125   : > { %v296_v35 = vpop.xlane.xlu0 %295 }
 0x126   : > { %v304_v36 = vmul.f32 %v303_v34, %v296_v35 }
 0x128   : > { %v305_v38 = vsub.f32 %v291_v26, %v304_v36 }
 0x12a   : > { %v306_v39 = vmul.f32 %v305_v38, %v305_v38 }
 0x12c   : > { %v307_v40 = vsel %vm293_vm1, %v306_v39, 0.0 }
 0x12d   : > { %308 = vadd.xlane.f32.xlu1 %v307_v40 }
 0x146   : > { %326 = vperm.xlu1 %416, %v323_v41  }
 0x1a0   : > { %v309_v42 = vpop.xlane.xlu1 %308 }
 0x1a1   : > { %v310_v43 = vmul.f32 %v309_v42, %v303_v34 }
 0x1a3   : > { %v311_v44 = vadd.f32 1e-05, %v310_v43 }
 0x1a5   : > { %420 = vrsqrt.f32 %v311_v44  ;;  %vm318_vm4 = vweird.f32 %v311_v44 }
 0x1ab   : > { %v421_v45 = vpop.eup %420 }
 0x1ac   : > { %v313_v46 = vmul.f32 %v421_v45, %v311_v44  ;;  %vm319_vm3 = vweird.f32 %v421_v45 }
 0x1ad   : > { %vm320_vm5 = vmor %vm318_vm4, %vm319_vm3 }
 0x1ae   : > { %v314_v47 = vmul.f32 %v421_v45, %v313_v46 }
 0x1b0   : > { %v315_v48 = vmul.f32 0.5, %v314_v47 }
 0x1b2   : > { %v316_v49 = vsub.f32 1.5, %v315_v48 }
 0x1b4   : > { %v317_v50 = vmul.f32 %v421_v45, %v316_v49 }
 0x1b6   : > { %v321_v51 = vsel %vm320_vm5, %v421_v45, %v317_v50 }
 0x1b7   : > { %v322_v52 = vmul.f32 %v321_v51, %v305_v38 }
 0x1b8   : > { %v327_v53 = vpop.permute.xlu1 %326 }
 0x1b9   : > { %v329_v55 = vmul.f32 %v327_v53, %v322_v52 }
 0x1bb   : > { %v336_v56 = vadd.f32 %v334_v54, %v329_v55 }
 0x1bd   : > { %vm337_vm6 = vcmp.ge.f32.partialorder %v336_v56, 0.0  ;;  %v338_v57 = vmul.f32 0.01, %v336_v56 }
 0x1bf   : > { %v339_v58 = vsel %vm337_vm6, %v336_v56, %v338_v57 }
 0x1c0   : > { %340 = vst.msk [vmem:[%s222_s12] sm:$0xff] %vm293_vm1, %v339_v58 }
 0x1c1 PF: > { %s15_s18 = sadd.s32 1, %s428_s18  }
 0x1c2   : > { %p12_p4 = scmp.ge.s32.totalorder %s15_s18, 4  }
 0x1c4   :  { %14 = sbr.rel (!%p12_p4) target bundleno = 1 (0x1), region = 70 }

// kernel: umamba_bot_forward.33
= control target key start
LH: loop header
LB: loop body
LE: loop exit
PB: predicated region body
PF: predicated region fallthrough
CT: control target
= control target key end

     0   :  { %s485_s18 = smov 0   ;;  %s543_s0 = inlined_call_operand.vmem [shape: f32[2,72,256], index: 0, kind: input, shape index: {}]   ;;  %s544_s1 = inlined_call_operand.vmem [shape: f32[4,72], index: 1, kind: input, shape index: {}]   ;;  %s545_s2 = inlined_call_operand.vmem [shape: f32[4,1], index: 2, kind: input, shape index: {}]   ;;  %s546_s3 = inlined_call_operand.vmem [shape: f32[4,1], index: 3, kind: input, shape index: {}]   ;;  %s547_s4 = inlined_call_operand.vmem [shape: f32[4,1], index: 4, kind: input, shape index: {}]   ;;  %s548_s5 = inlined_call_operand.vmem [shape: f32[2,4,256], index: 5, kind: output, shape index: {}]  }
   0x1 LB: > { %s414_s19 = sadd.s32 4294967295, %s451_s18   ;;  %p418_p0 = scmp.ge.s32.totalorder %s451_s18, 1  ;;  %s451_s18 = sphi %s485_s18, %s15_s18  }
   0x2   : > { %p187_p1 = scmp.lt.s32.totalorder %s451_s18, 3 }
   0x4   : > { %p188_p2 = pnand %p418_p0, %p187_p1 }
   0x5   : > { %p215_p3 = scmp.lt.s32.totalorder (!%p188_p2), %s414_s19, 1 }
   0x6   : > { %191 = sbr.rel (%p188_p2) target bundleno = 440 (0x1b8), region = 40 }
   0xb   : > { %v453_v0 = vmov 0   ;;  %v244_v1 = vld [vmem:[%s545_s2] sm:$0xf]  ;;  %s550_s19 = smov (!%p215_p3, %s414_s19), 1  ;;  %vm250_vm0 = vcmask 588800   ;;  %vm294_vm1 = vcmask 1043456  }
   0xc   : > { %438 = vset.pattern.permute.xlu0 %v453_v0  ;;  %439 = vset.pattern.permute.xlu1 %v453_v0  ;;  %s427_s22 = smul.u32 144, %s550_s19  ;;  %v225_v20 = vld [vmem:[%s544_s1] sm:$0xf]  ;;  %v454_v29 = vmov 256.0   ;;  %s426_s7 = sshll.u32 %s550_s19, 3 }
   0xd   : > { %247 = vperm.xlu0 %438, %v244_v1   ;;  %440 = vset.pattern.permute.xlu2 %v453_v0  ;;  %441 = vrcp.f32 %v454_v29  ;;  %v339_v40 = vld [vmem:[%s547_s4] sm:$0xf]  ;;  %s224_s10 = scalar_lea.vmem %s548_s5, %s426_s7 }
   0xe   : > { %s502_s25 = scalar_lea.vmem %s543_s0, %s427_s22  ;;  %342 = vperm.xlu2 %440, %v339_v40   ;;  %v331_v46 = vld [vmem:[%s546_s3] sm:$0xf] }
   0xf   : > { %v242_v2 = vld [vmem:[%s502_s25 + $0x80] sm:$0xff]  ;;  %v243_v3 = vld [vmem:[%s502_s25 + $0x88] sm:$0xff]  ;;  %v240_v4 = vld [vmem:[%s502_s25 + $0x70] sm:$0xff] }
  0x10   : > { %261 = vmatpush.msra.mxu0 %v242_v2  ;;  %281 = vmatpush.msra.mxu1 %v243_v3  ;;  %v241_v5 = vld [vmem:[%s502_s25 + $0x78] sm:$0xff]  ;;  %v238_v6 = vld [vmem:[%s502_s25 + $0x60] sm:$0xff]  ;;  %v239_v7 = vld [vmem:[%s502_s25 + $0x68] sm:$0xff] }
  0x11   : > { %v236_v8 = vld [vmem:[%s502_s25 + $0x50] sm:$0xff]  ;;  %v237_v9 = vld [vmem:[%s502_s25 + $0x58] sm:$0xff]  ;;  %v234_v10 = vld [vmem:[%s502_s25 + $0x40] sm:$0xff] }
  0x12   : > { %262 = vmatpush.msra.mxu0 %v240_v4  ;;  %282 = vmatpush.msra.mxu1 %v241_v5  ;;  %v235_v11 = vld [vmem:[%s502_s25 + $0x48] sm:$0xff]  ;;  %v232_v12 = vld [vmem:[%s502_s25 + $0x30] sm:$0xff]  ;;  %v233_v13 = vld [vmem:[%s502_s25 + $0x38] sm:$0xff] }
  0x13   : > { %v230_v14 = vld [vmem:[%s502_s25 + $0x20] sm:$0xff]  ;;  %v231_v15 = vld [vmem:[%s502_s25 + $0x28] sm:$0xff]  ;;  %v228_v16 = vld [vmem:[%s502_s25 + $0x10] sm:$0xff]  ;;  %v442_v30 = vpop.eup %441 }
  0x14   : > { %263 = vmatpush.msra.mxu0 %v238_v6  ;;  %283 = vmatpush.msra.mxu1 %v239_v7  ;;  %v229_v17 = vld [vmem:[%s502_s25 + $0x18] sm:$0xff]  ;;  %v226_v18 = vld [vmem:[%s502_s25] sm:$0xff]  ;;  %v227_v19 = vld [vmem:[%s502_s25 + $0x8] sm:$0xff]  ;;  %v301_v31 = vmul.f32 256.0, %v442_v30  ;;  %vm305_vm2 = vweird.f32 %v442_v30 }
  0x16   : > { %264 = vmatpush.msra.mxu0 %v236_v8  ;;  %284 = vmatpush.msra.mxu1 %v237_v9  ;;  %v302_v32 = vsub.f32 1.0, %v301_v31 }
  0x18   : > { %265 = vmatpush.msra.mxu0 %v234_v10  ;;  %285 = vmatpush.msra.mxu1 %v235_v11  ;;  %v303_v33 = vmul.f32 %v442_v30, %v302_v32 }
  0x1a   : > { %266 = vmatpush.msra.mxu0 %v232_v12  ;;  %286 = vmatpush.msra.mxu1 %v233_v13  ;;  %v304_v34 = vadd.f32 %v442_v30, %v303_v33 }
  0x1c   : > { %267 = vmatpush.msra.mxu0 %v230_v14  ;;  %287 = vmatpush.msra.mxu1 %v231_v15  ;;  %v306_v35 = vsel %vm305_vm2, %v442_v30, %v304_v34 }
  0x1e   : > { %268 = vmatpush.msra.mxu0 %v228_v16  ;;  %288 = vmatpush.msra.mxu1 %v229_v17 }
  0x20   : > { %269 = vmatpush.msra.mxu0 %v226_v18  ;;  %289 = vmatpush.msra.mxu1 %v227_v19 }
  0x21   : > { %422 = vmatmul.msk.f32.vlgmr.msra.gmra.mxu0 %vm250_vm0, %v225_v20  ;;  %423 = vmatmul.msk.f32.vlgmr.msra.gmra.mxu1 %vm250_vm0, %v225_v20 }
  0x68   : > { %v343_v60 = vpop.permute.xlu2 %342 }
  0x7f   : > { %v248_v21 = vpop.permute.xlu0 %247 }
  0x9e   : > { %v271_v22 = vpop.f32.mrf.mxu0  ;;  %v291_v23 = vpop.f32.mrf.mxu1 }
  0x9f   : > { %v272_v24 = vadd.f32 %v271_v22, %v248_v21  ;;  %v292_v25 = vadd.f32 %v291_v23, %v248_v21 }
  0xa1   : > { %v295_v26 = vsel %vm294_vm1, %v272_v24, 0.0  ;;  %v296_v27 = vsel %vm294_vm1, %v292_v25, 0.0 }
  0xa2   : > { %v297_v28 = vadd.f32 %v296_v27, %v295_v26 }
  0xa4   : > { %298 = vadd.xlane.f32.xlu0 %v297_v28 }
 0x117   : > { %v299_v36 = vpop.xlane.xlu0 %298 }
 0x118   : > { %v307_v37 = vmul.f32 %v306_v35, %v299_v36 }
 0x11a   : > { %v308_v38 = vsub.f32 %v272_v24, %v307_v37  ;;  %v309_v39 = vsub.f32 %v292_v25, %v307_v37 }
 0x11c   : > { %v310_v41 = vmul.f32 %v308_v38, %v308_v38  ;;  %v311_v42 = vmul.f32 %v309_v39, %v309_v39 }
 0x11e   : > { %v312_v43 = vsel %vm294_vm1, %v310_v41, 0.0  ;;  %v313_v44 = vsel %vm294_vm1, %v311_v42, 0.0 }
 0x11f   : > { %v314_v45 = vadd.f32 %v313_v44, %v312_v43 }
 0x121   : > { %315 = vadd.xlane.f32.xlu1 %v314_v45 }
 0x13a   : > { %334 = vperm.xlu1 %439, %v331_v46  }
 0x194   : > { %v316_v47 = vpop.xlane.xlu1 %315 }
 0x195   : > { %v317_v48 = vmul.f32 %v316_v47, %v306_v35 }
 0x197   : > { %v318_v49 = vadd.f32 1e-05, %v317_v48 }
 0x199   : > { %443 = vrsqrt.f32 %v318_v49  ;;  %vm325_vm4 = vweird.f32 %v318_v49 }
 0x19f   : > { %v444_v50 = vpop.eup %443 }
 0x1a0   : > { %v320_v51 = vmul.f32 %v444_v50, %v318_v49  ;;  %vm326_vm3 = vweird.f32 %v444_v50 }
 0x1a1   : > { %vm327_vm5 = vmor %vm325_vm4, %vm326_vm3 }
 0x1a2   : > { %v321_v52 = vmul.f32 %v444_v50, %v320_v51 }
 0x1a4   : > { %v322_v53 = vmul.f32 0.5, %v321_v52 }
 0x1a6   : > { %v323_v54 = vsub.f32 1.5, %v322_v53 }
 0x1a8   : > { %v324_v55 = vmul.f32 %v444_v50, %v323_v54 }
 0x1aa   : > { %v328_v56 = vsel %vm327_vm5, %v444_v50, %v324_v55 }
 0x1ab   : > { %v329_v57 = vmul.f32 %v328_v56, %v308_v38  ;;  %v330_v58 = vmul.f32 %v328_v56, %v309_v39 }
 0x1ac   : > { %v335_v59 = vpop.permute.xlu1 %334 }
 0x1ad   : > { %v337_v61 = vmul.f32 %v335_v59, %v329_v57  ;;  %v338_v62 = vmul.f32 %v335_v59, %v330_v58 }
 0x1af   : > { %v345_v63 = vadd.f32 %v343_v60, %v337_v61  ;;  %v346_v0 = vadd.f32 %v343_v60, %v338_v62 }
 0x1b1   : > { %vm348_vm6 = vcmp.ge.f32.partialorder %v346_v0, 0.0  ;;  %v349_v1 = vmul.f32 0.01, %v345_v63  ;;  %v350_v2 = vmul.f32 0.01, %v346_v0  ;;  %vm347_vm7 = vcmp.ge.f32.partialorder %v345_v63, 0.0 }
 0x1b3   : > { %v352_v3 = vsel %vm348_vm6, %v346_v0, %v350_v2  ;;  %v351_v5 = vsel %vm347_vm7, %v345_v63, %v349_v1 }
 0x1b4   : > { %v355_v4 = vrot.slane %v352_v3, 4 }
 0x1b6   : > { %v356_v6 = vsel %vm294_vm1, %v351_v5, %v355_v4 }
 0x1b7   : > { %358 = vst [vmem:[%s224_s10] sm:$0xff] %v356_v6 }
 0x1b8 PF: > { %s15_s18 = sadd.s32 1, %s451_s18  }
 0x1b9   : > { %p12_p4 = scmp.ge.s32.totalorder %s15_s18, 4  }
 0x1bb   :  { %14 = sbr.rel (!%p12_p4) target bundleno = 1 (0x1), region = 70 }

// kernel: umamba_bot_forward.34
= control target key start
LH: loop header
LB: loop body
LE: loop exit
PB: predicated region body
PF: predicated region fallthrough
CT: control target
= control target key end

     0   :  { %s464_s18 = smov 0   ;;  %s502_s0 = inlined_call_operand.vmem [shape: f32[2,8,256], index: 0, kind: input, shape index: {}]   ;;  %s503_s1 = inlined_call_operand.vmem [shape: f32[4,8], index: 1, kind: input, shape index: {}]   ;;  %s504_s2 = inlined_call_operand.vmem [shape: f32[4,1], index: 2, kind: input, shape index: {}]   ;;  %s505_s3 = inlined_call_operand.vmem [shape: f32[4,1], index: 3, kind: input, shape index: {}]   ;;  %s506_s4 = inlined_call_operand.vmem [shape: f32[4,1], index: 4, kind: input, shape index: {}]   ;;  %s507_s5 = inlined_call_operand.vmem [shape: f32[2,4,256], index: 5, kind: output, shape index: {}]  }
   0x1 LB: > { %s392_s19 = sadd.s32 4294967295, %s430_s18   ;;  %p396_p0 = scmp.ge.s32.totalorder %s430_s18, 1  ;;  %s430_s18 = sphi %s464_s18, %s15_s18  }
   0x2   : > { %p187_p1 = scmp.lt.s32.totalorder %s430_s18, 3 }
   0x4   : > { %p188_p2 = pnand %p396_p0, %p187_p1 }
   0x5   : > { %p215_p3 = scmp.lt.s32.totalorder (!%p188_p2), %s392_s19, 1 }
   0x6   : > { %191 = sbr.rel (%p188_p2) target bundleno = 420 (0x1a4), region = 40 }
   0xb   : > { %v432_v0 = vmov 0   ;;  %v228_v1 = vld [vmem:[%s504_s2] sm:$0xf]  ;;  %s509_s19 = smov (!%p215_p3, %s392_s19), 1  ;;  %vm234_vm0 = vcmask 64512   ;;  %vm278_vm1 = vcmask 1043456  }
   0xc   : > { %417 = vset.pattern.permute.xlu0 %v432_v0  ;;  %418 = vset.pattern.permute.xlu1 %v432_v0  ;;  %s405_s22 = sshll.u32 %s509_s19, 4  ;;  %v225_v2 = vld [vmem:[%s503_s1] sm:$0xf]  ;;  %v433_v13 = vmov 256.0   ;;  %s406_s7 = sshll.u32 %s509_s19, 3 }
   0xd   : > { %231 = vperm.xlu0 %417, %v228_v1   ;;  %419 = vset.pattern.permute.xlu2 %v432_v0  ;;  %s219_s25 = scalar_lea.vmem %s502_s0, %s405_s22  ;;  %420 = vrcp.f32 %v433_v13  ;;  %v323_v24 = vld [vmem:[%s506_s4] sm:$0xf]  ;;  %s224_s10 = scalar_lea.vmem %s507_s5, %s406_s7 }
   0xe   : > { %v226_v3 = vld [vmem:[%s219_s25] sm:$0xff]  ;;  %v227_v4 = vld [vmem:[%s219_s25 + $0x8] sm:$0xff]  ;;  %326 = vperm.xlu2 %419, %v323_v24  }
   0xf   : > { %253 = vmatpush.msra.mxu0 %v226_v3  ;;  %273 = vmatpush.msra.mxu1 %v227_v4  ;;  %v315_v30 = vld [vmem:[%s505_s3] sm:$0xf] }
  0x10   : > { %401 = vmatmul.msk.f32.vlgmr.msra.gmra.mxu0 %vm234_vm0, %v225_v2  ;;  %402 = vmatmul.msk.f32.vlgmr.msra.gmra.mxu1 %vm234_vm0, %v225_v2 }
  0x13   : > { %v421_v14 = vpop.eup %420 }
  0x14   : > { %v285_v15 = vmul.f32 256.0, %v421_v14  ;;  %vm289_vm2 = vweird.f32 %v421_v14 }
  0x16   : > { %v286_v16 = vsub.f32 1.0, %v285_v15 }
  0x18   : > { %v287_v17 = vmul.f32 %v421_v14, %v286_v16 }
  0x1a   : > { %v288_v18 = vadd.f32 %v421_v14, %v287_v17 }
  0x1c   : > { %v290_v19 = vsel %vm289_vm2, %v421_v14, %v288_v18 }
  0x68   : > { %v327_v44 = vpop.permute.xlu2 %326 }
  0x7f   : > { %v232_v5 = vpop.permute.xlu0 %231 }
  0x8d   : > { %v255_v6 = vpop.f32.mrf.mxu0  ;;  %v275_v7 = vpop.f32.mrf.mxu1 }
  0x8e   : > { %v256_v8 = vadd.f32 %v255_v6, %v232_v5  ;;  %v276_v9 = vadd.f32 %v275_v7, %v232_v5 }
  0x90   : > { %v279_v10 = vsel %vm278_vm1, %v256_v8, 0.0  ;;  %v280_v11 = vsel %vm278_vm1, %v276_v9, 0.0 }
  0x91   : > { %v281_v12 = vadd.f32 %v280_v11, %v279_v10 }
  0x93   : > { %282 = vadd.xlane.f32.xlu0 %v281_v12 }
 0x106   : > { %v283_v20 = vpop.xlane.xlu0 %282 }
 0x107   : > { %v291_v21 = vmul.f32 %v290_v19, %v283_v20 }
 0x109   : > { %v292_v22 = vsub.f32 %v256_v8, %v291_v21  ;;  %v293_v23 = vsub.f32 %v276_v9, %v291_v21 }
 0x10b   : > { %v294_v25 = vmul.f32 %v292_v22, %v292_v22  ;;  %v295_v26 = vmul.f32 %v293_v23, %v293_v23 }
 0x10d   : > { %v296_v27 = vsel %vm278_vm1, %v294_v25, 0.0  ;;  %v297_v28 = vsel %vm278_vm1, %v295_v26, 0.0 }
 0x10e   : > { %v298_v29 = vadd.f32 %v297_v28, %v296_v27 }
 0x110   : > { %299 = vadd.xlane.f32.xlu1 %v298_v29 }
 0x129   : > { %318 = vperm.xlu1 %418, %v315_v30  }
 0x183   : > { %v300_v31 = vpop.xlane.xlu1 %299 }
 0x184   : > { %v301_v32 = vmul.f32 %v300_v31, %v290_v19 }
 0x186   : > { %v302_v33 = vadd.f32 1e-05, %v301_v32 }
 0x188   : > { %422 = vrsqrt.f32 %v302_v33  ;;  %vm309_vm4 = vweird.f32 %v302_v33 }
 0x18e   : > { %v423_v34 = vpop.eup %422 }
 0x18f   : > { %v304_v35 = vmul.f32 %v423_v34, %v302_v33  ;;  %vm310_vm3 = vweird.f32 %v423_v34 }
 0x190   : > { %vm311_vm5 = vmor %vm309_vm4, %vm310_vm3 }
 0x191   : > { %v305_v36 = vmul.f32 %v423_v34, %v304_v35 }
 0x193   : > { %v306_v37 = vmul.f32 0.5, %v305_v36 }
 0x195   : > { %v307_v38 = vsub.f32 1.5, %v306_v37 }
 0x197   : > { %v308_v39 = vmul.f32 %v423_v34, %v307_v38 }
 0x199   : > { %v312_v40 = vsel %vm311_vm5, %v423_v34, %v308_v39 }
 0x19a   : > { %v313_v41 = vmul.f32 %v312_v40, %v292_v22  ;;  %v314_v42 = vmul.f32 %v312_v40, %v293_v23 }
 0x19b   : > { %v319_v43 = vpop.permute.xlu1 %318 }
 0x19c   : > { %v321_v45 = vmul.f32 %v319_v43, %v313_v41  ;;  %v322_v46 = vmul.f32 %v319_v43, %v314_v42 }
 0x19e   : > { %v330_v47 = vadd.f32 %v327_v44, %v322_v46  ;;  %v329_v48 = vadd.f32 %v327_v44, %v321_v45 }
 0x1a0   : > { %v333_v49 = vrot.slane %v330_v47, 4 }
 0x1a2   : > { %v334_v50 = vsel %vm278_vm1, %v329_v48, %v333_v49 }
 0x1a3   : > { %336 = vst [vmem:[%s224_s10] sm:$0xff] %v334_v50 }
 0x1a4 PF: > { %s15_s18 = sadd.s32 1, %s430_s18  }
 0x1a5   : > { %p12_p4 = scmp.ge.s32.totalorder %s15_s18, 4  }
 0x1a7   :  { %14 = sbr.rel (!%p12_p4) target bundleno = 1 (0x1), region = 70 }

</bundles_post_ra>
